<compile_context>
chip_gen: v5e
topology: v5e:2x2
jax: 0.10.0
libtpu: 0.0.40
codegen_flags: <defaults>
</compile_context>

<pallas_src>
import jax
import jax.numpy as jnp
from jax.experimental import pallas as pl
from jax.experimental.pallas import tpu as pltpu

_MIB = 1024 * 1024


def _fourier_features_kernel(x_ref, wp_ref, o_ref):
    # x_ref:  (tn, 1)    tile of input coordinates
    # wp_ref: (2, 2Mp)   row 0 = [2*pi*B.T, 2*pi*B.T, 0-pad]
    #                    row 1 = [0..0,     pi/2..pi/2, 0-pad]
    # o_ref:  (tn, 2Mp)  sin(x*w + phase) = [sin(proj), cos(proj), 0-pad]
    x = x_ref[...].astype(jnp.float32)        # keep range reduction in f32
    w = wp_ref[0:1, :]                        # (1, 2Mp)
    phase = wp_ref[1:2, :]                    # (1, 2Mp)
    o_ref[...] = jnp.sin(x * w + phase).astype(o_ref.dtype)


def fourier_features_1d(x, B, scale, *, out_dtype=None,
                        vmem_budget_bytes=24 * _MIB,
                        vmem_limit_bytes=32 * _MIB):
    """JAX/Pallas equivalent of FourierFeatures1D.forward.

    Args:
      x: (num_points,) or (num_points, 1) coordinates.
      B: (mapping_size, 1) projection matrix (scale * randn).
      scale: static python scalar; if 0, returns x (after unsqueeze) unchanged.
      out_dtype: optional output dtype. Pass jnp.bfloat16 to halve the HBM
        writeback (recommended when downstream tolerates it; the kernel is
        store-bound for f32 output on v5e/v6e).
      vmem_budget_bytes: double-buffered VMEM working-set budget used to pick
        the row tile (24 MiB is safe on v5e/v6e/v7x with the 32 MiB limit).
      vmem_limit_bytes: scoped VMEM limit handed to Mosaic.

    Returns:
      (num_points, 2*mapping_size) array [sin(2*pi*x@B.T), cos(2*pi*x@B.T)],
      or x itself as (num_points, 1) when scale == 0.
    """
    if x.ndim == 1:
        x = x[:, None]
    scale = float(scale)                       # module-init attribute -> static
    if scale == 0.0:
        return x

    num_points = x.shape[0]
    mapping_size = B.shape[0]
    out_dtype = x.dtype if out_dtype is None else out_dtype
    two_m = 2 * mapping_size
    # Pad the lane dim to a multiple of 128 so every store is an unmasked,
    # lane-dense vst (biggest single lever per the layout docs).
    two_m_pad = ((two_m + 127) // 128) * 128

    # Fold 2*pi into the weights; express cos as a phase-shifted sin; merge
    # weights + phases into one resident (2, 2Mp) table (one input stream).
    two_pi_bt = (2.0 * jnp.pi) * B.astype(jnp.float32).reshape(1, mapping_size)
    w = jnp.concatenate([two_pi_bt, two_pi_bt], axis=-1)               # (1, 2M)
    phase = jnp.concatenate(
        [jnp.zeros((1, mapping_size), jnp.float32),
         jnp.full((1, mapping_size), 0.5 * jnp.pi, jnp.float32)], axis=-1)
    wp = jnp.concatenate([w, phase], axis=0)                           # (2, 2M)
    if two_m_pad != two_m:
        wp = jnp.pad(wp, ((0, 0), (0, two_m_pad - two_m)))  # pad lanes -> sin(0)=0

    # ---- Tile selection -----------------------------------------------------
    # Per double-buffered row the VMEM footprint is roughly:
    #   output: two_m_pad * itemsize(out)
    #   x tile: ~512 B   ((tn,1) f32 block pads to 128 lanes)
    out_itemsize = jnp.dtype(out_dtype).itemsize
    bytes_per_row = two_m_pad * out_itemsize + 512

    if num_points <= 8:
        tn = num_points                       # block == full dim (valid layout)
    else:
        # Largest multiple-of-8 tile that fits the double-buffered budget.
        tn = max(8, (vmem_budget_bytes // (2 * bytes_per_row)) // 8 * 8)
        tn = min(tn, pl.cdiv(num_points, 8) * 8)
        if tn >= num_points:
            # Guarantee >= 2 grid steps so v7x megacore (2 TCs) can split rows.
            tn = max(8, pl.cdiv(pl.cdiv(num_points, 2), 8) * 8)

    grid = (pl.cdiv(num_points, tn),)         # ragged last block masked by Pallas

    cost = pl.CostEstimate(
        flops=2 * num_points * two_m_pad,             # mul + add per element
        transcendentals=num_points * two_m_pad,       # one sin per element
        bytes_accessed=(num_points * x.dtype.itemsize
                        + num_points * two_m_pad * out_itemsize
                        + 2 * two_m_pad * 4),
    )

    out = pl.pallas_call(
        _fourier_features_kernel,
        out_shape=jax.ShapeDtypeStruct((num_points, two_m_pad), out_dtype),
        grid_spec=pltpu.PrefetchScalarGridSpec(
            num_scalar_prefetch=0,
            grid=grid,
            in_specs=[
                pl.BlockSpec((tn, 1), lambda i: (i, 0)),
                pl.BlockSpec((2, two_m_pad), lambda i: (0, 0)),
            ],
            out_specs=pl.BlockSpec((tn, two_m_pad), lambda i: (i, 0)),
        ),
        compiler_params=pltpu.CompilerParams(
            dimension_semantics=("parallel",),
            vmem_limit_bytes=vmem_limit_bytes,
        ),
        cost_estimate=cost,
    )(x, wp)

    if two_m_pad != two_m:
        out = out[:, :two_m]                  # drop pad lanes
    return out


def reference_fourier_features_1d(x, B, scale):
    """Pure-JAX reference mirroring the PyTorch forward."""
    if x.ndim == 1:
        x = x[:, None]
    if scale == 0:
        return x
    x_proj = jnp.matmul(2.0 * jnp.pi * x, B.T)
    return jnp.concatenate([jnp.sin(x_proj), jnp.cos(x_proj)], axis=-1)


if __name__ == "__main__":
    key = jax.random.PRNGKey(0)
    k_b, k_x, k_b2 = jax.random.split(key, 3)

    scale = 1.0
    mapping_size = 64            # -> 2M = 128 lanes, full-width unmasked stores
    num_points = 333             # deliberately ragged vs the 8-row tile quantum

    # Deterministic "parameter" init: B = scale * randn((mapping_size, 1))
    B = scale * jax.random.normal(k_b, (mapping_size, 1), dtype=jnp.float32)
    x = jax.random.uniform(k_x, (num_points,), dtype=jnp.float32)  # 1-D coords

    ref = reference_fourier_features_1d(x, B, scale)
    out = jax.block_until_ready(fourier_features_1d(x, B, scale))
    assert out.shape == (num_points, 2 * mapping_size), out.shape
    assert jnp.allclose(out, ref, atol=2e-5, rtol=1e-5), \
        float(jnp.max(jnp.abs(out - ref)))

    # Non-multiple-of-128 lane width -> padded inside the kernel, sliced back.
    mapping_size2 = 40
    B2 = scale * jax.random.normal(k_b2, (mapping_size2, 1), dtype=jnp.float32)
    ref2 = reference_fourier_features_1d(x, B2, scale)
    out2 = jax.block_until_ready(fourier_features_1d(x, B2, scale))
    assert out2.shape == (num_points, 2 * mapping_size2), out2.shape
    assert jnp.allclose(out2, ref2, atol=2e-5, rtol=1e-5)

    # bf16 writeback option (store-bound f32 case on v5e/v6e).
    out_bf16 = jax.block_until_ready(
        fourier_features_1d(x, B, scale, out_dtype=jnp.bfloat16))
    assert out_bf16.dtype == jnp.bfloat16
    assert jnp.allclose(out_bf16.astype(jnp.float32), ref, atol=2e-2, rtol=2e-2)

    # scale == 0 path (no kernel needed, returns x unsqueezed).
    out0 = fourier_features_1d(x, B, 0.0)
    assert out0.shape == (num_points, 1)

    print("KERNEL_OK")
</pallas_src>

<mosaic_0001>
module attributes {stable_mosaic.version = 11 : i64} {
  func.func @_fourier_features_kernel(%arg0: i32, %arg1: memref<168x1xf32, #tpu.memory_space<vmem>>, %arg2: memref<2x128xf32, #tpu.memory_space<vmem>>, %arg3: memref<168x128xf32, #tpu.memory_space<vmem>>) attributes {dimension_semantics = [#tpu.dimension_semantics<parallel>], iteration_bounds = array<i64: 2>, scalar_prefetch = 0 : i64, scratch_operands = 0 : i64, tpu.core_type = #tpu.core_type<tc>, window_params = [{transform_indices = @transform_0, window_bounds = array<i64: 168, 1>}, {pipeline_mode = #tpu.pipeline_mode<synchronous>, transform_indices = @transform_1, window_bounds = array<i64: 2, 128>}, {transform_indices = @transform_2, window_bounds = array<i64: 168, 128>}]} {
    %c0 = arith.constant 0 : index
    %c0_0 = arith.constant 0 : index
    %0 = vector.load %arg1[%c0, %c0_0] : memref<168x1xf32, #tpu.memory_space<vmem>>, vector<168x1xf32>
    %c0_1 = arith.constant 0 : index
    %c0_2 = arith.constant 0 : index
    %1 = vector.load %arg2[%c0_1, %c0_2] : memref<2x128xf32, #tpu.memory_space<vmem>>, vector<1x128xf32>
    %c1 = arith.constant 1 : index
    %c0_3 = arith.constant 0 : index
    %2 = vector.load %arg2[%c1, %c0_3] : memref<2x128xf32, #tpu.memory_space<vmem>>, vector<1x128xf32>
    %3 = vector.broadcast %0 : vector<168x1xf32> to vector<168x128xf32>
    %4 = vector.broadcast %1 : vector<1x128xf32> to vector<168x128xf32>
    %5 = arith.mulf %3, %4 : vector<168x128xf32>
    %6 = vector.broadcast %2 : vector<1x128xf32> to vector<168x128xf32>
    %7 = arith.addf %5, %6 : vector<168x128xf32>
    %8 = math.sin %7 : vector<168x128xf32>
    %c0_4 = arith.constant 0 : index
    %c0_5 = arith.constant 0 : index
    %9 = vector.load %arg3[%c0_4, %c0_5] : memref<168x128xf32, #tpu.memory_space<vmem>>, vector<168x128xf32>
    tpu.vector_store %arg3[%c0_4, %c0_5], %8 {strides = array<i32>} : memref<168x128xf32, #tpu.memory_space<vmem>>, vector<168x128xf32>,
    return
  }
  func.func @transform_0(%arg0: i32) -> (i32, i32) {
    %c0_i32 = arith.constant 0 : i32
    %c0_i32_0 = arith.constant 0 : i32
    return %arg0, %c0_i32 : i32, i32
  }
  func.func @transform_1(%arg0: i32) -> (i32, i32) {
    %c0_i32 = arith.constant 0 : i32
    %c0_i32_0 = arith.constant 0 : i32
    %c0_i32_1 = arith.constant 0 : i32
    return %c0_i32, %c0_i32_0 : i32, i32
  }
  func.func @transform_2(%arg0: i32) -> (i32, i32) {
    %c0_i32 = arith.constant 0 : i32
    %c0_i32_0 = arith.constant 0 : i32
    return %arg0, %c0_i32 : i32, i32
  }
}

</mosaic_0001>

<bundles_post_ra>
// kernel: tpu_custom_call.1
= control target key start
LH: loop header
LB: loop body
LE: loop exit
PB: predicated region body
PF: predicated region fallthrough
CT: control target
= control target key end

     0   :  { %7 = vsyncpa [#allocation3], 0  ;;  %s6388_s0 = inlined_call_operand.vmem [shape: f32[333,1], index: 0, kind: input, shape index: {}]   ;;  %s6389_s1 = inlined_call_operand.vmem [shape: f32[2,128], index: 1, kind: input, shape index: {}]   ;;  %s6390_s2 = inlined_call_operand.hbm [shape: f32[333,128], index: 2, kind: output, shape index: {}]  }
   0x1   :  { %9 = vsyncpa [#allocation3 + $0x1], 0  ;;  %s3893_s9 = smov 0   ;;  %s3895_s10 = smov 0  }
   0x2   :  { %s3897_s11 = smov 0   ;;  %s3899_s12 = smov 0  }
   0x3 LB: > { %s3914_s13 = sadd.s32 4294967295, %s3867_s12   ;;  %s3671_s14 = sadd.s32 4294967294, %s3867_s12   ;;  %s3867_s12 = sphi %s3899_s12, %s6428_s12   ;;  %s3863_s11 = sphi %s3897_s11, %s6427_s11   ;;  %s3859_s10 = sphi %s3895_s10, %s6426_s10   ;;  %s3855_s9 = sphi %s3893_s9, %s6425_s9  }
   0x4   : > { %s3918_s15 = sadd.s32 1, %s3867_s12   ;;  %s69_s16 = sadd.s32 1, %s3863_s11 }
   0x5   : > { %s66_s17 = ssub.s32 %s3867_s12, %s3918_s15  ;;  %p79_p0 = scmp.ne.s32.totalorder %s3863_s11, %s3859_s10 }
   0x6   : > { %p67_p1 = scmp.eq.s32.totalorder %s66_s17, 0  ;;  %p80_p2 = scmp.eq.s32.totalorder %s3914_s13, 1 }
   0x7   : > { %p85_p3 = scmp.ne.s32.totalorder %s3859_s10, %s3855_s9  ;;  %p86_p4 = scmp.eq.s32.totalorder %s3671_s14, 1 }
   0x8   : > { %s3929_s18 = scalar_select %p67_p1, %s3863_s11, %s69_s16  }
   0x9   : > { %p3931_p5 = por %p80_p2, %p79_p0  ;;  %p3935_p6 = por %p86_p4, %p85_p3 }
   0xa   : > { %p3674_p7 = scmp.ge.s32.totalorder %s3867_s12, 1  ;;  %p116_p8 = scmp.lt.s32.totalorder %s3867_s12, 3 }
   0xc   : > { %p117_p9 = pnand %p3674_p7, %p116_p8 }
   0xd   : > { %s138_s21 = smul.u32 (!%p117_p9), 21, %s3914_s13  ;;  %s135_s30 = sand.u32 (!%p117_p9), 1, %s3859_s10  }
   0xe   : > { %120 = sbr.rel (%p117_p9) target bundleno = 979 (0x3d3), region = 28  ;;  %s3825_s23 = scalar_lea.hbm (!%p117_p9), %s6390_s2, 336 }
   0xf   : > { %p139_p10 = scmp.lt.s32.totalorder (!%p117_p9), %s138_s21, 41  ;;  %s3743_s3 = smul.u32 (!%p117_p9), 168, %s135_s30 }
  0x11   : > { %s4272_s4 = scalar_lea.vmem (!%p117_p9), [#allocation2], %s3743_s3  ;;  %s3742_s3 = smul.u32 (!%p117_p9), 168, %s3914_s13 }
  0x12   : > { %s3606_s8 = sshll.u32 (!%p117_p9), %s4272_s4, 4  ;;  %s3594_s13 = scalar_lea.sflag (!%p117_p9), [#allocation3], %s135_s30  ;;  %s3607_s8 = int_to_ptr.vmem [resolvable:$true] %s3606_s8 }
  0x13   : > { %v3869_v0 = vmov 0   ;;  %s6430_s21 = smov (!%p139_p10, %s138_s21), 41  ;;  %v3974_v22 = vld [vmem:[%s6389_s1] ss:$0 sm:$0xff]  ;;  %v3980_v25 = vld [vmem:[%s6389_s1 + $0x1] ss:$0 sm:$0xff]  ;;  %s3605_s7 = scalar_lea.hbm %s6390_s2, %s3742_s3 }
  0x14   : > { %3794 = vset.pattern.permute.xlu2 %v3869_v0  ;;  %3793 = vset.pattern.permute.xlu1 %v3869_v0  ;;  %s3675_s22 = sshll.u32 %s6430_s21, 3  ;;  %v3870_v44 = vmov 683565275   ;;  %v3871_v47 = vmov 2475754826   ;;  %s3608_s14 = sshll.u32 %s3605_s7, 4  ;;  %s3609_s14 = int_to_ptr.hbm [resolvable:$true] %s3608_s14 }
  0x15   : > { %3792 = vset.pattern.permute.xlu0 %v3869_v0  ;;  %s3948_s25 = scalar_lea.vmem %s6388_s0, %s3675_s22  ;;  %v3872_v50 = vmov 2131351028   ;;  %v3873_v53 = vmov 2102212464   ;;  %v3874_v56 = vmov 920167782  }
  0x16   : > { %v149_v1 = vld [vmem:[%s3948_s25 + $0x20] sm:$0xff]  ;;  %v147_v2 = vld [vmem:[%s3948_s25 + $0x10] sm:$0xff]  ;;  %v150_v4 = vld [vmem:[%s3948_s25 + $0x28] sm:$0xff]  ;;  %v3875_v58 = vmov 1326507024   ;;  %s3819_s16 = sshra.s32 %s3609_s14, 4  ;;  %s3820_s16 = int_to_ptr.hbm [resolvable:$true] %s3819_s16 }
  0x17   : > { %v145_v3 = vld [vmem:[%s3948_s25] sm:$0xff]  ;;  %190 = vperm.xlu2 %3794, %v149_v1   ;;  %180 = vperm.xlu1 %3793, %v147_v2   ;;  %v148_v5 = vld [vmem:[%s3948_s25 + $0x18] sm:$0xff]  ;;  %v146_v6 = vld [vmem:[%s3948_s25 + $0x8] sm:$0xff]  ;;  %s3821_s17 = scalar_lea.hbm %s3820_s16, 168  ;;  %p3826_p0 = scmp.lt.s32.totalorder %s3820_s16, %s6390_s2 }
  0x18   : > { %170 = vperm.xlu0 %3792, %v145_v3   ;;  %v153_v7 = vld [vmem:[%s3948_s25 + $0x40] sm:$0xff]  ;;  %v152_v8 = vld [vmem:[%s3948_s25 + $0x38] sm:$0xff]  ;;  %v151_v9 = vld [vmem:[%s3948_s25 + $0x30] sm:$0xff]  ;;  %p3822_p11 = scmp.ne.s32.totalorder %s3820_s16, %s3821_s17  ;;  %p3827_p1 = scmp.lt.s32.totalorder %s3825_s23, %s3821_s17 }
  0x19   : > { %v156_v10 = vld [vmem:[%s3948_s25 + $0x58] sm:$0xff]  ;;  %v155_v11 = vld [vmem:[%s3948_s25 + $0x50] sm:$0xff]  ;;  %v154_v12 = vld [vmem:[%s3948_s25 + $0x48] sm:$0xff] }
  0x1a   : > { %v159_v13 = vld [vmem:[%s3948_s25 + $0x70] sm:$0xff]  ;;  %v158_v14 = vld [vmem:[%s3948_s25 + $0x68] sm:$0xff]  ;;  %v157_v15 = vld [vmem:[%s3948_s25 + $0x60] sm:$0xff]  ;;  %p3823_p12 = pnand %p3822_p11, %p3931_p5  ;;  %p3828_p2 = por %p3827_p1, %p3826_p0 }
  0x1b   : > { %v162_v16 = vld [vmem:[%s3948_s25 + $0x88] sm:$0xff]  ;;  %v161_v17 = vld [vmem:[%s3948_s25 + $0x80] sm:$0xff]  ;;  %v160_v18 = vld [vmem:[%s3948_s25 + $0x78] sm:$0xff] }
  0x1c   : > { %v165_v19 = vld [vmem:[%s3948_s25 + $0xa0] sm:$0xff]  ;;  %v164_v20 = vld [vmem:[%s3948_s25 + $0x98] sm:$0xff]  ;;  %v163_v21 = vld [vmem:[%s3948_s25 + $0x90] sm:$0xff]  ;;  %p3824_p13 = pneg %p3823_p12 }
  0x1e   : > { %p3829_p3 = pnand %p3828_p2, %p3824_p13 }
  0x1f   : > { %195 = vperm.xlu2 %3794, %v150_v4   ;;  %185 = vperm.xlu1 %3793, %v148_v5  }
  0x20   : > { %175 = vperm.xlu0 %3792, %v146_v6  }
  0x27   : > { %210 = vperm.xlu2 %3794, %v153_v7   ;;  %205 = vperm.xlu1 %3793, %v152_v8  }
  0x28   : > { %200 = vperm.xlu0 %3792, %v151_v9  }
  0x2f   : > { %225 = vperm.xlu2 %3794, %v156_v10   ;;  %220 = vperm.xlu1 %3793, %v155_v11  }
  0x30   : > { %215 = vperm.xlu0 %3792, %v154_v12  }
  0x37   : > { %240 = vperm.xlu2 %3794, %v159_v13   ;;  %235 = vperm.xlu1 %3793, %v158_v14  }
  0x38   : > { %230 = vperm.xlu0 %3792, %v157_v15  }
  0x3f   : > { %255 = vperm.xlu2 %3794, %v162_v16   ;;  %250 = vperm.xlu1 %3793, %v161_v17  }
  0x40   : > { %245 = vperm.xlu0 %3792, %v160_v18  }
  0x47   : > { %270 = vperm.xlu2 %3794, %v165_v19   ;;  %265 = vperm.xlu1 %3793, %v164_v20  }
  0x48   : > { %260 = vperm.xlu0 %3792, %v163_v21  }
  0x89   : > { %v181_v33 = vpop.permute.xlu1 %180 }
  0x8a   : > { %v171_v23 = vpop.permute.xlu0 %170  ;;  %v276_v36 = vmul.f32 %v3974_v22, %v181_v33 }
  0x8b   : > { %v274_v24 = vmul.f32 %v3974_v22, %v171_v23 }
  0x8c   : > { %v3995_v42 = vadd.f32 %v3980_v25, %v276_v36 }
  0x8d   : > { %v3983_v26 = vadd.f32 %v3980_v25, %v274_v24 }
  0x8e   : > { %v630_v8 = vand.u32 2139095040, %v3995_v42 }
  0x8f   : > { %v320_v27 = vand.u32 2139095040, %v3983_v26  ;;  %v317_v30 = vand.u32 2147483647, %v3983_v26  ;;  %vm319_vm15 = vcmp.lt.s32.totalorder %v3983_v26, 0 }
  0x91   : > { %v321_v28 = vshrl.u32 %v320_v27, 23  ;;  %v324_v35 = vand.u32 8388607, %v317_v30 }
  0x92   : > { %v176_v29 = vpop.permute.xlu0 %175 }
  0x93   : > { %v3676_v31 = vadd.s32 4294967169, %v321_v28  ;;  %v275_v32 = vmul.f32 %v3974_v22, %v176_v29  ;;  %v325_v40 = vor.u32 8388608, %v324_v35 }
  0x95   : > { %v327_v34 = vadd.s32 1, %v3676_v31  ;;  %v3992_v37 = vadd.f32 %v3980_v25, %v275_v32  ;;  %v4010_v63 = vshll.u32 %v325_v40, 8  ;;  %v631_v31 = vshrl.u32 %v630_v8, 23 }
  0x97   : > { %vm328_vm0 = vcmp.gt.s32.totalorder %v327_v34, 0  ;;  %v475_v46 = vand.u32 2139095040, %v3992_v37  ;;  %v366_v11 = vand.u32 65535, %v4010_v63  ;;  %v367_v14 = vshrl.u32 %v4010_v63, 16 }
  0x98   : > { %v329_v38 = vsel %vm328_vm0, %v327_v34, 0  ;;  %v472_v18 = vand.u32 2147483647, %v3992_v37 }
  0x99   : > { %v331_v39 = vand.u32 31, %v329_v38  ;;  %v3997_v43 = vshrl.u32 %v329_v38, 5  ;;  %v476_v3 = vshrl.u32 %v475_v46, 23 }
  0x9a   : > { %v4039_v35 = vand.u32 8388607, %v472_v18 }
  0x9b   : > { %v332_v41 = vsub.s32 32, %v331_v39  ;;  %v334_v45 = vshll.u32 %v3870_v44, %v331_v39  ;;  %v337_v49 = vshll.u32 %v3871_v47, %v331_v39  ;;  %v340_v52 = vshll.u32 %v3872_v50, %v331_v39 }
  0x9c   : > { %v343_v55 = vshll.u32 %v3873_v53, %v331_v39  ;;  %v346_v62 = vshll.u32 %v3874_v56, %v331_v39  ;;  %vm349_vm1 = vcmp.lt.s32.totalorder %v3997_v43, 1  ;;  %vm352_vm2 = vcmp.lt.s32.totalorder %v3997_v43, 4 }
  0x9d   : > { %v335_v48 = vshrl.u32 %v3871_v47, %v332_v41  ;;  %v338_v51 = vshrl.u32 %v3872_v50, %v332_v41  ;;  %v341_v54 = vshrl.u32 %v3873_v53, %v332_v41  ;;  %v344_v57 = vshrl.u32 %v3874_v56, %v332_v41 }
  0x9e   : > { %v347_v59 = vshrl.u32 %v3875_v58, %v332_v41  ;;  %vm351_vm3 = vcmp.lt.s32.totalorder %v3997_v43, 3  ;;  %vm350_vm4 = vcmp.lt.s32.totalorder %v3997_v43, 2  ;;  %v3679_v12 = vadd.s32 4294967169, %v476_v3 }
  0x9f   : > { %v336_v60 = vor.u32 %v335_v48, %v334_v45  ;;  %v339_v61 = vor.u32 %v338_v51, %v337_v49  ;;  %v342_v1 = vor.u32 %v341_v54, %v340_v52  ;;  %v345_v2 = vor.u32 %v344_v57, %v343_v55 }
  0xa0   : > { %v348_v4 = vor.u32 %v347_v59, %v346_v62  ;;  %v482_v27 = vadd.s32 1, %v3679_v12  ;;  %v333_v32 = vshrl.u32 %v3870_v44, %v332_v41 }
  0xa1   : > { %v357_v5 = vsel %vm349_vm1, %v336_v60, %v339_v61  ;;  %v358_v6 = vsel %vm352_vm2, %v345_v2, 920167782  ;;  %v361_v10 = vsel %vm349_vm1, %v339_v61, %v342_v1  ;;  %v354_v36 = vsel %vm352_vm2, %v342_v1, 2102212464 }
  0xa2   : > { %v359_v7 = vsel %vm351_vm3, %v342_v1, %v358_v6  ;;  %v362_v13 = vsel %vm352_vm2, %v348_v4, 1326507024  ;;  %vm483_vm6 = vcmp.gt.s32.totalorder %v482_v27, 0  ;;  %v353_v55 = vsel %vm349_vm1, %v333_v32, %v336_v60 }
  0xa3   : > { %v360_v9 = vsel %vm350_vm4, %v357_v5, %v359_v7  ;;  %v363_v17 = vsel %vm351_vm3, %v345_v2, %v362_v13  ;;  %v355_v57 = vsel %vm351_vm3, %v339_v61, %v354_v36  ;;  %v484_v62 = vsel %vm483_vm6, %v482_v27, 0 }
  0xa4   : > { %v390_v15 = vand.u32 65535, %v360_v9  ;;  %v391_v16 = vshrl.u32 %v360_v9, 16  ;;  %v364_v19 = vsel %vm350_vm4, %v361_v10, %v363_v17  ;;  %v486_v5 = vand.u32 31, %v484_v62 }
  0xa5   : > { %v368_v23 = vand.u32 65535, %v364_v19  ;;  %v369_v24 = vshrl.u32 %v364_v19, 16  ;;  %v3682_v6 = vadd.s32 4294967169, %v631_v31  ;;  %v356_v60 = vsel %vm350_vm4, %v353_v55, %v355_v57 }
  0xa6   : > { %v393_v20 = vmul.u32 %v391_v16, %v366_v11  ;;  %v394_v21 = vmul.u32 %v390_v15, %v367_v14  ;;  %v392_v28 = vmul.u32 %v390_v15, %v366_v11  ;;  %v395_v46 = vmul.u32 %v391_v16, %v367_v14 }
  0xa7   : > { %v371_v33 = vmul.u32 %v369_v24, %v366_v11  ;;  %v372_v34 = vmul.u32 %v368_v23, %v367_v14  ;;  %v370_v40 = vmul.u32 %v368_v23, %v366_v11  ;;  %v373_v48 = vmul.u32 %v369_v24, %v367_v14 }
  0xa8   : > { %v396_v29 = vshll.u32 %v393_v20, 16  ;;  %v398_v38 = vshll.u32 %v394_v21, 16  ;;  %v397_v2 = vshrl.u32 %v393_v20, 16  ;;  %v399_v9 = vshrl.u32 %v394_v21, 16 }
  0xa9   : > { %v374_v45 = vshll.u32 %v371_v33, 16  ;;  %v376_v49 = vshll.u32 %v372_v34, 16  ;;  %v375_v7 = vshrl.u32 %v371_v33, 16  ;;  %v377_v11 = vshrl.u32 %v372_v34, 16 }
  0xaa   : > { %vm400_vm5 = vc.u32 %v392_v28, %v396_v29  ;;  %v402_v39 = vadd.s32 %v396_v29, %v392_v28  ;;  %v480_v61 = vor.u32 8388608, %v4039_v35  ;;  %v487_v12 = vsub.s32 32, %v486_v5  ;;  %v191_v28 = vpop.permute.xlu2 %190 }
  0xab   : > { %v401_v41 = vsel %vm400_vm5, 1, %v3869_v0  ;;  %vm378_vm8 = vc.u32 %v370_v40, %v374_v45  ;;  %v380_v51 = vadd.s32 %v374_v45, %v370_v40  ;;  %v4056_v16 = vshrl.u32 %v484_v62, 5 }
  0xac   : > { %vm404_vm7 = vc.u32 %v402_v39, %v398_v38  ;;  %v403_v52 = vadd.s32 %v401_v41, %v395_v46  ;;  %v379_v59 = vsel %vm378_vm8, 1, %v3869_v0  ;;  %v4054_v14 = vadd.s32 %v402_v39, %v398_v38 }
  0xad   : > { %v405_v54 = vsel %vm404_vm7, 1, %v3869_v0  ;;  %v381_v1 = vadd.s32 %v379_v59, %v373_v48  ;;  %vm382_vm9 = vc.u32 %v380_v51, %v376_v49  ;;  %v489_v17 = vshll.u32 %v3870_v44, %v486_v5 }
  0xae   : > { %v407_v3 = vadd.s32 %v405_v54, %v403_v52  ;;  %v383_v4 = vsel %vm382_vm9, 1, %v3869_v0  ;;  %v490_v19 = vshrl.u32 %v3871_v47, %v487_v12  ;;  %v492_v20 = vshll.u32 %v3871_v47, %v486_v5 }
  0xaf   : > { %v385_v8 = vadd.s32 %v383_v4, %v381_v1  ;;  %v493_v21 = vshrl.u32 %v3872_v50, %v487_v12  ;;  %v495_v24 = vshll.u32 %v3872_v50, %v486_v5  ;;  %v496_v27 = vshrl.u32 %v3873_v53, %v487_v12 }
  0xb0   : > { %v408_v10 = vadd.s32 %v407_v3, %v397_v2  ;;  %v491_v29 = vor.u32 %v490_v19, %v489_v17  ;;  %v498_v32 = vshll.u32 %v3873_v53, %v486_v5  ;;  %v499_v33 = vshrl.u32 %v3874_v56, %v487_v12 }
  0xb1   : > { %v386_v13 = vadd.s32 %v385_v8, %v375_v7  ;;  %v494_v31 = vor.u32 %v493_v21, %v492_v20  ;;  %v410_v34 = vmul.u32 %v4010_v63, %v356_v60  ;;  %v501_v35 = vshll.u32 %v3874_v56, %v486_v5  ;;  %v186_v7 = vpop.permute.xlu1 %185 }
  0xb2   : > { %v409_v15 = vadd.s32 %v408_v10, %v399_v9  ;;  %v502_v36 = vshrl.u32 %v3875_v58, %v487_v12  ;;  %v497_v39 = vor.u32 %v496_v27, %v495_v24  ;;  %v500_v40 = vor.u32 %v499_v33, %v498_v32 }
  0xb3   : > { %v387_v43 = vadd.s32 %v386_v13, %v377_v11  ;;  %v4071_v45 = vmul.f32 %v3974_v22, %v191_v28  ;;  %vm504_vm11 = vcmp.lt.s32.totalorder %v4056_v16, 1  ;;  %vm507_vm12 = vcmp.lt.s32.totalorder %v4056_v16, 4 }
  0xb4   : > { %v413_v23 = vadd.s32 1, %v409_v15  ;;  %v503_v48 = vor.u32 %v502_v36, %v501_v35  ;;  %v512_v63 = vsel %vm504_vm11, %v491_v29, %v494_v31  ;;  %v4077_v49 = vshll.u32 %v480_v61, 8 }
  0xb5   : > { %vm412_vm10 = vc.u32 %v387_v43, %v4054_v14  ;;  %v637_v41 = vadd.s32 1, %v3682_v6  ;;  %vm506_vm13 = vcmp.lt.s32.totalorder %v4056_v16, 3  ;;  %v513_v52 = vsel %vm507_vm12, %v500_v40, 920167782 }
  0xb6   : > { %v414_v38 = vsel %vm412_vm10, %v413_v23, %v409_v15  ;;  %v627_v54 = vand.u32 2147483647, %v3995_v42  ;;  %v488_v55 = vshrl.u32 %v3870_v44, %v487_v12  ;;  %vm505_vm14 = vcmp.lt.s32.totalorder %v4056_v16, 2 }
  0xb7   : > { %v415_v46 = vadd.s32 %v414_v38, %v410_v34  ;;  %v514_v57 = vsel %vm506_vm13, %v497_v39, %v513_v52  ;;  %v516_v59 = vsel %vm504_vm11, %v494_v31, %v497_v39  ;;  %v509_v1 = vsel %vm507_vm12, %v497_v39, 2102212464 }
  0xb8   : > { %v515_v2 = vsel %vm505_vm14, %v512_v63, %v514_v57  ;;  %v517_v3 = vsel %vm507_vm12, %v503_v48, 1326507024  ;;  %v521_v5 = vand.u32 65535, %v4077_v49  ;;  %vm638_vm0 = vcmp.gt.s32.totalorder %v637_v41, 0 }
  0xb9   : > { %v416_v51 = vadd.s32 536870912, %v415_v46  ;;  %v518_v4 = vsel %vm506_vm13, %v500_v40, %v517_v3  ;;  %v546_v6 = vshrl.u32 %v515_v2, 16  ;;  %v508_v9 = vsel %vm504_vm11, %v488_v55, %v491_v29 }
  0xba   : > { %v519_v10 = vsel %vm505_vm14, %v516_v59, %v518_v4  ;;  %v522_v60 = vshrl.u32 %v4077_v49, 16  ;;  %v510_v11 = vsel %vm506_vm13, %v494_v31, %v509_v1  ;;  %v545_v13 = vand.u32 65535, %v515_v2 }
  0xbb   : > { %v417_v62 = vshrl.u32 %v416_v51, 30  ;;  %v523_v61 = vand.u32 65535, %v519_v10  ;;  %v524_v12 = vshrl.u32 %v519_v10, 16  ;;  %v4100_v17 = vmul.u32 %v546_v6, %v521_v5 }
  0xbc   : > { %v4104_v19 = vand.u32 8388607, %v627_v54  ;;  %v639_v20 = vsel %vm638_vm0, %v637_v41, 0  ;;  %v4107_v21 = vmul.f32 %v3974_v22, %v186_v7  ;;  %vm4111_vm1 = vcmp.le.f32.partialorder %v317_v30, 0.7853982 }
  0xbd   : > { %v418_v8 = vshll.u32 %v417_v62, 30  ;;  %v411_v24 = vadd.s32 %v4054_v14, %v387_v43  ;;  %v526_v27 = vmul.u32 %v524_v12, %v521_v5  ;;  %v527_v28 = vmul.u32 %v523_v61, %v522_v60 }
  0xbe   : > { %v441_v31 = vsub.s32 4, %v417_v62  ;;  %v4118_v32 = vsel %vm505_vm14, %v508_v9, %v510_v11  ;;  %v525_v33 = vmul.u32 %v523_v61, %v521_v5  ;;  %v549_v34 = vmul.u32 %v545_v13, %v522_v60 }
  0xbf   : > { %v419_v15 = vsub.s32 %v415_v46, %v418_v8  ;;  %v529_v22 = vshll.u32 %v526_v27, 16  ;;  %v4120_v35 = vshrl.u32 %v639_v20, 5  ;;  %v528_v36 = vmul.u32 %v524_v12, %v522_v60 }
  0xc0   : > { %v551_v38 = vshll.u32 %v4100_v17, 16  ;;  %v641_v39 = vand.u32 31, %v639_v20  ;;  %v531_v43 = vshll.u32 %v527_v28, 16  ;;  %v4125_v46 = vsel %vm319_vm15, %v441_v31, %v417_v62 }
  0xc1   : > { %vm420_vm2 = vcmp.lt.s32.totalorder %v419_v15, 0  ;;  %v421_v29 = vsub.s32 0, %v419_v15  ;;  %vm533_vm3 = vc.u32 %v525_v33, %v529_v22  ;;  %v535_v40 = vadd.s32 %v529_v22, %v525_v33 }
  0xc2   : > { %v534_v16 = vsel %vm533_vm3, 1, %v3869_v0  ;;  %v547_v48 = vmul.u32 %v545_v13, %v521_v5  ;;  %v550_v63 = vmul.u32 %v546_v6, %v522_v60  ;;  %v553_v52 = vshll.u32 %v549_v34, 16 }
  0xc3   : > { %v422_v30 = vsel %vm420_vm2, %v421_v29, %v419_v15  ;;  %v536_v51 = vadd.s32 %v534_v16, %v528_v36  ;;  %vm537_vm4 = vc.u32 %v535_v40, %v531_v43  ;;  %v4129_v59 = vsub.s32 32, %v641_v39 }
  0xc4   : > { %v423_v14 = vclz %v422_v30  ;;  %v538_v55 = vsel %vm537_vm4, 1, %v3869_v0  ;;  %vm555_vm5 = vc.u32 %v547_v48, %v551_v38  ;;  %v557_v57 = vadd.s32 %v551_v38, %v547_v48 }
  0xc5   : > { %v530_v1 = vshrl.u32 %v526_v27, 16  ;;  %v540_v2 = vadd.s32 %v538_v55, %v536_v51  ;;  %v556_v62 = vsel %vm555_vm5, 1, %v3869_v0  ;;  %v444_v4 = vsel %vm4111_vm1, 0, %v4125_v46 }
  0xc6   : > { %v3677_v41 = vadd.s32 4294967294, %v423_v14  ;;  %v558_v5 = vadd.s32 %v556_v62, %v550_v63  ;;  %vm559_vm7 = vc.u32 %v557_v57, %v553_v52  ;;  %v532_v8 = vshrl.u32 %v527_v28, 16 }
  0xc7   : > { %v541_v9 = vadd.s32 %v540_v2, %v530_v1  ;;  %v552_v60 = vshrl.u32 %v4100_v17, 16  ;;  %v560_v11 = vsel %vm559_vm7, 1, %v3869_v0  ;;  %v645_v61 = vshrl.u32 %v3871_v47, %v4129_v59 }
  0xc8   : > { %vm3678_vm6 = vcmp.lt.s32.totalorder %v3677_v41, 0  ;;  %v562_v27 = vadd.s32 %v560_v11, %v558_v5  ;;  %v4141_v29 = vadd.s32 %v557_v57, %v553_v52  ;;  %v644_v31 = vshll.u32 %v3870_v44, %v641_v39 }
  0xc9   : > { %v426_v3 = vsel %vm3678_vm6, 0, %v3677_v41  ;;  %v4139_v20 = vadd.s32 %v541_v9, %v532_v8  ;;  %v648_v28 = vshrl.u32 %v3872_v50, %v4129_v59  ;;  %v554_v22 = vshrl.u32 %v549_v34, 16 }
  0xca   : > { %v427_v6 = vsub.s32 32, %v426_v3  ;;  %v431_v7 = vsub.s32 4294967266, %v426_v3  ;;  %v428_v10 = vshll.u32 %v419_v15, %v426_v3  ;;  %v651_v15 = vshrl.u32 %v3873_v53, %v4129_v59 }
  0xcb   : > { %v563_v30 = vadd.s32 %v562_v27, %v552_v60  ;;  %vm567_vm8 = vc.u32 %v4139_v20, %v4141_v29  ;;  %v647_v36 = vshll.u32 %v3871_v47, %v641_v39  ;;  %v650_v38 = vshll.u32 %v3872_v50, %v641_v39 }
  0xcc   : > { %v429_v12 = vshrl.u32 %v411_v24, %v427_v6  ;;  %v432_v13 = vadd.s32 127, %v431_v7  ;;  %v4150_v24 = vor.u32 %v645_v61, %v644_v31  ;;  %v653_v40 = vshll.u32 %v3873_v53, %v641_v39 }
  0xcd   : > { %v564_v43 = vadd.s32 %v563_v30, %v554_v22  ;;  %v654_v46 = vshrl.u32 %v3874_v56, %v4129_v59  ;;  %v4157_v16 = vor.u32 %v648_v28, %v647_v36  ;;  %v652_v34 = vor.u32 %v651_v15, %v650_v38 }
  0xce   : > { %v430_v17 = vor.u32 %v429_v12, %v428_v10  ;;  %v433_v33 = vshll.u32 %v432_v13, 23  ;;  %v656_v48 = vshll.u32 %v3874_v56, %v641_v39  ;;  %v657_v63 = vshrl.u32 %v3875_v58, %v4129_v59 }
  0xcf   : > { %v568_v52 = vadd.s32 1, %v564_v43  ;;  %v655_v55 = vor.u32 %v654_v46, %v653_v40  ;;  %v565_v57 = vmul.u32 %v4077_v49, %v4118_v32  ;;  %v635_v1 = vor.u32 8388608, %v4104_v19 }
  0xd0   : > { %v434_v14 = vor.u32 4788187, %v433_v33  ;;  %v437_v51 = vcvt.s32.f32 %v430_v17  ;;  %v658_v2 = vor.u32 %v657_v63, %v656_v48  ;;  %vm662_vm9 = vcmp.lt.s32.totalorder %v4120_v35, 4 }
  0xd1   : > { %v569_v39 = vsel %vm567_vm8, %v568_v52, %v564_v43  ;;  %vm659_vm10 = vcmp.lt.s32.totalorder %v4120_v35, 1  ;;  %v668_v3 = vsel %vm662_vm9, %v655_v55, 920167782  ;;  %v461_v5 = vadd.s32 3, %v444_v4 }
  0xd2   : > { %v435_v41 = vand.u32 2147483647, %v434_v14  ;;  %v570_v6 = vadd.s32 %v569_v39, %v565_v57  ;;  %vm661_vm11 = vcmp.lt.s32.totalorder %v4120_v35, 3  ;;  %v671_v49 = vsel %vm659_vm10, %v4157_v16, %v652_v34 }
  0xd3   : > { %v667_v32 = vsel %vm659_vm10, %v4150_v24, %v4157_v16  ;;  %v669_v7 = vsel %vm661_vm11, %v652_v34, %v668_v3  ;;  %v672_v8 = vsel %vm662_vm9, %v658_v2, 1326507024  ;;  %vm660_vm12 = vcmp.lt.s32.totalorder %v4120_v35, 2 }
  0xd4   : > { %v438_v62 = vmul.f32 %v437_v51, %v435_v41  ;;  %v571_v4 = vadd.s32 536870912, %v570_v6  ;;  %v673_v9 = vsel %vm661_vm11, %v655_v55, %v672_v8  ;;  %v4187_v10 = vshll.u32 %v635_v1, 8 }
  0xd5   : > { %v674_v11 = vsel %vm660_vm12, %v671_v49, %v673_v9  ;;  %v4195_v61 = vadd.f32 %v3980_v25, %v4071_v45  ;;  %v670_v27 = vsel %vm660_vm12, %v667_v32, %v669_v7  ;;  %v4211_v45 = vadd.f32 %v3980_v25, %v4107_v21 }
  0xd6   : > { %v439_v19 = vxor.u32 2147483648, %v438_v62  ;;  %v4202_v13 = vshrl.u32 %v571_v4, 30  ;;  %v676_v28 = vand.u32 65535, %v4187_v10  ;;  %v678_v15 = vand.u32 65535, %v674_v11 }
  0xd7   : > { %v679_v17 = vshrl.u32 %v674_v11, 16  ;;  %v4213_v33 = vand.u32 3, %v461_v5  ;;  %v677_v22 = vshrl.u32 %v4187_v10, 16  ;;  %v701_v14 = vshrl.u32 %v670_v27, 16 }
  0xd8   : > { %v440_v60 = vsel %vm319_vm15, %v439_v19, %v438_v62  ;;  %v573_v23 = vshll.u32 %v4202_v13, 30  ;;  %v643_v40 = vshrl.u32 %v3870_v44, %v4129_v59  ;;  %v664_v25 = vsel %vm662_vm9, %v652_v34, 2102212464 }
  0xd9   : > { %v4200_v12 = vsel %vm4111_vm1, %v3983_v26, %v440_v60  ;;  %v4217_v38 = vmul.u32 %v679_v17, %v676_v28  ;;  %v4225_v21 = vmul.u32 %v678_v15, %v677_v22  ;;  %v566_v63 = vadd.s32 %v4141_v29, %v4139_v20 }
  0xda   : > { %v445_v31 = vmul.f32 %v4200_v12, %v4200_v12  ;;  %v4219_v43 = vsub.s32 %v570_v6, %v573_v23  ;;  %v680_v52 = vmul.u32 %v678_v15, %v676_v28  ;;  %v700_v55 = vand.u32 65535, %v670_v27 }
  0xdb   : > { %v684_v41 = vshll.u32 %v4217_v38, 16  ;;  %v683_v1 = vmul.u32 %v679_v17, %v677_v22  ;;  %v4232_v2 = vmul.u32 %v701_v14, %v676_v28  ;;  %v686_v62 = vshll.u32 %v4225_v21, 16 }
  0xdc   : > { %v446_v30 = vmul.f32 -0.001358992, %v445_v31  ;;  %v453_v36 = vmul.f32 -0.00019511016, %v445_v31  ;;  %vm575_vm13 = vcmp.lt.s32.totalorder %v4219_v43, 0  ;;  %v576_v51 = vsub.s32 0, %v4219_v43 }
  0xdd   : > { %vm688_vm14 = vc.u32 %v680_v52, %v684_v41  ;;  %v690_v39 = vadd.s32 %v684_v41, %v680_v52  ;;  %vm464_vm15 = vcmp.eq.s32.totalorder %v4213_v33, 0  ;;  %vm467_vm0 = vcmp.eq.s32.totalorder %v4213_v33, 2 }
  0xde   : > { %v447_v46 = vadd.f32 0.041655596, %v446_v30  ;;  %v454_v48 = vadd.f32 0.008332121, %v453_v36  ;;  %v577_v34 = vsel %vm575_vm13, %v576_v51, %v4219_v43  ;;  %v689_v5 = vsel %vm688_vm14, 1, %v3869_v0 }
  0xdf   : > { %v578_v3 = vclz %v577_v34  ;;  %v596_v6 = vsub.s32 4, %v4202_v13  ;;  %v663_v49 = vsel %vm659_vm10, %v643_v40, %v4150_v24  ;;  %v665_v19 = vsel %vm661_vm11, %v4157_v16, %v664_v25 }
  0xe0   : > { %v448_v57 = vmul.f32 %v447_v46, %v445_v31  ;;  %v455_v59 = vmul.f32 %v454_v48, %v445_v31  ;;  %v691_v32 = vadd.s32 %v689_v5, %v683_v1  ;;  %vm463_vm1 = vcmp.lt.s32.totalorder %v4213_v33, 2 }
  0xe1   : > { %v3680_v4 = vadd.s32 4294967294, %v578_v3  ;;  %vm692_vm2 = vc.u32 %v690_v39, %v686_v62  ;;  %vm460_vm3 = vweird.f32 %v3983_v26  ;;  %v702_v60 = vmul.u32 %v700_v55, %v676_v28 }
  0xe2   : > { %v449_v20 = vadd.f32 -0.4999988, %v448_v57  ;;  %v456_v29 = vadd.f32 -0.16666654, %v455_v59  ;;  %v693_v9 = vsel %vm692_vm2, 1, %v3869_v0  ;;  %v704_v11 = vmul.u32 %v700_v55, %v677_v22 }
  0xe3   : > { %v706_v24 = vshll.u32 %v4232_v2, 16  ;;  %vm3681_vm4 = vcmp.lt.s32.totalorder %v3680_v4, 0  ;;  %v695_v16 = vadd.s32 %v693_v9, %v691_v32  ;;  %v687_v23 = vshrl.u32 %v4225_v21, 16 }
  0xe4   : > { %v450_v7 = vmul.f32 %v449_v20, %v445_v31  ;;  %v457_v8 = vmul.f32 %v456_v29, %v445_v31  ;;  %v581_v17 = vsel %vm3681_vm4, 0, %v3680_v4  ;;  %v685_v31 = vshrl.u32 %v4217_v38, 16 }
  0xe5   : > { %v705_v30 = vmul.u32 %v701_v14, %v677_v22  ;;  %v582_v25 = vsub.s32 32, %v581_v17  ;;  %v708_v28 = vshll.u32 %v704_v11, 16  ;;  %v583_v46 = vshll.u32 %v4219_v43, %v581_v17 }
  0xe6   : > { %v451_v27 = vadd.f32 1.0, %v450_v7  ;;  %v458_v15 = vadd.f32 1.0, %v457_v8  ;;  %v586_v48 = vsub.s32 4294967266, %v581_v17  ;;  %vm710_vm5 = vc.u32 %v702_v60, %v706_v24 }
  0xe7   : > { %v712_v41 = vadd.s32 %v706_v24, %v702_v60  ;;  %v584_v52 = vshrl.u32 %v566_v63, %v582_v25  ;;  %v696_v55 = vadd.s32 %v695_v16, %v685_v31  ;;  %v711_v38 = vsel %vm710_vm5, 1, %v3869_v0 }
  0xe8   : > { %v459_v36 = vmul.f32 %v458_v15, %v4200_v12  ;;  %v468_v40 = vxor.u32 2147483648, %v451_v27  ;;  %v587_v57 = vadd.s32 127, %v586_v48  ;;  %v707_v22 = vshrl.u32 %v4232_v2, 16 }
  0xe9   : > { %v713_v14 = vadd.s32 %v711_v38, %v705_v30  ;;  %vm714_vm6 = vc.u32 %v712_v41, %v708_v28  ;;  %v585_v21 = vor.u32 %v584_v52, %v583_v46  ;;  %v782_v62 = vand.u32 2147483647, %v4211_v45 }
  0xea   : > { %v465_v51 = vxor.u32 2147483648, %v459_v36  ;;  %v469_v43 = vsel %vm467_vm0, %v468_v40, %v459_v36  ;;  %v715_v59 = vsel %vm714_vm6, 1, %v3869_v0  ;;  %v588_v1 = vshll.u32 %v587_v57, 23 }
  0xeb   : > { %v717_v34 = vadd.s32 %v715_v59, %v713_v14  ;;  %vm474_vm7 = vcmp.lt.s32.totalorder %v3992_v37, 0  ;;  %v697_v39 = vadd.s32 %v696_v55, %v687_v23  ;;  %v666_v29 = vsel %vm660_vm12, %v663_v49, %v665_v19 }
  0xec   : > { %v466_v12 = vsel %vm464_vm15, %v451_v27, %v465_v51  ;;  %v589_v20 = vor.u32 4788187, %v588_v1  ;;  %v709_v3 = vshrl.u32 %v704_v11, 16  ;;  %v597_v33 = vsel %vm474_vm7, %v596_v6, %v4202_v13 }
  0xed   : > { %v470_v63 = vsel %vm463_vm1, %v466_v12, %v469_v43  ;;  %v718_v5 = vadd.s32 %v717_v34, %v707_v22  ;;  %v716_v32 = vadd.s32 %v712_v41, %v708_v28  ;;  %v785_v26 = vand.u32 2139095040, %v4211_v45 }
  0xee   : > { %v471_v2 = vsel %vm460_vm3, nan, %v470_v63  ;;  %v789_v7 = vand.u32 8388607, %v782_v62  ;;  %v590_v8 = vand.u32 2147483647, %v589_v20  ;;  %v592_v4 = vcvt.s32.f32 %v585_v21 }
  0xef   : > { %3572 = vst [vmem:[%s4272_s4] sm:$0xff] %v471_v2  ;;  %v719_v35 = vadd.s32 %v718_v5, %v709_v3  ;;  %v940_v49 = vand.u32 2139095040, %v4195_v61  ;;  %vm722_vm8 = vc.u32 %v697_v39, %v716_v32  ;;  %v786_v19 = vshrl.u32 %v785_v26, 23 }
  0xf0   : > { %vm4284_vm9 = vcmp.le.f32.partialorder %v472_v18, 0.7853982  ;;  %v593_v13 = vmul.f32 %v592_v4, %v590_v8  ;;  %v720_v24 = vmul.u32 %v4187_v10, %v666_v29  ;;  %v790_v15 = vor.u32 8388608, %v789_v7 }
  0xf1   : > { %v723_v6 = vadd.s32 1, %v719_v35  ;;  %v941_v60 = vshrl.u32 %v940_v49, 23  ;;  %v599_v11 = vsel %vm4284_vm9, 0, %v597_v33  ;;  %v3685_v27 = vadd.s32 4294967169, %v786_v19 }
  0xf2   : > { %v594_v16 = vxor.u32 2147483648, %v593_v13  ;;  %v616_v36 = vadd.s32 3, %v599_v11  ;;  %v937_v40 = vand.u32 2147483647, %v4195_v61  ;;  %v4299_v46 = vshll.u32 %v790_v15, 8 }
  0xf3   : > { %v724_v17 = vsel %vm722_vm8, %v723_v6, %v719_v35  ;;  %v3688_v31 = vadd.s32 4294967169, %v941_v60  ;;  %v792_v30 = vadd.s32 1, %v3685_v27  ;;  %vm629_vm11 = vcmp.lt.s32.totalorder %v3995_v42, 0 }
  0xf4   : > { %v725_v23 = vadd.s32 %v724_v17, %v720_v24  ;;  %v595_v18 = vsel %vm474_vm7, %v594_v16, %v593_v13  ;;  %v4304_v57 = vand.u32 3, %v616_v36  ;;  %vm4308_vm13 = vcmp.le.f32.partialorder %v627_v54, 0.7853982 }
  0xf5   : > { %v947_v25 = vadd.s32 1, %v3688_v31  ;;  %v4297_v28 = vsel %vm4284_vm9, %v3992_v37, %v595_v18  ;;  %vm793_vm10 = vcmp.gt.s32.totalorder %v792_v30, 0  ;;  %v4312_v14 = vadd.s32 %v716_v32, %v697_v39 }
  0xf6   : > { %v726_v10 = vadd.s32 536870912, %v725_v23  ;;  %v600_v48 = vmul.f32 %v4297_v28, %v4297_v28  ;;  %v794_v41 = vsel %vm793_vm10, %v792_v30, 0  ;;  %v4315_v21 = vand.u32 65535, %v4299_v46 }
  0xf7   : > { %v796_v52 = vand.u32 31, %v794_v41  ;;  %vm948_vm12 = vcmp.gt.s32.totalorder %v947_v25, 0  ;;  %v4319_v59 = vand.u32 8388607, %v937_v40  ;;  %v4325_v20 = vshrl.u32 %v794_v41, 5 }
  0xf8   : > { %v727_v51 = vshrl.u32 %v726_v10, 30  ;;  %v601_v55 = vmul.f32 -0.001358992, %v600_v48  ;;  %v608_v38 = vmul.f32 -0.00019511016, %v600_v48  ;;  %v4321_v2 = vsel %vm948_vm12, %v947_v25, 0 }
  0xf9   : > { %v797_v43 = vsub.s32 32, %v796_v52  ;;  %v4328_v39 = vshrl.u32 %v4299_v46, 16  ;;  %v4331_v29 = vshrl.u32 %v4321_v2, 5  ;;  %v799_v33 = vshll.u32 %v3870_v44, %v796_v52 }
  0xfa   : > { %v728_v12 = vshll.u32 %v727_v51, 30  ;;  %v602_v63 = vadd.f32 0.041655596, %v601_v55  ;;  %v609_v1 = vadd.f32 0.008332121, %v608_v38  ;;  %v751_v34 = vsub.s32 4, %v727_v51 }
  0xfb   : > { %v802_v32 = vshll.u32 %v3871_v47, %v796_v52  ;;  %vm622_vm14 = vcmp.eq.s32.totalorder %v4304_v57, 2  ;;  %v800_v7 = vshrl.u32 %v3871_v47, %v797_v43  ;;  %v803_v8 = vshrl.u32 %v3872_v50, %v797_v43 }
  0xfc   : > { %v4323_v54 = vsub.s32 %v725_v23, %v728_v12  ;;  %v603_v3 = vmul.f32 %v602_v63, %v600_v48  ;;  %v610_v5 = vmul.f32 %v609_v1, %v600_v48  ;;  %v752_v49 = vsel %vm629_vm11, %v751_v34, %v727_v51 }
  0xfd   : > { %v806_v19 = vshrl.u32 %v3873_v53, %v797_v43  ;;  %vm619_vm0 = vcmp.eq.s32.totalorder %v4304_v57, 0  ;;  %v798_v13 = vshrl.u32 %v3870_v44, %v797_v43  ;;  %v805_v6 = vshll.u32 %v3872_v50, %v796_v52 }
  0xfe   : > { %vm730_vm15 = vcmp.lt.s32.totalorder %v4323_v54, 0  ;;  %v731_v26 = vsub.s32 0, %v4323_v54  ;;  %v604_v4 = vadd.f32 -0.4999988, %v603_v3  ;;  %v611_v35 = vadd.f32 -0.16666654, %v610_v5 }
  0xff   : > { %v809_v60 = vshrl.u32 %v3874_v56, %v797_v43  ;;  %vm618_vm1 = vcmp.lt.s32.totalorder %v4304_v57, 2  ;;  %v808_v15 = vshll.u32 %v3873_v53, %v796_v52  ;;  %vm615_vm2 = vweird.f32 %v3992_v37 }
 0x100   : > { %v732_v9 = vsel %vm730_vm15, %v731_v26, %v4323_v54  ;;  %v605_v11 = vmul.f32 %v604_v4, %v600_v48  ;;  %v612_v24 = vmul.f32 %v611_v35, %v600_v48  ;;  %v754_v16 = vsel %vm4308_vm13, 0, %v752_v49 }
 0x101   : > { %v733_v27 = vclz %v732_v9  ;;  %v801_v17 = vor.u32 %v800_v7, %v799_v33  ;;  %v804_v31 = vor.u32 %v803_v8, %v802_v32  ;;  %v807_v23 = vor.u32 %v806_v19, %v805_v6 }
 0x102   : > { %v606_v30 = vadd.f32 1.0, %v605_v11  ;;  %v613_v18 = vadd.f32 1.0, %v612_v24  ;;  %v810_v25 = vor.u32 %v809_v60, %v808_v15  ;;  %v811_v10 = vshll.u32 %v3874_v56, %v796_v52 }
 0x103   : > { %v3683_v36 = vadd.s32 4294967294, %v733_v27  ;;  %v812_v48 = vshrl.u32 %v3875_v58, %v797_v43  ;;  %vm814_vm3 = vcmp.lt.s32.totalorder %v4325_v20, 1  ;;  %vm815_vm4 = vcmp.lt.s32.totalorder %v4325_v20, 2 }
 0x104   : > { %v614_v41 = vmul.f32 %v613_v18, %v4297_v28  ;;  %v623_v51 = vxor.u32 2147483648, %v606_v30  ;;  %vm817_vm6 = vcmp.lt.s32.totalorder %v4325_v20, 4  ;;  %vm816_vm7 = vcmp.lt.s32.totalorder %v4325_v20, 3 }
 0x105   : > { %vm3684_vm5 = vcmp.lt.s32.totalorder %v3683_v36, 0  ;;  %v813_v38 = vor.u32 %v812_v48, %v811_v10  ;;  %v819_v12 = vsel %vm817_vm6, %v807_v23, 2102212464  ;;  %v818_v1 = vsel %vm814_vm3, %v798_v13, %v801_v17 }
 0x106   : > { %v736_v55 = vsel %vm3684_vm5, 0, %v3683_v36  ;;  %v620_v52 = vxor.u32 2147483648, %v614_v41  ;;  %v624_v43 = vsel %vm622_vm14, %v623_v51, %v614_v41  ;;  %v822_v3 = vsel %vm814_vm3, %v801_v17, %v804_v31 }
 0x107   : > { %v737_v63 = vsub.s32 32, %v736_v55  ;;  %v738_v28 = vshll.u32 %v4323_v54, %v736_v55  ;;  %v741_v34 = vsub.s32 4294967266, %v736_v55  ;;  %v823_v5 = vsel %vm817_vm6, %v810_v25, 920167782 }
 0x108   : > { %v621_v33 = vsel %vm619_vm0, %v606_v30, %v620_v52  ;;  %v820_v26 = vsel %vm816_vm7, %v804_v31, %v819_v12  ;;  %v824_v7 = vsel %vm816_vm7, %v807_v23, %v823_v5  ;;  %v826_v35 = vsel %vm814_vm3, %v804_v31, %v807_v23 }
 0x109   : > { %v739_v32 = vshrl.u32 %v4312_v14, %v737_v63  ;;  %v625_v54 = vsel %vm618_vm1, %v621_v33, %v624_v43  ;;  %v742_v8 = vadd.s32 127, %v741_v34  ;;  %v825_v4 = vsel %vm815_vm4, %v822_v3, %v824_v7 }
 0x10a   : > { %v626_v49 = vsel %vm615_vm2, nan, %v625_v54  ;;  %v827_v19 = vsel %vm817_vm6, %v813_v38, 1326507024  ;;  %v855_v9 = vand.u32 65535, %v825_v4  ;;  %v4390_v57 = vsel %vm815_vm4, %v818_v1, %v820_v26 }
 0x10b   : > { %v740_v14 = vor.u32 %v739_v32, %v738_v28  ;;  %v743_v13 = vshll.u32 %v742_v8, 23  ;;  %v828_v6 = vsel %vm816_vm7, %v810_v25, %v827_v19  ;;  %v856_v60 = vshrl.u32 %v825_v4, 16  ;;  %3573 = vst [vmem:[%s4272_s4 + $0x8] sm:$0xff] %v626_v49 }
 0x10c   : > { %v4395_v11 = vadd.s32 3, %v754_v16  ;;  %v829_v37 = vsel %vm815_vm4, %v826_v35, %v828_v6  ;;  %v859_v24 = vmul.u32 %v855_v9, %v4328_v39  ;;  %v951_v27 = vand.u32 31, %v4321_v2 }
 0x10d   : > { %v744_v15 = vor.u32 4788187, %v743_v13  ;;  %v833_v17 = vand.u32 65535, %v829_v37  ;;  %v834_v31 = vshrl.u32 %v829_v37, 16  ;;  %v858_v23 = vmul.u32 %v856_v60, %v4315_v21 }
 0x10e   : > { %v747_v30 = vcvt.s32.f32 %v740_v14  ;;  %v857_v18 = vmul.u32 %v855_v9, %v4315_v21  ;;  %v860_v36 = vmul.u32 %v856_v60, %v4328_v39  ;;  %v875_v16 = vmul.u32 %v4299_v46, %v4390_v57 }
 0x10f   : > { %v745_v25 = vand.u32 2147483647, %v744_v15  ;;  %v836_v20 = vmul.u32 %v834_v31, %v4315_v21  ;;  %v837_v10 = vmul.u32 %v833_v17, %v4328_v39  ;;  %v863_v48 = vshll.u32 %v859_v24, 16 }
 0x110   : > { %v835_v2 = vmul.u32 %v833_v17, %v4315_v21  ;;  %v861_v41 = vshll.u32 %v858_v23, 16  ;;  %v864_v51 = vshrl.u32 %v859_v24, 16  ;;  %v4409_v55 = vsub.s32 32, %v951_v27 }
 0x111   : > { %v748_v38 = vmul.f32 %v747_v30, %v745_v25  ;;  %v838_v12 = vmul.u32 %v834_v31, %v4328_v39  ;;  %v839_v52 = vshll.u32 %v836_v20, 16  ;;  %v862_v43 = vshrl.u32 %v858_v23, 16 }
 0x112   : > { %v840_v63 = vshrl.u32 %v836_v20, 16  ;;  %v841_v1 = vshll.u32 %v837_v10, 16  ;;  %vm865_vm8 = vc.u32 %v857_v18, %v861_v41  ;;  %v867_v28 = vadd.s32 %v861_v41, %v857_v18 }
 0x113   : > { %v749_v34 = vxor.u32 2147483648, %v748_v38  ;;  %vm843_vm9 = vc.u32 %v835_v2, %v839_v52  ;;  %v845_v3 = vadd.s32 %v839_v52, %v835_v2  ;;  %v866_v5 = vsel %vm865_vm8, 1, %v3869_v0 }
 0x114   : > { %v844_v21 = vsel %vm843_vm9, 1, %v3869_v0  ;;  %v868_v33 = vadd.s32 %v866_v5, %v860_v36  ;;  %vm869_vm10 = vc.u32 %v867_v28, %v863_v48  ;;  %v954_v32 = vshll.u32 %v3870_v44, %v951_v27  ;;  %v196_v5 = vpop.permute.xlu2 %195 }
 0x115   : > { %v750_v39 = vsel %vm629_vm11, %v749_v34, %v748_v38  ;;  %v846_v26 = vadd.s32 %v844_v21, %v838_v12  ;;  %vm847_vm12 = vc.u32 %v845_v3, %v841_v1  ;;  %v870_v7 = vsel %vm869_vm10, 1, %v3869_v0 }
 0x116   : > { %v753_v54 = vsel %vm4308_vm13, %v3995_v42, %v750_v39  ;;  %v848_v8 = vsel %vm847_vm12, 1, %v3869_v0  ;;  %v872_v4 = vadd.s32 %v870_v7, %v868_v33  ;;  %v955_v35 = vshrl.u32 %v3871_v47, %v4409_v55 }
 0x117   : > { %v755_v49 = vmul.f32 %v753_v54, %v753_v54  ;;  %v842_v14 = vshrl.u32 %v837_v10, 16  ;;  %v850_v19 = vadd.s32 %v848_v8, %v846_v26  ;;  %v4424_v9 = vadd.s32 %v867_v28, %v863_v48  ;;  %v4477_v8 = vld [vmem:[%s6389_s1] ss:$0 sm:$0xff] }
 0x118   : > { %v873_v13 = vadd.s32 %v872_v4, %v862_v43  ;;  %v957_v6 = vshll.u32 %v3871_v47, %v951_v27  ;;  %v958_v60 = vshrl.u32 %v3872_v50, %v4409_v55  ;;  %v960_v22 = vshll.u32 %v3872_v50, %v951_v27 }
 0x119   : > { %v756_v37 = vmul.f32 -0.001358992, %v755_v49  ;;  %v763_v24 = vmul.f32 -0.00019511016, %v755_v49  ;;  %v851_v15 = vadd.s32 %v850_v19, %v840_v63  ;;  %v961_v17 = vshrl.u32 %v3873_v53, %v4409_v55 }
 0x11a   : > { %v874_v31 = vadd.s32 %v873_v13, %v864_v51  ;;  %v4432_v23 = vor.u32 %v955_v35, %v954_v32  ;;  %v963_v30 = vshll.u32 %v3873_v53, %v951_v27  ;;  %v964_v18 = vshrl.u32 %v3874_v56, %v4409_v55 }
 0x11b   : > { %v757_v36 = vadd.f32 0.041655596, %v756_v37  ;;  %v764_v25 = vadd.f32 0.008332121, %v763_v24  ;;  %v4437_v20 = vadd.s32 %v851_v15, %v842_v14  ;;  %v966_v10 = vshll.u32 %v3874_v56, %v951_v27 }
 0x11c   : > { %v878_v48 = vadd.s32 1, %v874_v31  ;;  %v4440_v2 = vor.u32 %v958_v60, %v957_v6  ;;  %v965_v41 = vor.u32 %v964_v18, %v963_v30  ;;  %v967_v51 = vshrl.u32 %v3875_v58, %v4409_v55 }
 0x11d   : > { %v758_v38 = vmul.f32 %v757_v36, %v755_v49  ;;  %v765_v12 = vmul.f32 %v764_v25, %v755_v49  ;;  %vm877_vm11 = vc.u32 %v4437_v20, %v4424_v9  ;;  %v4446_v52 = vor.u32 %v961_v17, %v960_v22 }
 0x11e   : > { %v879_v43 = vsel %vm877_vm11, %v878_v48, %v874_v31  ;;  %v968_v63 = vor.u32 %v967_v51, %v966_v10  ;;  %vm969_vm13 = vcmp.lt.s32.totalorder %v4331_v29, 1  ;;  %vm971_vm14 = vcmp.lt.s32.totalorder %v4331_v29, 3 }
 0x11f   : > { %v759_v27 = vadd.f32 -0.4999988, %v758_v38  ;;  %v766_v1 = vadd.f32 -0.16666654, %v765_v12  ;;  %v880_v28 = vadd.s32 %v879_v43, %v875_v16  ;;  %vm972_vm15 = vcmp.lt.s32.totalorder %v4331_v29, 4 }
 0x120   : > { %v945_v34 = vor.u32 8388608, %v4319_v59  ;;  %v978_v3 = vsel %vm972_vm15, %v965_v41, 920167782  ;;  %v772_v32 = vand.u32 3, %v4395_v11  ;;  %vm970_vm0 = vcmp.lt.s32.totalorder %v4331_v29, 2 }
 0x121   : > { %v760_v21 = vmul.f32 %v759_v27, %v755_v49  ;;  %v767_v33 = vmul.f32 %v766_v1, %v755_v49  ;;  %v881_v39 = vadd.s32 536870912, %v880_v28  ;;  %v977_v46 = vsel %vm969_vm13, %v4432_v23, %v4440_v2 }
 0x122   : > { %v979_v59 = vsel %vm971_vm14, %v4446_v52, %v978_v3  ;;  %v982_v57 = vsel %vm972_vm15, %v968_v63, 1326507024  ;;  %v981_v11 = vsel %vm969_vm13, %v4440_v2, %v4446_v52  ;;  %v279_v4 = vmul.f32 %v4477_v8, %v196_v5 }
 0x123   : > { %v761_v16 = vadd.f32 1.0, %v760_v21  ;;  %v768_v26 = vadd.f32 1.0, %v767_v33  ;;  %v4468_v7 = vshrl.u32 %v881_v39, 30  ;;  %v983_v35 = vsel %vm971_vm14, %v965_v41, %v982_v57 }
 0x124   : > { %v4482_v49 = vshll.u32 %v945_v34, 8  ;;  %v980_v6 = vsel %vm970_vm0, %v977_v46, %v979_v59  ;;  %vm770_vm1 = vweird.f32 %v3995_v42  ;;  %v984_v60 = vsel %vm970_vm0, %v981_v11, %v983_v35 }
 0x125   : > { %v769_v14 = vmul.f32 %v768_v26, %v753_v54  ;;  %v778_v19 = vxor.u32 2147483648, %v761_v16  ;;  %v883_v13 = vshll.u32 %v4468_v7, 30  ;;  %vm773_vm2 = vcmp.lt.s32.totalorder %v772_v32, 2 }
 0x126   : > { %v986_v22 = vand.u32 65535, %v4482_v49  ;;  %v987_v37 = vshrl.u32 %v4482_v49, 16  ;;  %vm774_vm3 = vcmp.eq.s32.totalorder %v772_v32, 0  ;;  %vm777_vm4 = vcmp.eq.s32.totalorder %v772_v32, 2 }
 0x127   : > { %v775_v24 = vxor.u32 2147483648, %v769_v14  ;;  %v884_v15 = vsub.s32 %v880_v28, %v883_v13  ;;  %v988_v54 = vand.u32 65535, %v984_v60  ;;  %v989_v17 = vshrl.u32 %v984_v60, 16  ;;  %v4498_v28 = vld [vmem:[%s6389_s1 + $0x1] ss:$0 sm:$0xff] }
 0x128   : > { %v1011_v31 = vshrl.u32 %v980_v6, 16  ;;  %v779_v18 = vsel %vm777_vm4, %v778_v19, %v769_v14  ;;  %v1010_v12 = vand.u32 65535, %v980_v6  ;;  %v4501_v34 = vadd.f32 %v4498_v28, %v279_v4 }
 0x129   : > { %v776_v30 = vsel %vm774_vm3, %v761_v16, %v775_v24  ;;  %vm885_vm5 = vcmp.lt.s32.totalorder %v884_v15, 0  ;;  %v886_v36 = vsub.s32 0, %v884_v15  ;;  %v990_v10 = vmul.u32 %v988_v54, %v986_v22 }
 0x12a   : > { %v780_v25 = vsel %vm773_vm2, %v776_v30, %v779_v18  ;;  %v991_v48 = vmul.u32 %v989_v17, %v986_v22  ;;  %v992_v41 = vmul.u32 %v988_v54, %v987_v37  ;;  %v993_v63 = vmul.u32 %v989_v17, %v987_v37 }
 0x12b   : > { %v781_v51 = vsel %vm770_vm1, nan, %v780_v25  ;;  %v887_v38 = vsel %vm885_vm5, %v886_v36, %v884_v15  ;;  %v953_v3 = vshrl.u32 %v3870_v44, %v4409_v55  ;;  %v1013_v21 = vmul.u32 %v1011_v31, %v986_v22 }
 0x12c   : > { %v888_v43 = vclz %v887_v38  ;;  %v994_v27 = vshll.u32 %v991_v48, 16  ;;  %v996_v1 = vshll.u32 %v992_v41, 16  ;;  %3574 = vst [vmem:[%s4272_s4 + $0x10] sm:$0xff] %v781_v51  ;;  %v995_v33 = vshrl.u32 %v991_v48, 16 }
 0x12d   : > { %v1012_v39 = vmul.u32 %v1010_v12, %v986_v22  ;;  %v1014_v46 = vmul.u32 %v1010_v12, %v987_v37  ;;  %v1016_v57 = vshll.u32 %v1013_v21, 16  ;;  %v1015_v11 = vmul.u32 %v1011_v31, %v987_v37 }
 0x12e   : > { %v3686_v42 = vadd.s32 4294967294, %v888_v43  ;;  %vm998_vm6 = vc.u32 %v990_v10, %v994_v27  ;;  %v1000_v5 = vadd.s32 %v994_v27, %v990_v10  ;;  %v876_v55 = vadd.s32 %v4424_v9, %v4437_v20 }
 0x12f   : > { %v999_v32 = vsel %vm998_vm6, 1, %v3869_v0  ;;  %v1018_v4 = vshll.u32 %v1014_v46, 16  ;;  %v997_v6 = vshrl.u32 %v992_v41, 16  ;;  %vm1020_vm9 = vc.u32 %v1012_v39, %v1016_v57 }
 0x130   : > { %vm3687_vm7 = vcmp.lt.s32.totalorder %v3686_v42, 0  ;;  %v1001_v59 = vadd.s32 %v999_v32, %v993_v63  ;;  %vm1002_vm8 = vc.u32 %v1000_v5, %v996_v1  ;;  %v1022_v60 = vadd.s32 %v1016_v57, %v1012_v39 }
 0x131   : > { %v891_v16 = vsel %vm3687_vm7, 0, %v3686_v42  ;;  %v1003_v26 = vsel %vm1002_vm8, 1, %v3869_v0  ;;  %v1021_v17 = vsel %vm1020_vm9, 1, %v3869_v0  ;;  %v974_v37 = vsel %vm972_vm15, %v4446_v52, 2102212464 }
 0x132   : > { %v892_v35 = vsub.s32 32, %v891_v16  ;;  %v896_v14 = vsub.s32 4294967266, %v891_v16  ;;  %v1005_v19 = vadd.s32 %v1003_v26, %v1001_v59  ;;  %v893_v13 = vshll.u32 %v884_v15, %v891_v16  ;;  %v206_v26 = vpop.permute.xlu1 %205 }
 0x133   : > { %v1017_v31 = vshrl.u32 %v1013_v21, 16  ;;  %v1023_v30 = vadd.s32 %v1021_v17, %v1015_v11  ;;  %vm1024_vm10 = vc.u32 %v1022_v60, %v1018_v4  ;;  %v973_v15 = vsel %vm969_vm13, %v953_v3, %v4432_v23 }
 0x134   : > { %v894_v22 = vshrl.u32 %v876_v55, %v892_v35  ;;  %v897_v24 = vadd.s32 127, %v896_v14  ;;  %v1006_v54 = vadd.s32 %v1005_v19, %v995_v33  ;;  %v1025_v18 = vsel %vm1024_vm10, 1, %v3869_v0 }
 0x135   : > { %v906_v36 = vsub.s32 4, %v4468_v7  ;;  %v1019_v25 = vshrl.u32 %v1014_v46, 16  ;;  %v1027_v10 = vadd.s32 %v1025_v18, %v1023_v30  ;;  %v1095_v48 = vand.u32 2139095040, %v4501_v34  ;;  %v201_v46 = vpop.permute.xlu0 %200 }
 0x136   : > { %v895_v9 = vor.u32 %v894_v22, %v893_v13  ;;  %v898_v20 = vshll.u32 %v897_v24, 23  ;;  %v975_v52 = vsel %vm971_vm14, %v4440_v2, %v974_v37  ;;  %v4522_v51 = vadd.s32 %v1006_v54, %v997_v6 }
 0x137   : > { %v4524_v38 = vadd.s32 %v1022_v60, %v1018_v4  ;;  %v1028_v12 = vadd.s32 %v1027_v10, %v1017_v31  ;;  %v1096_v43 = vshrl.u32 %v1095_v48, 23  ;;  %vm784_vm12 = vcmp.lt.s32.totalorder %v4211_v45, 0 }
 0x138   : > { %v899_v41 = vor.u32 4788187, %v898_v20  ;;  %v902_v63 = vcvt.s32.f32 %v895_v9  ;;  %v907_v27 = vsel %vm784_vm12, %v906_v36, %v4468_v7  ;;  %v976_v1 = vsel %vm970_vm0, %v973_v15, %v975_v52 }
 0x139   : > { %v1029_v3 = vadd.s32 %v1028_v12, %v1019_v25  ;;  %v3691_v42 = vadd.s32 4294967169, %v1096_v43  ;;  %vm1032_vm11 = vc.u32 %v4522_v51, %v4524_v38  ;;  %vm783_vm13 = vcmp.le.f32.partialorder %v782_v62, 0.7853982 }
 0x13a   : > { %v900_v23 = vand.u32 2147483647, %v899_v41  ;;  %v1092_v21 = vand.u32 2147483647, %v4501_v34  ;;  %v909_v39 = vsel %vm783_vm13, 0, %v907_v27  ;;  %v1030_v7 = vmul.u32 %v4482_v49, %v976_v1 }
 0x13b   : > { %v1033_v5 = vadd.s32 1, %v1029_v3  ;;  %v1102_v33 = vadd.s32 1, %v3691_v42  ;;  %v926_v62 = vadd.s32 3, %v909_v39  ;;  %v280_v35 = vmul.f32 %v4477_v8, %v201_v46 }
 0x13c   : > { %v903_v2 = vmul.f32 %v902_v63, %v900_v23  ;;  %v1099_v4 = vand.u32 8388607, %v1092_v21  ;;  %v4547_v13 = vmul.f32 %v4477_v8, %v206_v26  ;;  %vm925_vm4 = vweird.f32 %v4211_v45 }
 0x13d   : > { %v1034_v29 = vsel %vm1032_vm11, %v1033_v5, %v1029_v3  ;;  %vm1103_vm14 = vcmp.gt.s32.totalorder %v1102_v33, 0  ;;  %v4551_v24 = vand.u32 3, %v926_v62  ;;  %v4557_v31 = vadd.f32 %v4498_v28, %v280_v35 }
 0x13e   : > { %v904_v32 = vxor.u32 2147483648, %v903_v2  ;;  %v1035_v57 = vadd.s32 %v1034_v29, %v1030_v7  ;;  %v1104_v16 = vsel %vm1103_vm14, %v1102_v33, 0  ;;  %v1100_v54 = vor.u32 8388608, %v1099_v4 }
 0x13f   : > { %v1106_v55 = vand.u32 31, %v1104_v16  ;;  %v4568_v52 = vshrl.u32 %v1104_v16, 5  ;;  %vm932_vm15 = vcmp.eq.s32.totalorder %v4551_v24, 2  ;;  %vm929_vm1 = vcmp.eq.s32.totalorder %v4551_v24, 0 }
 0x140   : > { %v905_v59 = vsel %vm784_vm12, %v904_v32, %v903_v2  ;;  %v1036_v49 = vadd.s32 536870912, %v1035_v57  ;;  %v4576_v63 = vshll.u32 %v1100_v54, 8  ;;  %vm928_vm2 = vcmp.lt.s32.totalorder %v4551_v24, 2 }
 0x141   : > { %v908_v11 = vsel %vm783_vm13, %v4211_v45, %v905_v59  ;;  %v4544_v19 = vsub.s32 32, %v1106_v55  ;;  %v1109_v17 = vshll.u32 %v3870_v44, %v1106_v55  ;;  %v1112_v15 = vshll.u32 %v3871_v47, %v1106_v55 }
 0x142   : > { %v910_v14 = vmul.f32 %v908_v11, %v908_v11  ;;  %v4549_v22 = vshrl.u32 %v1036_v49, 30  ;;  %v1118_v36 = vshll.u32 %v3873_v53, %v1106_v55  ;;  %v1115_v43 = vshll.u32 %v3872_v50, %v1106_v55 }
 0x143   : > { %v1110_v37 = vshrl.u32 %v3871_v47, %v4544_v19  ;;  %v1113_v18 = vshrl.u32 %v3872_v50, %v4544_v19  ;;  %v1119_v25 = vshrl.u32 %v3874_v56, %v4544_v19  ;;  %v1116_v23 = vshrl.u32 %v3873_v53, %v4544_v19 }
 0x144   : > { %v911_v6 = vmul.f32 -0.001358992, %v910_v14  ;;  %v918_v60 = vmul.f32 -0.00019511016, %v910_v14  ;;  %v1038_v20 = vshll.u32 %v4549_v22, 30  ;;  %v1121_v5 = vshll.u32 %v3874_v56, %v1106_v55 }
 0x145   : > { %v4571_v12 = vor.u32 %v1110_v37, %v1109_v17  ;;  %v4581_v42 = vor.u32 %v1113_v18, %v1112_v15  ;;  %v1120_v2 = vor.u32 %v1119_v25, %v1118_v36  ;;  %v1122_v33 = vshrl.u32 %v3875_v58, %v4544_v19 }
 0x146   : > { %v912_v30 = vadd.f32 0.041655596, %v911_v6  ;;  %v919_v9 = vadd.f32 0.008332121, %v918_v60  ;;  %v4566_v41 = vsub.s32 %v1035_v57, %v1038_v20  ;;  %vm1124_vm3 = vcmp.lt.s32.totalorder %v4568_v52, 1 }
 0x147   : > { %vm939_vm5 = vcmp.lt.s32.totalorder %v4195_v61, 0  ;;  %v1031_v46 = vadd.s32 %v4524_v38, %v4522_v51  ;;  %v1117_v59 = vor.u32 %v1116_v23, %v1115_v43  ;;  %vm1127_vm6 = vcmp.lt.s32.totalorder %v4568_v52, 4 }
 0x148   : > { %v913_v10 = vmul.f32 %v912_v30, %v910_v14  ;;  %v920_v48 = vmul.f32 %v919_v9, %v910_v14  ;;  %vm1040_vm0 = vcmp.lt.s32.totalorder %v4566_v41, 0  ;;  %v1041_v3 = vsub.s32 0, %v4566_v41 }
 0x149   : > { %vm1126_vm7 = vcmp.lt.s32.totalorder %v4568_v52, 3  ;;  %v1141_v26 = vand.u32 65535, %v4576_v63  ;;  %v1123_v4 = vor.u32 %v1122_v33, %v1121_v5  ;;  %vm1125_vm8 = vcmp.lt.s32.totalorder %v4568_v52, 2 }
 0x14a   : > { %v914_v27 = vadd.f32 -0.4999988, %v913_v10  ;;  %v921_v1 = vadd.f32 -0.16666654, %v920_v48  ;;  %v1042_v7 = vsel %vm1040_vm0, %v1041_v3, %v4566_v41  ;;  %v1132_v55 = vsel %vm1124_vm3, %v4571_v12, %v4581_v42 }
 0x14b   : > { %v1043_v29 = vclz %v1042_v7  ;;  %vm4603_vm9 = vcmp.le.f32.partialorder %v937_v40, 0.7853982  ;;  %v1142_v49 = vshrl.u32 %v4576_v63, 16  ;;  %v1061_v6 = vsub.s32 4, %v4549_v22 }
 0x14c   : > { %v915_v32 = vmul.f32 %v914_v27, %v910_v14  ;;  %v922_v39 = vmul.f32 %v921_v1, %v910_v14  ;;  %v1133_v14 = vsel %vm1127_vm6, %v1120_v2, 920167782  ;;  %v1137_v15 = vsel %vm1127_vm6, %v1123_v4, 1326507024 }
 0x14d   : > { %v3689_v62 = vadd.s32 4294967294, %v1043_v29  ;;  %v1134_v60 = vsel %vm1126_vm7, %v1117_v59, %v1133_v14  ;;  %v1138_v36 = vsel %vm1126_vm7, %v1120_v2, %v1137_v15  ;;  %v1062_v1 = vsel %vm939_vm5, %v1061_v6, %v4549_v22 }
 0x14e   : > { %v916_v57 = vadd.f32 1.0, %v915_v32  ;;  %v923_v16 = vadd.f32 1.0, %v922_v39  ;;  %v1135_v37 = vsel %vm1125_vm8, %v1132_v55, %v1134_v60  ;;  %v1064_v45 = vsel %vm4603_vm9, 0, %v1062_v1 }
 0x14f   : > { %vm3690_vm10 = vcmp.lt.s32.totalorder %v3689_v62, 0  ;;  %v1165_v25 = vand.u32 65535, %v1135_v37  ;;  %v1166_v10 = vshrl.u32 %v1135_v37, 16  ;;  %v1129_v6 = vsel %vm1127_vm6, %v1117_v59, 2102212464 }
 0x150   : > { %v924_v51 = vmul.f32 %v923_v16, %v908_v11  ;;  %v933_v38 = vxor.u32 2147483648, %v916_v57  ;;  %v1136_v11 = vsel %vm1124_vm3, %v4581_v42, %v1117_v59  ;;  %v1046_v17 = vsel %vm3690_vm10, 0, %v3689_v62 }
 0x151   : > { %v1047_v30 = vsub.s32 32, %v1046_v17  ;;  %v1048_v9 = vshll.u32 %v4566_v41, %v1046_v17  ;;  %v1051_v20 = vsub.s32 4294967266, %v1046_v17  ;;  %v1139_v41 = vsel %vm1125_vm8, %v1136_v11, %v1138_v36 }
 0x152   : > { %v930_v54 = vxor.u32 2147483648, %v924_v51  ;;  %v934_v40 = vsel %vm932_vm15, %v933_v38, %v924_v51  ;;  %v1143_v3 = vand.u32 65535, %v1139_v41  ;;  %v1144_v5 = vshrl.u32 %v1139_v41, 16 }
 0x153   : > { %v1049_v43 = vshrl.u32 %v1031_v46, %v1047_v30  ;;  %v1052_v23 = vadd.s32 127, %v1051_v20  ;;  %v1168_v32 = vmul.u32 %v1166_v10, %v1141_v26  ;;  %v1169_v39 = vmul.u32 %v1165_v25, %v1142_v49 }
 0x154   : > { %v931_v18 = vsel %vm929_vm1, %v916_v57, %v930_v54  ;;  %v1145_v24 = vmul.u32 %v1143_v3, %v1141_v26  ;;  %v1146_v7 = vmul.u32 %v1144_v5, %v1141_v26  ;;  %v1147_v46 = vmul.u32 %v1143_v3, %v1142_v49 }
 0x155   : > { %v935_v48 = vsel %vm928_vm2, %v931_v18, %v934_v40  ;;  %v1050_v2 = vor.u32 %v1049_v43, %v1048_v9  ;;  %v1053_v33 = vshll.u32 %v1052_v23, 23  ;;  %v1167_v29 = vmul.u32 %v1165_v25, %v1141_v26 }
 0x156   : > { %v936_v27 = vsel %vm925_vm4, nan, %v935_v48  ;;  %v1108_v16 = vshrl.u32 %v3870_v44, %v4544_v19  ;;  %v1171_v62 = vshll.u32 %v1168_v32, 16  ;;  %v1148_v22 = vmul.u32 %v1144_v5, %v1142_v49 }
 0x157   : > { %3575 = vst [vmem:[%s4272_s4 + $0x18] sm:$0xff] %v936_v27  ;;  %v1054_v57 = vor.u32 4788187, %v1053_v33  ;;  %v1149_v4 = vshll.u32 %v1146_v7, 16  ;;  %v1151_v55 = vshll.u32 %v1147_v46, 16  ;;  %v1170_v51 = vmul.u32 %v1166_v10, %v1142_v49 }
 0x158   : > { %v1057_v14 = vcvt.s32.f32 %v1050_v2  ;;  %v1173_v60 = vshll.u32 %v1169_v39, 16  ;;  %vm1175_vm11 = vc.u32 %v1167_v29, %v1171_v62  ;;  %v1177_v11 = vadd.s32 %v1171_v62, %v1167_v29 }
 0x159   : > { %v1055_v38 = vand.u32 2147483647, %v1054_v57  ;;  %vm1153_vm12 = vc.u32 %v1145_v24, %v1149_v4  ;;  %v1155_v26 = vadd.s32 %v1149_v4, %v1145_v24  ;;  %v1128_v19 = vsel %vm1124_vm3, %v1108_v16, %v4571_v12 }
 0x15a   : > { %v1154_v40 = vsel %vm1153_vm12, 1, %v3869_v0  ;;  %v1176_v17 = vsel %vm1175_vm11, 1, %v3869_v0  ;;  %vm1179_vm14 = vc.u32 %v1177_v11, %v1173_v60  ;;  %v1130_v59 = vsel %vm1126_vm7, %v4581_v42, %v1129_v6 }
 0x15b   : > { %v1058_v54 = vmul.f32 %v1057_v14, %v1055_v38  ;;  %v1156_v49 = vadd.s32 %v1154_v40, %v1148_v22  ;;  %vm1157_vm13 = vc.u32 %v1155_v26, %v1151_v55  ;;  %v1178_v37 = vadd.s32 %v1176_v17, %v1170_v51 }
 0x15c   : > { %v1158_v9 = vsel %vm1157_vm13, 1, %v3869_v0  ;;  %v1180_v20 = vsel %vm1179_vm14, 1, %v3869_v0  ;;  %v1150_v15 = vshrl.u32 %v1146_v7, 16  ;;  %v1172_v12 = vshrl.u32 %v1168_v32, 16 }
 0x15d   : > { %v1059_v30 = vxor.u32 2147483648, %v1058_v54  ;;  %v1160_v18 = vadd.s32 %v1158_v9, %v1156_v49  ;;  %v1182_v36 = vadd.s32 %v1180_v20, %v1178_v37  ;;  %v1152_v10 = vshrl.u32 %v1147_v46, 16 }
 0x15e   : > { %v1174_v48 = vshrl.u32 %v1169_v39, 16  ;;  %v1250_v43 = vand.u32 2139095040, %v4557_v31  ;;  %v1247_v27 = vand.u32 2147483647, %v4557_v31  ;;  %v4662_v1 = vadd.f32 %v4498_v28, %v4547_v13 }
 0x15f   : > { %v1060_v25 = vsel %vm939_vm5, %v1059_v30, %v1058_v54  ;;  %v1161_v42 = vadd.s32 %v1160_v18, %v1150_v15  ;;  %v1183_v41 = vadd.s32 %v1182_v36, %v1172_v12  ;;  %v1081_v5 = vadd.s32 3, %v1064_v45 }
 0x160   : > { %v1063_v23 = vsel %vm4603_vm9, %v4195_v61, %v1060_v25  ;;  %v1251_v2 = vshrl.u32 %v1250_v43, 23  ;;  %v1131_v33 = vsel %vm1125_vm8, %v1128_v19, %v1130_v59  ;;  %v1181_v39 = vadd.s32 %v1177_v11, %v1173_v60 }
 0x161   : > { %v1065_v3 = vmul.f32 %v1063_v23, %v1063_v23  ;;  %v1162_v32 = vadd.s32 %v1161_v42, %v1152_v10  ;;  %v1184_v24 = vadd.s32 %v1183_v41, %v1174_v48  ;;  %v1254_v57 = vand.u32 8388607, %v1247_v27 }
 0x162   : > { %v3694_v46 = vadd.s32 4294967169, %v1251_v2  ;;  %v1185_v62 = vmul.u32 %v4576_v63, %v1131_v33  ;;  %v1082_v22 = vand.u32 3, %v1081_v5  ;;  %v1405_v52 = vand.u32 2139095040, %v4662_v1 }
 0x163   : > { %v1066_v7 = vmul.f32 -0.001358992, %v1065_v3  ;;  %v1073_v35 = vmul.f32 -0.00019511016, %v1065_v3  ;;  %vm1187_vm15 = vc.u32 %v1162_v32, %v1181_v39  ;;  %v1188_v29 = vadd.s32 1, %v1184_v24 }
 0x164   : > { %v1257_v45 = vadd.s32 1, %v3694_v46  ;;  %v1255_v11 = vor.u32 8388608, %v1254_v57  ;;  %v1402_v19 = vand.u32 2147483647, %v4662_v1  ;;  %v1406_v40 = vshrl.u32 %v1405_v52, 23 }
 0x165   : > { %v1067_v16 = vadd.f32 0.041655596, %v1066_v7  ;;  %v1074_v13 = vadd.f32 0.008332121, %v1073_v35  ;;  %v1189_v4 = vsel %vm1187_vm15, %v1188_v29, %v1184_v24  ;;  %vm1083_vm1 = vcmp.lt.s32.totalorder %v1082_v22, 2 }
 0x166   : > { %v1190_v38 = vadd.s32 %v1189_v4, %v1185_v62  ;;  %vm1258_vm0 = vcmp.gt.s32.totalorder %v1257_v45, 0  ;;  %vm1080_vm2 = vweird.f32 %v4195_v61  ;;  %vm1084_vm3 = vcmp.eq.s32.totalorder %v1082_v22, 0 }
 0x167   : > { %v1068_v55 = vmul.f32 %v1067_v16, %v1065_v3  ;;  %v1075_v51 = vmul.f32 %v1074_v13, %v1065_v3  ;;  %v1259_v14 = vsel %vm1258_vm0, %v1257_v45, 0  ;;  %vm1087_vm4 = vcmp.eq.s32.totalorder %v1082_v22, 2 }
 0x168   : > { %v1191_v26 = vadd.s32 536870912, %v1190_v38  ;;  %v1261_v54 = vand.u32 31, %v1259_v14  ;;  %v4672_v37 = vadd.s32 %v1181_v39, %v1162_v32  ;;  %v4674_v15 = vshll.u32 %v1255_v11, 8 }
 0x169   : > { %v1069_v6 = vadd.f32 -0.4999988, %v1068_v55  ;;  %v1076_v60 = vadd.f32 -0.16666654, %v1075_v51  ;;  %v4678_v36 = vadd.s32 4294967169, %v1406_v40  ;;  %vm1094_vm5 = vcmp.lt.s32.totalorder %v4501_v34, 0 }
 0x16a   : > { %v1192_v49 = vshrl.u32 %v1191_v26, 30  ;;  %v1262_v30 = vsub.s32 32, %v1261_v54  ;;  %v4682_v25 = vand.u32 8388607, %v1402_v19  ;;  %v1264_v42 = vshll.u32 %v3870_v44, %v1261_v54 }
 0x16b   : > { %v1070_v17 = vmul.f32 %v1069_v6, %v1065_v3  ;;  %v1077_v63 = vmul.f32 %v1076_v60, %v1065_v3  ;;  %v4686_v41 = vshrl.u32 %v1259_v14, 5  ;;  %v1267_v3 = vshll.u32 %v3871_v47, %v1261_v54 }
 0x16c   : > { %v1193_v20 = vshll.u32 %v1192_v49, 30  ;;  %v1265_v18 = vshrl.u32 %v3871_v47, %v1262_v30  ;;  %v1268_v12 = vshrl.u32 %v3872_v50, %v1262_v30  ;;  %v1270_v5 = vshll.u32 %v3872_v50, %v1261_v54 }
 0x16d   : > { %v1071_v59 = vadd.f32 1.0, %v1070_v17  ;;  %v1078_v9 = vadd.f32 1.0, %v1077_v63  ;;  %v1271_v2 = vshrl.u32 %v3873_v53, %v1262_v30  ;;  %v1273_v7 = vshll.u32 %v3873_v53, %v1261_v54 }
 0x16e   : > { %v1194_v43 = vsub.s32 %v1190_v38, %v1193_v20  ;;  %v1266_v39 = vor.u32 %v1265_v18, %v1264_v42  ;;  %v1269_v24 = vor.u32 %v1268_v12, %v1267_v3  ;;  %v1274_v35 = vshrl.u32 %v3874_v56, %v1262_v30 }
 0x16f   : > { %v1079_v10 = vmul.f32 %v1078_v9, %v1063_v23  ;;  %v1088_v48 = vxor.u32 2147483648, %v1071_v59  ;;  %v1276_v57 = vshll.u32 %v3874_v56, %v1261_v54  ;;  %v1277_v16 = vshrl.u32 %v3875_v58, %v1262_v30 }
 0x170   : > { %vm1195_vm6 = vcmp.lt.s32.totalorder %v1194_v43, 0  ;;  %v1196_v32 = vsub.s32 0, %v1194_v43  ;;  %vm4700_vm7 = vcmp.le.f32.partialorder %v1092_v21, 0.7853982  ;;  %v1272_v4 = vor.u32 %v1271_v2, %v1270_v5 }
 0x171   : > { %v1085_v33 = vxor.u32 2147483648, %v1079_v10  ;;  %v1089_v23 = vsel %vm1087_vm4, %v1088_v48, %v1079_v10  ;;  %v1275_v52 = vor.u32 %v1274_v35, %v1273_v7  ;;  %v1216_v51 = vsub.s32 4, %v1192_v49 }
 0x172   : > { %v1197_v29 = vsel %vm1195_vm6, %v1196_v32, %v1194_v43  ;;  %v1278_v38 = vor.u32 %v1277_v16, %v1276_v57  ;;  %v1296_v14 = vand.u32 65535, %v4674_v15  ;;  %vm1279_vm8 = vcmp.lt.s32.totalorder %v4686_v41, 1 }
 0x173   : > { %v1086_v46 = vsel %vm1084_vm3, %v1071_v59, %v1085_v33  ;;  %v1198_v45 = vclz %v1197_v29  ;;  %vm1282_vm9 = vcmp.lt.s32.totalorder %v4686_v41, 4  ;;  %v1297_v21 = vshrl.u32 %v4674_v15, 16 }
 0x174   : > { %v1090_v13 = vsel %vm1083_vm1, %v1086_v46, %v1089_v23  ;;  %v1263_v22 = vshrl.u32 %v3870_v44, %v1262_v30  ;;  %vm1281_vm10 = vcmp.lt.s32.totalorder %v4686_v41, 3  ;;  %v1287_v61 = vsel %vm1279_vm8, %v1266_v39, %v1269_v24 }
 0x175   : > { %v1091_v55 = vsel %vm1080_vm2, nan, %v1090_v13  ;;  %v3692_v6 = vadd.s32 4294967294, %v1198_v45  ;;  %v1288_v60 = vsel %vm1282_vm9, %v1275_v52, 920167782  ;;  %vm1280_vm11 = vcmp.lt.s32.totalorder %v4686_v41, 2 }
 0x176   : > { %3576 = vst [vmem:[%s4272_s4 + $0x20] sm:$0xff] %v1091_v55  ;;  %v1289_v26 = vsel %vm1281_vm10, %v1272_v4, %v1288_v60  ;;  %v1291_v11 = vsel %vm1279_vm8, %v1269_v24, %v1272_v4  ;;  %v1217_v40 = vsel %vm1094_vm5, %v1216_v51, %v1192_v49  ;;  %v1292_v63 = vsel %vm1282_vm9, %v1278_v38, 1326507024 }
 0x177   : > { %vm3693_vm12 = vcmp.lt.s32.totalorder %v3692_v6, 0  ;;  %v1290_v17 = vsel %vm1280_vm11, %v1287_v61, %v1289_v26  ;;  %v1284_v9 = vsel %vm1282_vm9, %v1272_v4, 2102212464  ;;  %v1293_v20 = vsel %vm1281_vm10, %v1275_v52, %v1292_v63 }
 0x178   : > { %v1201_v54 = vsel %vm3693_vm12, 0, %v3692_v6  ;;  %v1294_v12 = vsel %vm1280_vm11, %v1291_v11, %v1293_v20  ;;  %v1320_v10 = vand.u32 65535, %v1290_v17  ;;  %v1321_v49 = vshrl.u32 %v1290_v17, 16 }
 0x179   : > { %v1202_v30 = vsub.s32 32, %v1201_v54  ;;  %v1206_v59 = vsub.s32 4294967266, %v1201_v54  ;;  %v1203_v18 = vshll.u32 %v1194_v43, %v1201_v54  ;;  %v1298_v3 = vand.u32 65535, %v1294_v12 }
 0x17a   : > { %v1299_v5 = vshrl.u32 %v1294_v12, 16  ;;  %v1219_v2 = vsel %vm4700_vm7, 0, %v1217_v40  ;;  %v1323_v33 = vmul.u32 %v1321_v49, %v1296_v14  ;;  %v1324_v32 = vmul.u32 %v1320_v10, %v1297_v21 }
 0x17b   : > { %v1204_v48 = vshrl.u32 %v4672_v37, %v1202_v30  ;;  %v1207_v42 = vadd.s32 127, %v1206_v59  ;;  %v1412_v23 = vadd.s32 1, %v4678_v36  ;;  %v1283_v43 = vsel %vm1279_vm8, %v1263_v22, %v1266_v39 }
 0x17c   : > { %v1301_v46 = vmul.u32 %v1299_v5, %v1296_v14  ;;  %v1285_v29 = vsel %vm1281_vm10, %v1269_v24, %v1284_v9  ;;  %v1302_v37 = vmul.u32 %v1298_v3, %v1297_v21  ;;  %v1322_v57 = vmul.u32 %v1320_v10, %v1296_v14 }
 0x17d   : > { %v1205_v7 = vor.u32 %v1204_v48, %v1203_v18  ;;  %v1208_v35 = vshll.u32 %v1207_v42, 23  ;;  %v1326_v16 = vshll.u32 %v1323_v33, 16  ;;  %v1300_v45 = vmul.u32 %v1298_v3, %v1296_v14 }
 0x17e   : > { %v1304_v4 = vshll.u32 %v1301_v46, 16  ;;  %v1325_v52 = vmul.u32 %v1321_v49, %v1297_v21  ;;  %v1303_v51 = vmul.u32 %v1299_v5, %v1297_v21  ;;  %v1306_v38 = vshll.u32 %v1302_v37, 16 }
 0x17f   : > { %v1209_v13 = vor.u32 4788187, %v1208_v35  ;;  %v1212_v55 = vcvt.s32.f32 %v1205_v7  ;;  %v1328_v36 = vshll.u32 %v1324_v32, 16  ;;  %vm1330_vm14 = vc.u32 %v1322_v57, %v1326_v16 }
 0x180   : > { %vm1308_vm13 = vc.u32 %v1300_v45, %v1304_v4  ;;  %v1310_v61 = vadd.s32 %v1304_v4, %v1300_v45  ;;  %v1331_v22 = vsel %vm1330_vm14, 1, %v3869_v0  ;;  %v1332_v24 = vadd.s32 %v1326_v16, %v1322_v57 }
 0x181   : > { %v1210_v6 = vand.u32 2147483647, %v1209_v13  ;;  %v1309_v39 = vsel %vm1308_vm13, 1, %v3869_v0  ;;  %vm1413_vm15 = vcmp.gt.s32.totalorder %v1412_v23, 0  ;;  %v1333_v14 = vadd.s32 %v1331_v22, %v1325_v52 }
 0x182   : > { %v1311_v26 = vadd.s32 %v1309_v39, %v1303_v51  ;;  %vm1312_vm0 = vc.u32 %v1310_v61, %v1306_v38  ;;  %v1286_v11 = vsel %vm1280_vm11, %v1283_v43, %v1285_v29  ;;  %vm1334_vm1 = vc.u32 %v1332_v24, %v1328_v36 }
 0x183   : > { %v1213_v60 = vmul.f32 %v1212_v55, %v1210_v6  ;;  %v1313_v21 = vsel %vm1312_vm0, 1, %v3869_v0  ;;  %v1414_v54 = vsel %vm1413_vm15, %v1412_v23, 0  ;;  %v1305_v17 = vshrl.u32 %v1301_v46, 16 }
 0x184   : > { %v1315_v63 = vadd.s32 %v1313_v21, %v1311_v26  ;;  %v1335_v30 = vsel %vm1334_vm1, 1, %v3869_v0  ;;  %v1236_v59 = vadd.s32 3, %v1219_v2  ;;  %v1327_v9 = vshrl.u32 %v1323_v33, 16 }
 0x185   : > { %v1214_v40 = vxor.u32 2147483648, %v1213_v60  ;;  %v1337_v20 = vadd.s32 %v1335_v30, %v1333_v14  ;;  %v1416_v18 = vand.u32 31, %v1414_v54  ;;  %v1307_v10 = vshrl.u32 %v1302_v37, 16  ;;  %v211_v30 = vpop.permute.xlu2 %210 }
 0x186   : > { %v1316_v49 = vadd.s32 %v1315_v63, %v1305_v17  ;;  %v1340_v41 = vmul.u32 %v4674_v15, %v1286_v11  ;;  %v1329_v42 = vshrl.u32 %v1324_v32, 16  ;;  %v4758_v33 = vadd.s32 %v1332_v24, %v1328_v36 }
 0x187   : > { %v1215_v12 = vsel %vm1094_vm5, %v1214_v40, %v1213_v60  ;;  %v1338_v3 = vadd.s32 %v1337_v20, %v1327_v9  ;;  %v4754_v5 = vsub.s32 32, %v1416_v18  ;;  %v4760_v7 = vshrl.u32 %v1414_v54, 5 }
 0x188   : > { %v1218_v48 = vsel %vm4700_vm7, %v4501_v34, %v1215_v12  ;;  %v4756_v2 = vadd.s32 %v1316_v49, %v1307_v10  ;;  %v1419_v43 = vshll.u32 %v3870_v44, %v1416_v18  ;;  %v1422_v15 = vshll.u32 %v3871_v47, %v1416_v18 }
 0x189   : > { %v1220_v23 = vmul.f32 %v1218_v48, %v1218_v48  ;;  %v1339_v35 = vadd.s32 %v1338_v3, %v1329_v42  ;;  %v1423_v62 = vshrl.u32 %v3872_v50, %v4754_v5  ;;  %v1425_v29 = vshll.u32 %v3872_v50, %v1416_v18 }
 0x18a   : > { %vm1342_vm2 = vc.u32 %v4756_v2, %v4758_v33  ;;  %v1420_v57 = vshrl.u32 %v3871_v47, %v4754_v5  ;;  %v1426_v13 = vshrl.u32 %v3873_v53, %v4754_v5  ;;  %v1428_v52 = vshll.u32 %v3873_v53, %v1416_v18 }
 0x18b   : > { %v1221_v46 = vmul.f32 -0.001358992, %v1220_v23  ;;  %v1228_v32 = vmul.f32 -0.00019511016, %v1220_v23  ;;  %v1343_v37 = vadd.s32 1, %v1339_v35  ;;  %v4771_v16 = vor.u32 %v1423_v62, %v1422_v15 }
 0x18c   : > { %v1429_v55 = vshrl.u32 %v3874_v56, %v4754_v5  ;;  %v4778_v38 = vor.u32 %v1426_v13, %v1425_v29  ;;  %v1431_v36 = vshll.u32 %v3874_v56, %v1416_v18  ;;  %v1432_v6 = vshrl.u32 %v3875_v58, %v4754_v5 }
 0x18d   : > { %v1222_v45 = vadd.f32 0.041655596, %v1221_v46  ;;  %v1229_v4 = vadd.f32 0.008332121, %v1228_v32  ;;  %v1344_v51 = vsel %vm1342_vm2, %v1343_v37, %v1339_v35  ;;  %v1237_v60 = vand.u32 3, %v1236_v59 }
 0x18e   : > { %v1345_v22 = vadd.s32 %v1344_v51, %v1340_v41  ;;  %v1430_v24 = vor.u32 %v1429_v55, %v1428_v52  ;;  %v1410_v26 = vor.u32 8388608, %v4682_v25  ;;  %v4784_v14 = vor.u32 %v1420_v57, %v1419_v43 }
 0x18f   : > { %v1223_v61 = vmul.f32 %v1222_v45, %v1220_v23  ;;  %v1230_v39 = vmul.f32 %v1229_v4, %v1220_v23  ;;  %v1433_v11 = vor.u32 %v1432_v6, %v1431_v36  ;;  %vm1437_vm3 = vcmp.lt.s32.totalorder %v4760_v7, 4 }
 0x190   : > { %v1346_v40 = vadd.s32 536870912, %v1345_v22  ;;  %vm1434_vm4 = vcmp.lt.s32.totalorder %v4760_v7, 1  ;;  %vm1436_vm5 = vcmp.lt.s32.totalorder %v4760_v7, 3  ;;  %v1443_v17 = vsel %vm1437_vm3, %v1430_v24, 920167782 }
 0x191   : > { %v1224_v21 = vadd.f32 -0.4999988, %v1223_v61  ;;  %v1231_v54 = vadd.f32 -0.16666654, %v1230_v39  ;;  %v1447_v63 = vsel %vm1437_vm3, %v1433_v11, 1326507024  ;;  %v1446_v20 = vsel %vm1434_vm4, %v4771_v16, %v4778_v38 }
 0x192   : > { %v4793_v9 = vshrl.u32 %v1346_v40, 30  ;;  %vm1435_vm6 = vcmp.lt.s32.totalorder %v4760_v7, 2  ;;  %v1442_v18 = vsel %vm1434_vm4, %v4784_v14, %v4771_v16  ;;  %v1448_v12 = vsel %vm1436_vm5, %v1430_v24, %v1447_v63 }
 0x193   : > { %v1225_v25 = vmul.f32 %v1224_v21, %v1220_v23  ;;  %v1232_v59 = vmul.f32 %v1231_v54, %v1220_v23  ;;  %v4806_v10 = vshll.u32 %v1410_v26, 8  ;;  %v1444_v3 = vsel %vm1436_vm5, %v4778_v38, %v1443_v17 }
 0x194   : > { %v1348_v42 = vshll.u32 %v4793_v9, 30  ;;  %v282_v23 = vmul.f32 %v4477_v8, %v211_v30  ;;  %vm1235_vm7 = vweird.f32 %v4501_v34  ;;  %v1449_v35 = vsel %vm1435_vm6, %v1446_v20, %v1448_v12 }
 0x195   : > { %v1226_v49 = vadd.f32 1.0, %v1225_v25  ;;  %v1233_v41 = vadd.f32 1.0, %v1232_v59  ;;  %vm1242_vm8 = vcmp.eq.s32.totalorder %v1237_v60, 2  ;;  %v1445_v46 = vsel %vm1435_vm6, %v1442_v18, %v1444_v3 }
 0x196   : > { %v1349_v62 = vsub.s32 %v1345_v22, %v1348_v42  ;;  %v1451_v32 = vand.u32 65535, %v4806_v10  ;;  %v1453_v29 = vand.u32 65535, %v1449_v35  ;;  %v1454_v37 = vshrl.u32 %v1449_v35, 16 }
 0x197   : > { %v1234_v43 = vmul.f32 %v1233_v41, %v1218_v48  ;;  %v1243_v15 = vxor.u32 2147483648, %v1226_v49  ;;  %v1452_v8 = vshrl.u32 %v4806_v10, 16  ;;  %vm1238_vm10 = vcmp.lt.s32.totalorder %v1237_v60, 2 }
 0x198   : > { %vm1350_vm9 = vcmp.lt.s32.totalorder %v1349_v62, 0  ;;  %v1351_v13 = vsub.s32 0, %v1349_v62  ;;  %vm1239_vm12 = vcmp.eq.s32.totalorder %v1237_v60, 0  ;;  %v1456_v48 = vmul.u32 %v1454_v37, %v1451_v32 }
 0x199   : > { %v1240_v57 = vxor.u32 2147483648, %v1234_v43  ;;  %v1244_v45 = vsel %vm1242_vm8, %v1243_v15, %v1234_v43  ;;  %v1457_v55 = vmul.u32 %v1453_v29, %v1452_v8  ;;  %v1476_v51 = vshrl.u32 %v1445_v46, 16 }
 0x19a   : > { %v1352_v52 = vsel %vm1350_vm9, %v1351_v13, %v1349_v62  ;;  %v1459_v61 = vshll.u32 %v1456_v48, 16  ;;  %v1475_v39 = vand.u32 65535, %v1445_v46  ;;  %v1455_v24 = vmul.u32 %v1453_v29, %v1451_v32 }
 0x19b   : > { %v1241_v4 = vsel %vm1239_vm12, %v1226_v49, %v1240_v57  ;;  %v1353_v6 = vclz %v1352_v52  ;;  %v4823_v26 = vadd.f32 %v4498_v28, %v282_v23  ;;  %v1341_v60 = vadd.s32 %v4758_v33, %v4756_v2 }
 0x19c   : > { %v1245_v36 = vsel %vm1238_vm10, %v1241_v4, %v1244_v45  ;;  %v1458_v21 = vmul.u32 %v1454_v37, %v1452_v8  ;;  %v1461_v54 = vshll.u32 %v1457_v55, 16  ;;  %vm1463_vm11 = vc.u32 %v1455_v24, %v1459_v61 }
 0x19d   : > { %v1246_v22 = vsel %vm1235_vm7, nan, %v1245_v36  ;;  %v3695_v11 = vadd.s32 4294967294, %v1353_v6  ;;  %v1465_v40 = vadd.s32 %v1459_v61, %v1455_v24  ;;  %v1478_v17 = vmul.u32 %v1476_v51, %v1451_v32  ;;  %v216_v61 = vpop.permute.xlu0 %215 }
 0x19e   : > { %3577 = vst [vmem:[%s4272_s4 + $0x28] sm:$0xff] %v1246_v22  ;;  %v1460_v63 = vshrl.u32 %v1456_v48, 16  ;;  %v1464_v30 = vsel %vm1463_vm11, 1, %v3869_v0  ;;  %v1479_v34 = vmul.u32 %v1475_v39, %v1452_v8  ;;  %v1477_v33 = vmul.u32 %v1475_v39, %v1451_v32 }
 0x19f   : > { %vm3696_vm13 = vcmp.lt.s32.totalorder %v3695_v11, 0  ;;  %v1466_v59 = vadd.s32 %v1464_v30, %v1458_v21  ;;  %vm1467_vm14 = vc.u32 %v1465_v40, %v1461_v54  ;;  %v1481_v28 = vshll.u32 %v1478_v17, 16 }
 0x1a0   : > { %v1356_v25 = vsel %vm3696_vm13, 0, %v3695_v11  ;;  %v1468_v2 = vsel %vm1467_vm14, 1, %v3869_v0  ;;  %v1480_v41 = vmul.u32 %v1476_v51, %v1452_v8  ;;  %v1483_v42 = vshll.u32 %v1479_v34, 16 }
 0x1a1   : > { %v1357_v20 = vsub.s32 32, %v1356_v25  ;;  %v1361_v18 = vsub.s32 4294967266, %v1356_v25  ;;  %v1358_v12 = vshll.u32 %v1349_v62, %v1356_v25  ;;  %v1470_v49 = vadd.s32 %v1468_v2, %v1466_v59 }
 0x1a2   : > { %vm1485_vm15 = vc.u32 %v1477_v33, %v1481_v28  ;;  %v1487_v35 = vadd.s32 %v1481_v28, %v1477_v33  ;;  %v1439_v43 = vsel %vm1437_vm3, %v4778_v38, 2102212464  ;;  %v1560_v29 = vand.u32 2139095040, %v4823_v26 }
 0x1a3   : > { %v1359_v3 = vshrl.u32 %v1341_v60, %v1357_v20  ;;  %v1362_v23 = vadd.s32 127, %v1361_v18  ;;  %v1471_v15 = vadd.s32 %v1470_v49, %v1460_v63  ;;  %v1486_v46 = vsel %vm1485_vm15, 1, %v3869_v0 }
 0x1a4   : > { %v1488_v32 = vadd.s32 %v1486_v46, %v1480_v41  ;;  %vm1489_vm0 = vc.u32 %v1487_v35, %v1483_v42  ;;  %v1418_v62 = vshrl.u32 %v3870_v44, %v4754_v5  ;;  %v1462_v13 = vshrl.u32 %v1457_v55, 16  ;;  %v221_v55 = vpop.permute.xlu1 %220  ;;  %v4886_v41 = vld [vmem:[%s6389_s1 + $0x1] ss:$0 sm:$0xff] }
 0x1a5   : > { %v1360_v37 = vor.u32 %v1359_v3, %v1358_v12  ;;  %v1363_v57 = vshll.u32 %v1362_v23, 23  ;;  %v1490_v8 = vsel %vm1489_vm0, 1, %v3869_v0  ;;  %v1561_v45 = vshrl.u32 %v1560_v29, 23 }
 0x1a6   : > { %v1371_v4 = vsub.s32 4, %v4793_v9  ;;  %v1482_v38 = vshrl.u32 %v1478_v17, 16  ;;  %v1492_v52 = vadd.s32 %v1490_v8, %v1488_v32  ;;  %v1438_v51 = vsel %vm1434_vm4, %v1418_v62, %v4784_v14  ;;  %v4858_v17 = vld [vmem:[%s6389_s1] ss:$0 sm:$0xff] }
 0x1a7   : > { %v1364_v48 = vor.u32 4788187, %v1363_v57  ;;  %v1440_v36 = vsel %vm1436_vm5, %v4771_v16, %v1439_v43  ;;  %v4845_v6 = vadd.s32 %v1471_v15, %v1462_v13  ;;  %v3700_v5 = vadd.s32 4294967169, %v1561_v45 }
 0x1a8   : > { %v1367_v22 = vcvt.s32.f32 %v1360_v37  ;;  %v1484_v24 = vshrl.u32 %v1479_v34, 16  ;;  %v1493_v60 = vadd.s32 %v1492_v52, %v1482_v38  ;;  %vm1249_vm1 = vcmp.lt.s32.totalorder %v4557_v31, 0 }
 0x1a9   : > { %v1365_v39 = vand.u32 2147483647, %v1364_v48  ;;  %v4848_v11 = vadd.s32 %v1487_v35, %v1483_v42  ;;  %v1567_v21 = vadd.s32 1, %v3700_v5  ;;  %v1372_v14 = vsel %vm1249_vm1, %v1371_v4, %v4793_v9 }
 0x1aa   : > { %v1441_v16 = vsel %vm1435_vm6, %v1438_v51, %v1440_v36  ;;  %v1494_v40 = vadd.s32 %v1493_v60, %v1484_v24  ;;  %v283_v63 = vmul.f32 %v4858_v17, %v216_v61  ;;  %v284_v30 = vmul.f32 %v4858_v17, %v221_v55 }
 0x1ab   : > { %v1368_v54 = vmul.f32 %v1367_v22, %v1365_v39  ;;  %vm1497_vm2 = vc.u32 %v4845_v6, %v4848_v11  ;;  %vm1568_vm3 = vcmp.gt.s32.totalorder %v1567_v21, 0  ;;  %vm4866_vm4 = vcmp.le.f32.partialorder %v1247_v27, 0.7853982 }
 0x1ac   : > { %v1498_v34 = vadd.s32 1, %v1494_v40  ;;  %v1569_v25 = vsel %vm1568_vm3, %v1567_v21, 0  ;;  %v1374_v59 = vsel %vm4866_vm4, 0, %v1372_v14  ;;  %v1495_v28 = vmul.u32 %v4806_v10, %v1441_v16 }
 0x1ad   : > { %v1369_v7 = vxor.u32 2147483648, %v1368_v54  ;;  %v1557_v20 = vand.u32 2147483647, %v4823_v26  ;;  %v1571_v18 = vand.u32 31, %v1569_v25  ;;  %v4889_v10 = vadd.f32 %v4886_v41, %v283_v63 }
 0x1ae   : > { %v1499_v33 = vsel %vm1497_vm2, %v1498_v34, %v1494_v40  ;;  %v4892_v42 = vadd.f32 %v4886_v41, %v284_v30  ;;  %v1391_v23 = vadd.s32 3, %v1374_v59  ;;  %v4906_v13 = vshrl.u32 %v1569_v25, 5 }
 0x1af   : > { %v1370_v2 = vsel %vm1249_vm1, %v1369_v7, %v1368_v54  ;;  %v1500_v12 = vadd.s32 %v1499_v33, %v1495_v28  ;;  %v4881_v49 = vsub.s32 32, %v1571_v18  ;;  %v1564_v43 = vand.u32 8388607, %v1557_v20 }
 0x1b0   : > { %v4879_v27 = vsel %vm4866_vm4, %v4557_v31, %v1370_v2  ;;  %v1574_v15 = vshll.u32 %v3870_v44, %v1571_v18  ;;  %v1577_v57 = vshll.u32 %v3871_v47, %v1571_v18  ;;  %v1583_v8 = vshll.u32 %v3873_v53, %v1571_v18 }
 0x1b1   : > { %v1375_v3 = vmul.f32 %v4879_v27, %v4879_v27  ;;  %v1501_v35 = vadd.s32 536870912, %v1500_v12  ;;  %v1575_v46 = vshrl.u32 %v3871_v47, %v4881_v49  ;;  %v1578_v32 = vshrl.u32 %v3872_v50, %v4881_v49 }
 0x1b2   : > { %v1584_v45 = vshrl.u32 %v3874_v56, %v4881_v49  ;;  %v1580_v38 = vshll.u32 %v3872_v50, %v1571_v18  ;;  %v1581_v52 = vshrl.u32 %v3873_v53, %v4881_v49  ;;  %v1392_v51 = vand.u32 3, %v1391_v23 }
 0x1b3   : > { %v1376_v29 = vmul.f32 -0.001358992, %v1375_v3  ;;  %v1383_v37 = vmul.f32 -0.00019511016, %v1375_v3  ;;  %v4904_v62 = vshrl.u32 %v1501_v35, 30  ;;  %v1565_v5 = vor.u32 8388608, %v1564_v43 }
 0x1b4   : > { %v4915_v55 = vor.u32 %v1575_v46, %v1574_v15  ;;  %v4917_v22 = vor.u32 %v1578_v32, %v1577_v57  ;;  %v1586_v24 = vshll.u32 %v3874_v56, %v1571_v18  ;;  %v1585_v21 = vor.u32 %v1584_v45, %v1583_v8 }
 0x1b5   : > { %v1377_v48 = vadd.f32 0.041655596, %v1376_v29  ;;  %v1384_v4 = vadd.f32 0.008332121, %v1383_v37  ;;  %v1503_v36 = vshll.u32 %v4904_v62, 30  ;;  %v1587_v54 = vshrl.u32 %v3875_v58, %v4881_v49 }
 0x1b6   : > { %vm1589_vm5 = vcmp.lt.s32.totalorder %v4906_v13, 1  ;;  %v1582_v40 = vor.u32 %v1581_v52, %v1580_v38  ;;  %vm1592_vm6 = vcmp.lt.s32.totalorder %v4906_v13, 4  ;;  %vm1394_vm7 = vcmp.eq.s32.totalorder %v1392_v51, 0 }
 0x1b7   : > { %v1378_v61 = vmul.f32 %v1377_v48, %v1375_v3  ;;  %v1385_v39 = vmul.f32 %v1384_v4, %v1375_v3  ;;  %v4920_v60 = vsub.s32 %v1500_v12, %v1503_v36  ;;  %vm1591_vm9 = vcmp.lt.s32.totalorder %v4906_v13, 3 }
 0x1b8   : > { %v4929_v30 = vshll.u32 %v1565_v5, 8  ;;  %vm1393_vm10 = vcmp.lt.s32.totalorder %v1392_v51, 2  ;;  %vm1590_vm12 = vcmp.lt.s32.totalorder %v4906_v13, 2  ;;  %v1597_v34 = vsel %vm1589_vm5, %v4915_v55, %v4917_v22 }
 0x1b9   : > { %v1379_v14 = vadd.f32 -0.4999988, %v1378_v61  ;;  %v1386_v16 = vadd.f32 -0.16666654, %v1385_v39  ;;  %vm1505_vm8 = vcmp.lt.s32.totalorder %v4920_v60, 0  ;;  %v1506_v63 = vsub.s32 0, %v4920_v60 }
 0x1ba   : > { %vm1390_vm11 = vweird.f32 %v4557_v31  ;;  %vm1397_vm13 = vcmp.eq.s32.totalorder %v1392_v51, 2  ;;  %v1588_v59 = vor.u32 %v1587_v54, %v1586_v24  ;;  %v1598_v28 = vsel %vm1592_vm6, %v1585_v21, 920167782 }
 0x1bb   : > { %v1380_v9 = vmul.f32 %v1379_v14, %v1375_v3  ;;  %v1387_v7 = vmul.f32 %v1386_v16, %v1375_v3  ;;  %v1507_v25 = vsel %vm1505_vm8, %v1506_v63, %v4920_v60  ;;  %vm1404_vm14 = vcmp.lt.s32.totalorder %v4662_v1, 0 }
 0x1bc   : > { %v1508_v33 = vclz %v1507_v25  ;;  %v1599_v12 = vsel %vm1591_vm9, %v1582_v40, %v1598_v28  ;;  %v1496_v3 = vadd.s32 %v4848_v11, %v4845_v6  ;;  %v1606_v35 = vand.u32 65535, %v4929_v30 }
 0x1bd   : > { %v1381_v18 = vadd.f32 1.0, %v1380_v9  ;;  %v1388_v2 = vadd.f32 1.0, %v1387_v7  ;;  %v1600_v23 = vsel %vm1590_vm12, %v1597_v34, %v1599_v12  ;;  %v1607_v43 = vshrl.u32 %v4929_v30, 16 }
 0x1be   : > { %v3698_v29 = vadd.s32 4294967294, %v1508_v33  ;;  %v1601_v37 = vsel %vm1589_vm5, %v4917_v22, %v1582_v40  ;;  %v1526_v57 = vsub.s32 4, %v4904_v62  ;;  %v1573_v6 = vshrl.u32 %v3870_v44, %v4881_v49 }
 0x1bf   : > { %v1389_v15 = vmul.f32 %v1388_v2, %v4879_v27  ;;  %v1398_v46 = vxor.u32 2147483648, %v1381_v18  ;;  %v1602_v11 = vsel %vm1592_vm6, %v1588_v59, 1326507024  ;;  %v1631_v32 = vshrl.u32 %v1600_v23, 16 }
 0x1c0   : > { %vm3699_vm15 = vcmp.lt.s32.totalorder %v3698_v29, 0  ;;  %v1603_v27 = vsel %vm1591_vm9, %v1585_v21, %v1602_v11  ;;  %v1630_v45 = vand.u32 65535, %v1600_v23  ;;  %v1594_v38 = vsel %vm1592_vm6, %v1582_v40, 2102212464 }
 0x1c1   : > { %v1395_v8 = vxor.u32 2147483648, %v1389_v15  ;;  %v1399_v48 = vsel %vm1397_vm13, %v1398_v46, %v1389_v15  ;;  %v1511_v4 = vsel %vm3699_vm15, 0, %v3698_v29  ;;  %v1604_v52 = vsel %vm1590_vm12, %v1601_v37, %v1603_v27 }
 0x1c2   : > { %v1512_v36 = vsub.s32 32, %v1511_v4  ;;  %v1516_v5 = vsub.s32 4294967266, %v1511_v4  ;;  %v1633_v61 = vmul.u32 %v1631_v32, %v1606_v35  ;;  %v1513_v24 = vshll.u32 %v4920_v60, %v1511_v4 }
 0x1c3   : > { %v1396_v49 = vsel %vm1394_vm7, %v1381_v18, %v1395_v8  ;;  %v1608_v21 = vand.u32 65535, %v1604_v52  ;;  %v1609_v54 = vshrl.u32 %v1604_v52, 16  ;;  %v1634_v63 = vmul.u32 %v1630_v45, %v1607_v43 }
 0x1c4   : > { %v1400_v39 = vsel %vm1393_vm10, %v1396_v49, %v1399_v48  ;;  %v1514_v16 = vshrl.u32 %v1496_v3, %v1512_v36  ;;  %v1517_v40 = vadd.s32 127, %v1516_v5  ;;  %vm4972_vm0 = vcmp.le.f32.partialorder %v1402_v19, 0.7853982 }
 0x1c5   : > { %v1401_v14 = vsel %vm1390_vm11, nan, %v1400_v39  ;;  %v1527_v51 = vsel %vm1404_vm14, %v1526_v57, %v4904_v62  ;;  %v1593_v60 = vsel %vm1589_vm5, %v1573_v6, %v4915_v55  ;;  %v1611_v7 = vmul.u32 %v1609_v54, %v1606_v35 }
 0x1c6   : > { %v1612_v31 = vmul.u32 %v1608_v21, %v1607_v43  ;;  %3578 = vst [vmem:[%s4272_s4 + $0x30] sm:$0xff] %v1401_v14  ;;  %v1515_v34 = vor.u32 %v1514_v16, %v1513_v24  ;;  %v1518_v25 = vshll.u32 %v1517_v40, 23  ;;  %v1595_v19 = vsel %vm1591_vm9, %v4917_v22, %v1594_v38 }
 0x1c7   : > { %v1636_v59 = vshll.u32 %v1633_v61, 16  ;;  %v1610_v28 = vmul.u32 %v1608_v21, %v1606_v35  ;;  %v1614_v18 = vshll.u32 %v1611_v7, 16  ;;  %v1632_v2 = vmul.u32 %v1630_v45, %v1606_v35 }
 0x1c8   : > { %v1635_v33 = vmul.u32 %v1631_v32, %v1607_v43  ;;  %v1519_v12 = vor.u32 4788187, %v1518_v25  ;;  %v1613_v62 = vmul.u32 %v1609_v54, %v1607_v43  ;;  %v1616_v3 = vshll.u32 %v1612_v31, 16 }
 0x1c9   : > { %v1638_v23 = vshll.u32 %v1634_v63, 16  ;;  %vm1618_vm1 = vc.u32 %v1610_v28, %v1614_v18  ;;  %v1620_v55 = vadd.s32 %v1614_v18, %v1610_v28  ;;  %vm1640_vm2 = vc.u32 %v1632_v2, %v1636_v59 }
 0x1ca   : > { %v1642_v15 = vadd.s32 %v1636_v59, %v1632_v2  ;;  %v1520_v46 = vand.u32 2147483647, %v1519_v12  ;;  %v1522_v29 = vcvt.s32.f32 %v1515_v34  ;;  %v1619_v37 = vsel %vm1618_vm1, 1, %v3869_v0 }
 0x1cb   : > { %v1641_v57 = vsel %vm1640_vm2, 1, %v3869_v0  ;;  %v1621_v22 = vadd.s32 %v1619_v37, %v1613_v62  ;;  %vm1622_vm3 = vc.u32 %v1620_v55, %v1616_v3  ;;  %v1712_v32 = vand.u32 2147483647, %v4889_v10 }
 0x1cc   : > { %v1643_v6 = vadd.s32 %v1641_v57, %v1635_v33  ;;  %vm1644_vm4 = vc.u32 %v1642_v15, %v1638_v23  ;;  %v1523_v35 = vmul.f32 %v1522_v29, %v1520_v46  ;;  %v1623_v11 = vsel %vm1622_vm3, 1, %v3869_v0 }
 0x1cd   : > { %v1645_v43 = vsel %vm1644_vm4, 1, %v3869_v0  ;;  %v1615_v8 = vshrl.u32 %v1611_v7, 16  ;;  %v1625_v27 = vadd.s32 %v1623_v11, %v1621_v22  ;;  %v1637_v45 = vshrl.u32 %v1633_v61, 16 }
 0x1ce   : > { %v1647_v48 = vadd.s32 %v1645_v43, %v1643_v6  ;;  %v1524_v4 = vxor.u32 2147483648, %v1523_v35  ;;  %v1529_v38 = vsel %vm4972_vm0, 0, %v1527_v51  ;;  %v1596_v52 = vsel %vm1590_vm12, %v1593_v60, %v1595_v19 }
 0x1cf   : > { %v1715_v49 = vand.u32 2139095040, %v4889_v10  ;;  %v1617_v36 = vshrl.u32 %v1612_v31, 16  ;;  %v1626_v5 = vadd.s32 %v1625_v27, %v1615_v8  ;;  %v1639_v39 = vshrl.u32 %v1634_v63, 16 }
 0x1d0   : > { %v1648_v24 = vadd.s32 %v1647_v48, %v1637_v45  ;;  %v1525_v21 = vsel %vm1404_vm14, %v1524_v4, %v1523_v35  ;;  %v1646_v54 = vadd.s32 %v1642_v15, %v1638_v23  ;;  %v1719_v61 = vand.u32 8388607, %v1712_v32  ;;  %v226_v23 = vpop.permute.xlu2 %225 }
 0x1d1   : > { %v1716_v14 = vshrl.u32 %v1715_v49, 23  ;;  %v1528_v16 = vsel %vm4972_vm0, %v4662_v1, %v1525_v21  ;;  %v1627_v13 = vadd.s32 %v1626_v5, %v1617_v36  ;;  %v1870_v51 = vand.u32 2139095040, %v4892_v42 }
 0x1d2   : > { %v1649_v40 = vadd.s32 %v1648_v24, %v1639_v39  ;;  %v1530_v60 = vmul.f32 %v1528_v16, %v1528_v16  ;;  %v1546_v63 = vadd.s32 3, %v1529_v38  ;;  %v1650_v19 = vmul.u32 %v4929_v30, %v1596_v52 }
 0x1d3   : > { %v3703_v7 = vadd.s32 4294967169, %v1716_v14  ;;  %vm1652_vm5 = vc.u32 %v1627_v13, %v1646_v54  ;;  %v1720_v18 = vor.u32 8388608, %v1719_v61  ;;  %v1871_v2 = vshrl.u32 %v1870_v51, 23 }
 0x1d4   : > { %v1653_v31 = vadd.s32 1, %v1649_v40  ;;  %v1531_v34 = vmul.f32 -0.001358992, %v1530_v60  ;;  %v1538_v25 = vmul.f32 -0.00019511016, %v1530_v60  ;;  %v1547_v62 = vand.u32 3, %v1546_v63 }
 0x1d5   : > { %v1722_v59 = vadd.s32 1, %v3703_v7  ;;  %v5005_v37 = vshll.u32 %v1720_v18, 8  ;;  %v1867_v57 = vand.u32 2147483647, %v4892_v42  ;;  %v3706_v30 = vadd.s32 4294967169, %v1871_v2 }
 0x1d6   : > { %v1654_v28 = vsel %vm1652_vm5, %v1653_v31, %v1649_v40  ;;  %v1532_v33 = vadd.f32 0.041655596, %v1531_v34  ;;  %v1539_v9 = vadd.f32 0.008332121, %v1538_v25  ;;  %v5009_v11 = vmul.f32 %v4858_v17, %v226_v23 }
 0x1d7   : > { %v1655_v12 = vadd.s32 %v1654_v28, %v1650_v19  ;;  %vm1723_vm6 = vcmp.gt.s32.totalorder %v1722_v59, 0  ;;  %vm1549_vm7 = vcmp.eq.s32.totalorder %v1547_v62, 0  ;;  %vm1552_vm8 = vcmp.eq.s32.totalorder %v1547_v62, 2 }
 0x1d8   : > { %v1724_v3 = vsel %vm1723_vm6, %v1722_v59, 0  ;;  %v1533_v55 = vmul.f32 %v1532_v33, %v1530_v60  ;;  %v1540_v15 = vmul.f32 %v1539_v9, %v1530_v60  ;;  %vm1548_vm9 = vcmp.lt.s32.totalorder %v1547_v62, 2 }
 0x1d9   : > { %v1656_v46 = vadd.s32 536870912, %v1655_v12  ;;  %v1726_v29 = vand.u32 31, %v1724_v3  ;;  %v5011_v45 = vadd.s32 %v1646_v54, %v1627_v13  ;;  %vm1545_vm10 = vweird.f32 %v4662_v1 }
 0x1da   : > { %v1534_v22 = vadd.f32 -0.4999988, %v1533_v55  ;;  %v1541_v6 = vadd.f32 -0.16666654, %v1540_v15  ;;  %vm1559_vm12 = vcmp.lt.s32.totalorder %v4823_v26, 0  ;;  %v5016_v4 = vand.u32 65535, %v5005_v37 }
 0x1db   : > { %v1657_v35 = vshrl.u32 %v1656_v46, 30  ;;  %v1727_v43 = vsub.s32 32, %v1726_v29  ;;  %v5019_v38 = vshrl.u32 %v5005_v37, 16  ;;  %v5023_v52 = vand.u32 8388607, %v1867_v57 }
 0x1dc   : > { %v1535_v8 = vmul.f32 %v1534_v22, %v1530_v60  ;;  %v1542_v27 = vmul.f32 %v1541_v6, %v1530_v60  ;;  %v5025_v49 = vadd.s32 1, %v3706_v30  ;;  %v5027_v24 = vshrl.u32 %v1724_v3, 5 }
 0x1dd   : > { %v1658_v48 = vshll.u32 %v1657_v35, 30  ;;  %v1729_v21 = vshll.u32 %v3870_v44, %v1726_v29  ;;  %v1730_v54 = vshrl.u32 %v3871_v47, %v1727_v43  ;;  %v1733_v14 = vshrl.u32 %v3872_v50, %v1727_v43 }
 0x1de   : > { %v1536_v36 = vadd.f32 1.0, %v1535_v8  ;;  %v1543_v5 = vadd.f32 1.0, %v1542_v27  ;;  %v1736_v61 = vshrl.u32 %v3873_v53, %v1727_v43  ;;  %vm5035_vm13 = vcmp.le.f32.partialorder %v1557_v20, 0.7853982 }
 0x1df   : > { %v1659_v39 = vsub.s32 %v1655_v12, %v1658_v48  ;;  %v1732_v7 = vshll.u32 %v3871_v47, %v1726_v29  ;;  %v1735_v63 = vshll.u32 %v3872_v50, %v1726_v29  ;;  %v1738_v31 = vshll.u32 %v3873_v53, %v1726_v29 }
 0x1e0   : > { %v1544_v13 = vmul.f32 %v1543_v5, %v1528_v16  ;;  %v1553_v40 = vxor.u32 2147483648, %v1536_v36  ;;  %v1739_v34 = vshrl.u32 %v3874_v56, %v1727_v43  ;;  %v1681_v16 = vsub.s32 4, %v1657_v35 }
 0x1e1   : > { %vm1660_vm11 = vcmp.lt.s32.totalorder %v1659_v39, 0  ;;  %v1661_v51 = vsub.s32 0, %v1659_v39  ;;  %v1742_v59 = vshrl.u32 %v3875_v58, %v1727_v43  ;;  %v1731_v18 = vor.u32 %v1730_v54, %v1729_v21 }
 0x1e2   : > { %v1550_v25 = vxor.u32 2147483648, %v1544_v13  ;;  %v1734_v2 = vor.u32 %v1733_v14, %v1732_v7  ;;  %v1740_v20 = vor.u32 %v1739_v34, %v1738_v31  ;;  %v1554_v9 = vsel %vm1552_vm8, %v1553_v40, %v1544_v13 }
 0x1e3   : > { %v1662_v19 = vsel %vm1660_vm11, %v1661_v51, %v1659_v39  ;;  %v1737_v12 = vor.u32 %v1736_v61, %v1735_v63  ;;  %v1741_v3 = vshll.u32 %v3874_v56, %v1726_v29  ;;  %vm1878_vm14 = vcmp.gt.s32.totalorder %v5025_v49, 0 }
 0x1e4   : > { %v1663_v28 = vclz %v1662_v19  ;;  %v1551_v33 = vsel %vm1549_vm7, %v1536_v36, %v1550_v25  ;;  %v1728_v15 = vshrl.u32 %v3870_v44, %v1727_v43  ;;  %vm1744_vm15 = vcmp.lt.s32.totalorder %v5027_v24, 1 }
 0x1e5   : > { %v1555_v23 = vsel %vm1548_vm9, %v1551_v33, %v1554_v9  ;;  %v1682_v30 = vsel %vm1559_vm12, %v1681_v16, %v1657_v35  ;;  %v1743_v22 = vor.u32 %v1742_v59, %v1741_v3  ;;  %vm1747_vm0 = vcmp.lt.s32.totalorder %v5027_v24, 4 }
 0x1e6   : > { %v3701_v55 = vadd.s32 4294967294, %v1663_v28  ;;  %v1556_v46 = vsel %vm1545_vm10, nan, %v1555_v23  ;;  %vm1746_vm2 = vcmp.lt.s32.totalorder %v5027_v24, 3  ;;  %v1752_v62 = vsel %vm1744_vm15, %v1731_v18, %v1734_v2 }
 0x1e7   : > { %v1753_v29 = vsel %vm1747_vm0, %v1740_v20, 920167782  ;;  %3579 = vst [vmem:[%s4272_s4 + $0x38] sm:$0xff] %v1556_v46  ;;  %vm1745_vm3 = vcmp.lt.s32.totalorder %v5027_v24, 2  ;;  %v1749_v43 = vsel %vm1747_vm0, %v1737_v12, 2102212464  ;;  %v1756_v48 = vsel %vm1744_vm15, %v1734_v2, %v1737_v12 }
 0x1e8   : > { %vm3702_vm1 = vcmp.lt.s32.totalorder %v3701_v55, 0  ;;  %v1754_v1 = vsel %vm1746_vm2, %v1737_v12, %v1753_v29  ;;  %v1684_v36 = vsel %vm5035_vm13, 0, %v1682_v30  ;;  %v1757_v5 = vsel %vm1747_vm0, %v1743_v22, 1326507024 }
 0x1e9   : > { %v1666_v6 = vsel %vm3702_vm1, 0, %v3701_v55  ;;  %v1755_v27 = vsel %vm1745_vm3, %v1752_v62, %v1754_v1  ;;  %v1758_v40 = vsel %vm1746_vm2, %v1740_v20, %v1757_v5  ;;  %v1748_v51 = vsel %vm1744_vm15, %v1728_v15, %v1731_v18 }
 0x1ea   : > { %v1667_v8 = vsub.s32 32, %v1666_v6  ;;  %v1671_v35 = vsub.s32 4294967266, %v1666_v6  ;;  %v1785_v21 = vand.u32 65535, %v1755_v27  ;;  %v1786_v54 = vshrl.u32 %v1755_v27, 16 }
 0x1eb   : > { %v1668_v14 = vshll.u32 %v1659_v39, %v1666_v6  ;;  %v1750_v7 = vsel %vm1746_vm2, %v1734_v2, %v1749_v43  ;;  %v1759_v63 = vsel %vm1745_vm3, %v1756_v48, %v1758_v40  ;;  %v1879_v33 = vsel %vm1878_vm14, %v5025_v49, 0 }
 0x1ec   : > { %v1669_v61 = vshrl.u32 %v5011_v45, %v1667_v8  ;;  %v1672_v13 = vadd.s32 127, %v1671_v35  ;;  %v1788_v31 = vmul.u32 %v1786_v54, %v5016_v4  ;;  %v1763_v39 = vand.u32 65535, %v1759_v63 }
 0x1ed   : > { %v1764_v19 = vshrl.u32 %v1759_v63, 16  ;;  %v5079_v45 = vadd.s32 3, %v1684_v36  ;;  %v1787_v16 = vmul.u32 %v1785_v21, %v5016_v4  ;;  %v1789_v59 = vmul.u32 %v1785_v21, %v5019_v38 }
 0x1ee   : > { %v1670_v34 = vor.u32 %v1669_v61, %v1668_v14  ;;  %v1673_v25 = vshll.u32 %v1672_v13, 23  ;;  %v1791_v28 = vshll.u32 %v1788_v31, 16  ;;  %v5085_v2 = vsel %vm1745_vm3, %v1748_v51, %v1750_v7 }
 0x1ef   : > { %v1766_v20 = vmul.u32 %v1764_v19, %v5016_v4  ;;  %v1767_v12 = vmul.u32 %v1763_v39, %v5019_v38  ;;  %v1790_v3 = vmul.u32 %v1786_v54, %v5019_v38  ;;  %v1765_v55 = vmul.u32 %v1763_v39, %v5016_v4 }
 0x1f0   : > { %v1674_v18 = vor.u32 4788187, %v1673_v25  ;;  %v1677_v9 = vcvt.s32.f32 %v1670_v34  ;;  %vm1795_vm4 = vc.u32 %v1787_v16, %v1791_v28  ;;  %v1768_v46 = vmul.u32 %v1764_v19, %v5019_v38 }
 0x1f1   : > { %v1769_v15 = vshll.u32 %v1766_v20, 16  ;;  %v1796_v24 = vsel %vm1795_vm4, 1, %v3869_v0  ;;  %v1793_v30 = vshll.u32 %v1789_v59, 16  ;;  %v1797_v22 = vadd.s32 %v1791_v28, %v1787_v16 }
 0x1f2   : > { %v1675_v23 = vand.u32 2147483647, %v1674_v18  ;;  %v1798_v62 = vadd.s32 %v1796_v24, %v1790_v3  ;;  %v1771_v6 = vshll.u32 %v1767_v12, 16  ;;  %v1805_v1 = vmul.u32 %v5005_v37, %v5085_v2 }
 0x1f3   : > { %vm1773_vm5 = vc.u32 %v1765_v55, %v1769_v15  ;;  %v1775_v49 = vadd.s32 %v1769_v15, %v1765_v55  ;;  %vm1799_vm6 = vc.u32 %v1797_v22, %v1793_v30  ;;  %v1881_v8 = vand.u32 31, %v1879_v33 }
 0x1f4   : > { %v1678_v29 = vmul.f32 %v1677_v9, %v1675_v23  ;;  %v1774_v43 = vsel %vm1773_vm5, 1, %v3869_v0  ;;  %v1800_v27 = vsel %vm1799_vm6, 1, %v3869_v0  ;;  %v1792_v48 = vshrl.u32 %v1788_v31, 16 }
 0x1f5   : > { %v1776_v35 = vadd.s32 %v1774_v43, %v1768_v46  ;;  %vm1777_vm7 = vc.u32 %v1775_v49, %v1771_v6  ;;  %v1802_v36 = vadd.s32 %v1800_v27, %v1798_v62  ;;  %v5101_v5 = vsub.s32 32, %v1881_v8 }
 0x1f6   : > { %v1679_v4 = vxor.u32 2147483648, %v1678_v29  ;;  %v1778_v38 = vsel %vm1777_vm7, 1, %v3869_v0  ;;  %v1770_v54 = vshrl.u32 %v1766_v20, 16  ;;  %v1794_v61 = vshrl.u32 %v1789_v59, 16 }
 0x1f7   : > { %v1780_v14 = vadd.s32 %v1778_v38, %v1776_v35  ;;  %v1772_v13 = vshrl.u32 %v1767_v12, 16  ;;  %v1803_v40 = vadd.s32 %v1802_v36, %v1792_v48  ;;  %v5108_v51 = vshrl.u32 %v1879_v33, 5 }
 0x1f8   : > { %v1680_v21 = vsel %vm1559_vm12, %v1679_v4, %v1678_v29  ;;  %v5110_v31 = vadd.s32 %v1797_v22, %v1793_v30  ;;  %v1888_v34 = vshrl.u32 %v3872_v50, %v5101_v5  ;;  %v1884_v39 = vshll.u32 %v3870_v44, %v1881_v8 }
 0x1f9   : > { %v1683_v37 = vsel %vm5035_vm13, %v4823_v26, %v1680_v21  ;;  %v1781_v63 = vadd.s32 %v1780_v14, %v1770_v54  ;;  %v1804_v25 = vadd.s32 %v1803_v40, %v1794_v61  ;;  %v1887_v19 = vshll.u32 %v3871_v47, %v1881_v8 }
 0x1fa   : > { %v1685_v7 = vmul.f32 %v1683_v37, %v1683_v37  ;;  %v1894_v60 = vshrl.u32 %v3874_v56, %v5101_v5  ;;  %v1891_v18 = vshrl.u32 %v3873_v53, %v5101_v5  ;;  %v1885_v20 = vshrl.u32 %v3871_v47, %v5101_v5 }
 0x1fb   : > { %v5118_v28 = vadd.s32 %v1781_v63, %v1772_v13  ;;  %v1808_v2 = vadd.s32 1, %v1804_v25  ;;  %v1890_v33 = vshll.u32 %v3872_v50, %v1881_v8  ;;  %v1893_v9 = vshll.u32 %v3873_v53, %v1881_v8 }
 0x1fc   : > { %v1686_v16 = vmul.f32 -0.001358992, %v1685_v7  ;;  %v1693_v59 = vmul.f32 -0.00019511016, %v1685_v7  ;;  %v5128_v23 = vor.u32 %v1888_v34, %v1887_v19  ;;  %v1896_v24 = vshll.u32 %v3874_v56, %v1881_v8 }
 0x1fd   : > { %vm1807_vm8 = vc.u32 %v5118_v28, %v5110_v31  ;;  %v1895_v15 = vor.u32 %v1894_v60, %v1893_v9  ;;  %v1897_v46 = vshrl.u32 %v3875_v58, %v5101_v5  ;;  %v1892_v29 = vor.u32 %v1891_v18, %v1890_v33 }
 0x1fe   : > { %v1687_v12 = vadd.f32 0.041655596, %v1686_v16  ;;  %v1694_v3 = vadd.f32 0.008332121, %v1693_v59  ;;  %v1809_v55 = vsel %vm1807_vm8, %v1808_v2, %v1804_v25  ;;  %v1702_v6 = vand.u32 3, %v5079_v45 }
 0x1ff   : > { %v1810_v62 = vadd.s32 %v1809_v55, %v1805_v1  ;;  %v1875_v49 = vor.u32 8388608, %v5023_v52  ;;  %v5135_v43 = vor.u32 %v1885_v20, %v1884_v39  ;;  %v1898_v4 = vor.u32 %v1897_v46, %v1896_v24 }
 0x200   : > { %v1688_v30 = vmul.f32 %v1687_v12, %v1685_v7  ;;  %v1695_v22 = vmul.f32 %v1694_v3, %v1685_v7  ;;  %vm1902_vm9 = vcmp.lt.s32.totalorder %v5108_v51, 4  ;;  %vm1899_vm10 = vcmp.lt.s32.totalorder %v5108_v51, 1 }
 0x201   : > { %v1811_v38 = vadd.s32 536870912, %v1810_v62  ;;  %vm1901_vm12 = vcmp.lt.s32.totalorder %v5108_v51, 3  ;;  %v1908_v1 = vsel %vm1902_vm9, %v1895_v15, 920167782  ;;  %v1912_v45 = vsel %vm1902_vm9, %v1898_v4, 1326507024 }
 0x202   : > { %v1689_v35 = vadd.f32 -0.4999988, %v1688_v30  ;;  %v1696_v27 = vadd.f32 -0.16666654, %v1695_v22  ;;  %v1911_v36 = vsel %vm1899_vm10, %v5128_v23, %v1892_v29  ;;  %vm1900_vm11 = vcmp.lt.s32.totalorder %v5108_v51, 2 }
 0x203   : > { %v5144_v48 = vshrl.u32 %v1811_v38, 30  ;;  %v1907_v21 = vsel %vm1899_vm10, %v5135_v43, %v5128_v23  ;;  %v1913_v54 = vsel %vm1901_vm12, %v1895_v15, %v1912_v45  ;;  %v5156_v14 = vshll.u32 %v1875_v49, 8 }
 0x204   : > { %v1690_v8 = vmul.f32 %v1689_v35, %v1685_v7  ;;  %v1697_v52 = vmul.f32 %v1696_v27, %v1685_v7  ;;  %v1909_v7 = vsel %vm1901_vm12, %v1892_v29, %v1908_v1  ;;  %v5163_v63 = vadd.f32 %v4886_v41, %v5009_v11 }
 0x205   : > { %v1813_v40 = vshll.u32 %v5144_v48, 30  ;;  %vm1700_vm13 = vweird.f32 %v4823_v26  ;;  %v1914_v34 = vsel %vm1900_vm11, %v1911_v36, %v1913_v54  ;;  %vm1707_vm14 = vcmp.eq.s32.totalorder %v1702_v6, 2 }
 0x206   : > { %v1691_v61 = vadd.f32 1.0, %v1690_v8  ;;  %v1698_v13 = vadd.f32 1.0, %v1697_v52  ;;  %v1910_v60 = vsel %vm1900_vm11, %v1907_v21, %v1909_v7  ;;  %v1916_v16 = vand.u32 65535, %v5156_v14 }
 0x207   : > { %v1814_v19 = vsub.s32 %v1810_v62, %v1813_v40  ;;  %v1918_v59 = vand.u32 65535, %v1914_v34  ;;  %v1919_v18 = vshrl.u32 %v1914_v34, 16  ;;  %v1917_v20 = vshrl.u32 %v5156_v14, 16 }
 0x208   : > { %v1699_v25 = vmul.f32 %v1698_v13, %v1683_v37  ;;  %v1708_v39 = vxor.u32 2147483648, %v1691_v61  ;;  %vm1703_vm0 = vcmp.lt.s32.totalorder %v1702_v6, 2  ;;  %vm1704_vm1 = vcmp.eq.s32.totalorder %v1702_v6, 0 }
 0x209   : > { %vm1815_vm15 = vcmp.lt.s32.totalorder %v1814_v19, 0  ;;  %v1816_v11 = vsub.s32 0, %v1814_v19  ;;  %v1921_v9 = vmul.u32 %v1919_v18, %v1916_v16  ;;  %v1922_v3 = vmul.u32 %v1918_v59, %v1917_v20 }
 0x20a   : > { %v1705_v2 = vxor.u32 2147483648, %v1699_v25  ;;  %v1709_v33 = vsel %vm1707_vm14, %v1708_v39, %v1699_v25  ;;  %v1941_v55 = vshrl.u32 %v1910_v60, 16  ;;  %v1940_v30 = vand.u32 65535, %v1910_v60 }
 0x20b   : > { %v1817_v12 = vsel %vm1815_vm15, %v1816_v11, %v1814_v19  ;;  %v1924_v46 = vshll.u32 %v1921_v9, 16  ;;  %v1883_v62 = vshrl.u32 %v3870_v44, %v5101_v5  ;;  %v1920_v49 = vmul.u32 %v1918_v59, %v1916_v16 }
 0x20c   : > { %v1706_v37 = vsel %vm1704_vm1, %v1691_v61, %v1705_v2  ;;  %v1818_v24 = vclz %v1817_v12  ;;  %v2025_v6 = vand.u32 2139095040, %v5163_v63  ;;  %v1806_v4 = vadd.s32 %v5110_v31, %v5118_v28 }
 0x20d   : > { %v1710_v15 = vsel %vm1703_vm0, %v1706_v37, %v1709_v33  ;;  %v1904_v27 = vsel %vm1902_vm9, %v1892_v29, 2102212464  ;;  %v1923_v38 = vmul.u32 %v1919_v18, %v1917_v20  ;;  %v1926_v1 = vshll.u32 %v1922_v3, 16 }
 0x20e   : > { %v1711_v22 = vsel %vm1700_vm13, nan, %v1710_v15  ;;  %v3704_v35 = vadd.s32 4294967294, %v1818_v24  ;;  %vm1928_vm2 = vc.u32 %v1920_v49, %v1924_v46  ;;  %v1930_v45 = vadd.s32 %v1924_v46, %v1920_v49 }
 0x20f   : > { %3580 = vst [vmem:[%s4272_s4 + $0x40] sm:$0xff] %v1711_v22  ;;  %v1943_v26 = vmul.u32 %v1941_v55, %v1916_v16  ;;  %v1925_v8 = vshrl.u32 %v1921_v9, 16  ;;  %v1929_v5 = vsel %vm1928_vm2, 1, %v3869_v0  ;;  %v1944_v52 = vmul.u32 %v1940_v30, %v1917_v20 }
 0x210   : > { %vm3705_vm3 = vcmp.lt.s32.totalorder %v3704_v35, 0  ;;  %v1931_v21 = vadd.s32 %v1929_v5, %v1923_v38  ;;  %vm1932_vm4 = vc.u32 %v1930_v45, %v1926_v1  ;;  %v1942_v29 = vmul.u32 %v1940_v30, %v1916_v16  ;;  %v236_v38 = vpop.permute.xlu1 %235 }
 0x211   : > { %v1821_v36 = vsel %vm3705_vm3, 0, %v3704_v35  ;;  %v1946_v54 = vshll.u32 %v1943_v26, 16  ;;  %v1933_v61 = vsel %vm1932_vm4, 1, %v3869_v0  ;;  %v1945_v7 = vmul.u32 %v1941_v55, %v1917_v20 }
 0x212   : > { %v1822_v31 = vsub.s32 32, %v1821_v36  ;;  %v1826_v28 = vsub.s32 4294967266, %v1821_v36  ;;  %v1823_v13 = vshll.u32 %v1814_v19, %v1821_v36  ;;  %v1935_v40 = vadd.s32 %v1933_v61, %v1931_v21 }
 0x213   : > { %v1948_v34 = vshll.u32 %v1944_v52, 16  ;;  %vm1950_vm5 = vc.u32 %v1942_v29, %v1946_v54  ;;  %v1952_v60 = vadd.s32 %v1946_v54, %v1942_v29  ;;  %v1836_v59 = vsub.s32 4, %v5144_v48 }
 0x214   : > { %v1824_v25 = vshrl.u32 %v1806_v4, %v1822_v31  ;;  %v1827_v39 = vadd.s32 127, %v1826_v28  ;;  %v1936_v18 = vadd.s32 %v1935_v40, %v1925_v8  ;;  %v1951_v2 = vsel %vm1950_vm5, 1, %v3869_v0 }
 0x215   : > { %v2026_v11 = vshrl.u32 %v2025_v6, 23  ;;  %v1953_v37 = vadd.s32 %v1951_v2, %v1945_v7  ;;  %vm1954_vm6 = vc.u32 %v1952_v60, %v1948_v34  ;;  %vm1714_vm7 = vcmp.lt.s32.totalorder %v4889_v10, 0 }
 0x216   : > { %v1825_v33 = vor.u32 %v1824_v25, %v1823_v13  ;;  %v1828_v9 = vshll.u32 %v1827_v39, 23  ;;  %v1927_v19 = vshrl.u32 %v1922_v3, 16  ;;  %v1955_v16 = vsel %vm1954_vm6, 1, %v3869_v0 }
 0x217   : > { %v3709_v20 = vadd.s32 4294967169, %v2026_v11  ;;  %v1903_v55 = vsel %vm1899_vm10, %v1883_v62, %v5135_v43  ;;  %v1947_v15 = vshrl.u32 %v1943_v26, 16  ;;  %v1957_v24 = vadd.s32 %v1955_v16, %v1953_v37 }
 0x218   : > { %v1829_v12 = vor.u32 4788187, %v1828_v9  ;;  %v1837_v46 = vsel %vm1714_vm7, %v1836_v59, %v5144_v48  ;;  %v1905_v30 = vsel %vm1901_vm12, %v5128_v23, %v1904_v27  ;;  %v5197_v22 = vadd.s32 %v1936_v18, %v1927_v19  ;;  %v231_v23 = vpop.permute.xlu0 %230 }
 0x219   : > { %v2032_v3 = vadd.s32 1, %v3709_v20  ;;  %v1832_v6 = vcvt.s32.f32 %v1825_v33  ;;  %v1949_v4 = vshrl.u32 %v1944_v52, 16  ;;  %v1958_v35 = vadd.s32 %v1957_v24, %v1947_v15 }
 0x21a   : > { %v1830_v49 = vand.u32 2147483647, %v1829_v12  ;;  %vm5201_vm8 = vcmp.le.f32.partialorder %v1712_v32, 0.7853982  ;;  %v5205_v62 = vadd.s32 %v1952_v60, %v1948_v34  ;;  %v2022_v48 = vand.u32 2147483647, %v5163_v63 }
 0x21b   : > { %vm2033_vm9 = vcmp.gt.s32.totalorder %v2032_v3, 0  ;;  %v1906_v1 = vsel %vm1900_vm11, %v1903_v55, %v1905_v30  ;;  %v1959_v45 = vadd.s32 %v1958_v35, %v1949_v4  ;;  %v1839_v8 = vsel %vm5201_vm8, 0, %v1837_v46 }
 0x21c   : > { %v1833_v27 = vmul.f32 %v1832_v6, %v1830_v49  ;;  %v2034_v26 = vsel %vm2033_vm9, %v2032_v3, 0  ;;  %vm1962_vm10 = vc.u32 %v5197_v22, %v5205_v62  ;;  %v286_v36 = vmul.f32 %v4858_v17, %v231_v23 }
 0x21d   : > { %v2036_v32 = vand.u32 31, %v2034_v26  ;;  %v1963_v52 = vadd.s32 1, %v1959_v45  ;;  %v5216_v21 = vmul.f32 %v4858_v17, %v236_v38  ;;  %v1960_v54 = vmul.u32 %v5156_v14, %v1906_v1 }
 0x21e   : > { %v1834_v5 = vxor.u32 2147483648, %v1833_v27  ;;  %v1856_v28 = vadd.s32 3, %v1839_v8  ;;  %v2029_v29 = vand.u32 8388607, %v2022_v48  ;;  %v5230_v17 = vshrl.u32 %v2034_v26, 5 }
 0x21f   : > { %v5219_v51 = vsub.s32 32, %v2036_v32  ;;  %v1964_v61 = vsel %vm1962_vm10, %v1963_v52, %v1959_v45  ;;  %v2039_v59 = vshll.u32 %v3870_v44, %v2036_v32  ;;  %v2042_v18 = vshll.u32 %v3871_v47, %v2036_v32 }
 0x220   : > { %v1835_v31 = vsel %vm1714_vm7, %v1834_v5, %v1833_v27  ;;  %v1965_v40 = vadd.s32 %v1964_v61, %v1960_v54  ;;  %v2048_v2 = vshll.u32 %v3873_v53, %v2036_v32  ;;  %v2045_v9 = vshll.u32 %v3872_v50, %v2036_v32 }
 0x221   : > { %v5228_v13 = vsel %vm5201_vm8, %v4889_v10, %v1835_v31  ;;  %v2040_v14 = vshrl.u32 %v3871_v47, %v5219_v51  ;;  %v2043_v34 = vshrl.u32 %v3872_v50, %v5219_v51  ;;  %v2046_v25 = vshrl.u32 %v3873_v53, %v5219_v51 }
 0x222   : > { %v1840_v7 = vmul.f32 %v5228_v13, %v5228_v13  ;;  %v2049_v39 = vshrl.u32 %v3874_v56, %v5219_v51  ;;  %v1966_v60 = vadd.s32 536870912, %v1965_v40  ;;  %v2052_v37 = vshrl.u32 %v3875_v58, %v5219_v51 }
 0x223   : > { %v2041_v16 = vor.u32 %v2040_v14, %v2039_v59  ;;  %v2051_v12 = vshll.u32 %v3874_v56, %v2036_v32  ;;  %v5251_v24 = vor.u32 %v2043_v34, %v2042_v18  ;;  %v5253_v46 = vor.u32 %v2046_v25, %v2045_v9 }
 0x224   : > { %v1841_v11 = vmul.f32 -0.001358992, %v1840_v7  ;;  %v1848_v33 = vmul.f32 -0.00019511016, %v1840_v7  ;;  %v5248_v19 = vshrl.u32 %v1966_v60, 30  ;;  %v2050_v20 = vor.u32 %v2049_v39, %v2048_v2 }
 0x225   : > { %v5256_v30 = vadd.f32 %v4886_v41, %v286_v36  ;;  %v1857_v3 = vand.u32 3, %v1856_v28  ;;  %v2030_v6 = vor.u32 8388608, %v2029_v29  ;;  %v2053_v43 = vor.u32 %v2052_v37, %v2051_v12 }
 0x226   : > { %v1842_v55 = vadd.f32 0.041655596, %v1841_v11  ;;  %v1849_v15 = vadd.f32 0.008332121, %v1848_v33  ;;  %v1968_v49 = vshll.u32 %v5248_v19, 30  ;;  %vm2057_vm12 = vcmp.lt.s32.totalorder %v5230_v17, 4 }
 0x227   : > { %vm2054_vm11 = vcmp.lt.s32.totalorder %v5230_v17, 1  ;;  %vm2056_vm13 = vcmp.lt.s32.totalorder %v5230_v17, 3  ;;  %v2063_v23 = vsel %vm2057_vm12, %v2050_v20, 920167782  ;;  %vm1859_vm14 = vcmp.eq.s32.totalorder %v1857_v3, 0 }
 0x228   : > { %v1843_v4 = vmul.f32 %v1842_v55, %v1840_v7  ;;  %v1850_v35 = vmul.f32 %v1849_v15, %v1840_v7  ;;  %v5260_v38 = vsub.s32 %v1965_v40, %v1968_v49  ;;  %v2062_v1 = vsel %vm2054_vm11, %v2041_v16, %v5251_v24 }
 0x229   : > { %v2064_v45 = vsel %vm2056_vm13, %v5253_v46, %v2063_v23  ;;  %vm2055_vm0 = vcmp.lt.s32.totalorder %v5230_v17, 2  ;;  %v5275_v8 = vshll.u32 %v2030_v6, 8  ;;  %vm1858_vm1 = vcmp.lt.s32.totalorder %v1857_v3, 2 }
 0x22a   : > { %v1844_v41 = vadd.f32 -0.4999988, %v1843_v4  ;;  %v1851_v27 = vadd.f32 -0.16666654, %v1850_v35  ;;  %vm1970_vm15 = vcmp.lt.s32.totalorder %v5260_v38, 0  ;;  %v1971_v26 = vsub.s32 0, %v5260_v38 }
 0x22b   : > { %v2066_v52 = vsel %vm2054_vm11, %v5251_v24, %v5253_v46  ;;  %v2067_v36 = vsel %vm2057_vm12, %v2053_v43, 1326507024  ;;  %vm1855_vm2 = vweird.f32 %v4889_v10  ;;  %vm1862_vm3 = vcmp.eq.s32.totalorder %v1857_v3, 2 }
 0x22c   : > { %v1845_v32 = vmul.f32 %v1844_v41, %v1840_v7  ;;  %v1852_v5 = vmul.f32 %v1851_v27, %v1840_v7  ;;  %v1972_v54 = vsel %vm1970_vm15, %v1971_v26, %v5260_v38  ;;  %v2065_v31 = vsel %vm2055_vm0, %v2062_v1, %v2064_v45 }
 0x22d   : > { %v2068_v28 = vsel %vm2056_vm13, %v2050_v20, %v2067_v36  ;;  %v1973_v40 = vclz %v1972_v54  ;;  %v2038_v7 = vshrl.u32 %v3870_v44, %v5219_v51  ;;  %v2071_v34 = vand.u32 65535, %v5275_v8 }
 0x22e   : > { %v1846_v61 = vadd.f32 1.0, %v1845_v32  ;;  %v1853_v29 = vadd.f32 1.0, %v1852_v5  ;;  %v2069_v14 = vsel %vm2055_vm0, %v2066_v52, %v2068_v28  ;;  %v2072_v25 = vshrl.u32 %v5275_v8, 16 }
 0x22f   : > { %v2073_v39 = vand.u32 65535, %v2069_v14  ;;  %v3707_v18 = vadd.s32 4294967294, %v1973_v40  ;;  %v2074_v2 = vshrl.u32 %v2069_v14, 16  ;;  %v1961_v11 = vadd.s32 %v5205_v62, %v5197_v22 }
 0x230   : > { %v1854_v60 = vmul.f32 %v1853_v29, %v5228_v13  ;;  %v1863_v59 = vxor.u32 2147483648, %v1846_v61  ;;  %v1991_v33 = vsub.s32 4, %v5248_v19  ;;  %v2096_v37 = vshrl.u32 %v2065_v31, 16 }
 0x231   : > { %v5299_v9 = vmul.u32 %v2073_v39, %v2072_v25  ;;  %vm3708_vm4 = vcmp.lt.s32.totalorder %v3707_v18, 0  ;;  %v5303_v51 = vsel %vm2054_vm11, %v2038_v7, %v2041_v16  ;;  %v2076_v12 = vmul.u32 %v2074_v2, %v2071_v34 }
 0x232   : > { %v1860_v20 = vxor.u32 2147483648, %v1854_v60  ;;  %v1864_v13 = vsel %vm1862_vm3, %v1863_v59, %v1854_v60  ;;  %v1976_v55 = vsel %vm3708_vm4, 0, %v3707_v18  ;;  %v2075_v15 = vmul.u32 %v2073_v39, %v2071_v34 }
 0x233   : > { %v2095_v49 = vand.u32 65535, %v2065_v31  ;;  %v1977_v22 = vsub.s32 32, %v1976_v55  ;;  %v1981_v62 = vsub.s32 4294967266, %v1976_v55  ;;  %v2078_v4 = vmul.u32 %v2074_v2, %v2072_v25 }
 0x234   : > { %v1861_v6 = vsel %vm1859_vm14, %v1846_v61, %v1860_v20  ;;  %vm1869_vm5 = vcmp.lt.s32.totalorder %v4892_v42, 0  ;;  %v2079_v43 = vshll.u32 %v2076_v12, 16  ;;  %v2081_v16 = vshll.u32 %v5299_v9, 16 }
 0x235   : > { %v1865_v35 = vsel %vm1858_vm1, %v1861_v6, %v1864_v13  ;;  %v2098_v23 = vmul.u32 %v2096_v37, %v2071_v34  ;;  %v1978_v27 = vshll.u32 %v5260_v38, %v1976_v55  ;;  %v1979_v1 = vshrl.u32 %v1961_v11, %v1977_v22 }
 0x236   : > { %v1866_v41 = vsel %vm1855_vm2, nan, %v1865_v35  ;;  %v1982_v45 = vadd.s32 127, %v1981_v62  ;;  %vm2083_vm6 = vc.u32 %v2075_v15, %v2079_v43  ;;  %v2085_v26 = vadd.s32 %v2079_v43, %v2075_v15 }
 0x237   : > { %v2099_v32 = vmul.u32 %v2095_v49, %v2072_v25  ;;  %v2101_v5 = vshll.u32 %v2098_v23, 16  ;;  %3581 = vst [vmem:[%s4272_s4 + $0x48] sm:$0xff] %v1866_v41  ;;  %v1980_v3 = vor.u32 %v1979_v1, %v1978_v27  ;;  %v2084_v36 = vsel %vm2083_vm6, 1, %v3869_v0 }
 0x238   : > { %v1983_v52 = vshll.u32 %v1982_v45, 23  ;;  %v2097_v54 = vmul.u32 %v2095_v49, %v2071_v34  ;;  %v2059_v31 = vsel %vm2057_vm12, %v5253_v46, 2102212464  ;;  %v2080_v10 = vshrl.u32 %v2076_v12, 16 }
 0x239   : > { %v2086_v28 = vadd.s32 %v2084_v36, %v2078_v4  ;;  %vm2087_vm7 = vc.u32 %v2085_v26, %v2081_v16  ;;  %v2100_v29 = vmul.u32 %v2096_v37, %v2072_v25  ;;  %v2103_v14 = vshll.u32 %v2099_v32, 16  ;;  %v5343_v4 = vld [vmem:[%s6389_s1 + $0x1] ss:$0 sm:$0xff] }
 0x23a   : > { %v1984_v38 = vor.u32 4788187, %v1983_v52  ;;  %v2088_v61 = vsel %vm2087_vm7, 1, %v3869_v0  ;;  %vm2105_vm8 = vc.u32 %v2097_v54, %v2101_v5  ;;  %v2107_v39 = vadd.s32 %v2101_v5, %v2097_v54 }
 0x23b   : > { %v2090_v40 = vadd.s32 %v2088_v61, %v2086_v28  ;;  %v2106_v7 = vsel %vm2105_vm8, 1, %v3869_v0  ;;  %v1987_v59 = vcvt.s32.f32 %v1980_v3  ;;  %v2177_v18 = vand.u32 2147483647, %v5256_v30 }
 0x23c   : > { %v1985_v60 = vand.u32 2147483647, %v1984_v38  ;;  %v2108_v34 = vadd.s32 %v2106_v7, %v2100_v29  ;;  %v2060_v46 = vsel %vm2056_vm13, %v5251_v24, %v2059_v31  ;;  %vm2109_vm9 = vc.u32 %v2107_v39, %v2103_v14 }
 0x23d   : > { %v2091_v2 = vadd.s32 %v2090_v40, %v2080_v10  ;;  %v2180_v11 = vand.u32 2139095040, %v5256_v30  ;;  %v1992_v37 = vsel %vm1869_vm5, %v1991_v33, %v5248_v19  ;;  %v2082_v20 = vshrl.u32 %v5299_v9, 16 }
 0x23e   : > { %v1988_v25 = vmul.f32 %v1987_v59, %v1985_v60  ;;  %v2110_v12 = vsel %vm2109_vm9, 1, %v3869_v0  ;;  %v2102_v13 = vshrl.u32 %v2098_v23, 16  ;;  %v2184_v49 = vand.u32 8388607, %v2177_v18 }
 0x23f   : > { %v2112_v55 = vadd.s32 %v2110_v12, %v2108_v34  ;;  %v2181_v15 = vshrl.u32 %v2180_v11, 23  ;;  %vm5334_vm10 = vcmp.le.f32.partialorder %v1867_v57, 0.7853982  ;;  %v2092_v22 = vadd.s32 %v2091_v2, %v2082_v20 }
 0x240   : > { %v1989_v6 = vxor.u32 2147483648, %v1988_v25  ;;  %v1994_v19 = vsel %vm5334_vm10, 0, %v1992_v37  ;;  %v2104_v33 = vshrl.u32 %v2099_v32, 16  ;;  %v5347_v35 = vadd.f32 %v5343_v4, %v5216_v21 }
 0x241   : > { %v2113_v9 = vadd.s32 %v2112_v55, %v2102_v13  ;;  %v3712_v62 = vadd.s32 4294967169, %v2181_v15  ;;  %v2061_v43 = vsel %vm2055_vm0, %v5303_v51, %v2060_v46  ;;  %v2111_v16 = vadd.s32 %v2107_v39, %v2103_v14 }
 0x242   : > { %v1990_v57 = vsel %vm1869_vm5, %v1989_v6, %v1988_v25  ;;  %v2185_v27 = vor.u32 8388608, %v2184_v49  ;;  %v2011_v26 = vadd.s32 3, %v1994_v19  ;;  %v2115_v3 = vmul.u32 %v5275_v8, %v2061_v43 }
 0x243   : > { %v1993_v23 = vsel %vm5334_vm10, %v4892_v42, %v1990_v57  ;;  %v2114_v41 = vadd.s32 %v2113_v9, %v2104_v33  ;;  %v2187_v1 = vadd.s32 1, %v3712_v62  ;;  %vm2117_vm12 = vc.u32 %v2092_v22, %v2111_v16 }
 0x244   : > { %v1995_v45 = vmul.f32 %v1993_v23, %v1993_v23  ;;  %v5358_v36 = vshll.u32 %v2185_v27, 8  ;;  %v2335_v54 = vand.u32 2139095040, %v5347_v35  ;;  %v2012_v28 = vand.u32 3, %v2011_v26 }
 0x245   : > { %v2118_v21 = vadd.s32 1, %v2114_v41  ;;  %vm2188_vm11 = vcmp.gt.s32.totalorder %v2187_v1, 0  ;;  %v2332_v7 = vand.u32 2147483647, %v5347_v35  ;;  %v5362_v39 = vadd.s32 %v2111_v16, %v2092_v22 }
 0x246   : > { %v1996_v32 = vmul.f32 -0.001358992, %v1995_v45  ;;  %v2003_v5 = vmul.f32 -0.00019511016, %v1995_v45  ;;  %v2189_v52 = vsel %vm2188_vm11, %v2187_v1, 0  ;;  %v5367_v60 = vand.u32 65535, %v5358_v36 }
 0x247   : > { %v2119_v17 = vsel %vm2117_vm12, %v2118_v21, %v2114_v41  ;;  %v2191_v51 = vand.u32 31, %v2189_v52  ;;  %v5364_v8 = vshrl.u32 %v2189_v52, 5  ;;  %v2336_v59 = vshrl.u32 %v2335_v54, 23 }
 0x248   : > { %v1997_v31 = vadd.f32 0.041655596, %v1996_v32  ;;  %v2004_v10 = vadd.f32 0.008332121, %v2003_v5  ;;  %v2120_v38 = vadd.s32 %v2119_v17, %v2115_v3  ;;  %vm2017_vm13 = vcmp.eq.s32.totalorder %v2012_v28, 2 }
 0x249   : > { %v2192_v61 = vsub.s32 32, %v2191_v51  ;;  %vm2014_vm14 = vcmp.eq.s32.totalorder %v2012_v28, 0  ;;  %v2194_v25 = vshll.u32 %v3870_v44, %v2191_v51  ;;  %vm2013_vm15 = vcmp.lt.s32.totalorder %v2012_v28, 2 }
 0x24a   : > { %v1998_v29 = vmul.f32 %v1997_v31, %v1995_v45  ;;  %v2005_v40 = vmul.f32 %v2004_v10, %v1995_v45  ;;  %v2121_v14 = vadd.s32 536870912, %v2120_v38  ;;  %v2197_v49 = vshll.u32 %v3871_v47, %v2191_v51 }
 0x24b   : > { %v2195_v11 = vshrl.u32 %v3871_v47, %v2192_v61  ;;  %v2198_v37 = vshrl.u32 %v3872_v50, %v2192_v61  ;;  %v2201_v20 = vshrl.u32 %v3873_v53, %v2192_v61  ;;  %v2204_v12 = vshrl.u32 %v3874_v56, %v2192_v61 }
 0x24c   : > { %v1999_v34 = vadd.f32 -0.4999988, %v1998_v29  ;;  %v2006_v46 = vadd.f32 -0.16666654, %v2005_v40  ;;  %v5369_v2 = vshrl.u32 %v2121_v14, 30  ;;  %vm2010_vm0 = vweird.f32 %v4892_v42 }
 0x24d   : > { %v2200_v24 = vshll.u32 %v3872_v50, %v2191_v51  ;;  %v2203_v6 = vshll.u32 %v3873_v53, %v2191_v51  ;;  %v2206_v22 = vshll.u32 %v3874_v56, %v2191_v51  ;;  %v2207_v19 = vshrl.u32 %v3875_v58, %v2192_v61 }
 0x24e   : > { %v2000_v13 = vmul.f32 %v1999_v34, %v1995_v45  ;;  %v2007_v55 = vmul.f32 %v2006_v46, %v1995_v45  ;;  %v2123_v15 = vshll.u32 %v5369_v2, 30  ;;  %v2196_v57 = vor.u32 %v2195_v11, %v2194_v25 }
 0x24f   : > { %v2199_v43 = vor.u32 %v2198_v37, %v2197_v49  ;;  %v2202_v16 = vor.u32 %v2201_v20, %v2200_v24  ;;  %v2205_v41 = vor.u32 %v2204_v12, %v2203_v6  ;;  %v2208_v27 = vor.u32 %v2207_v19, %v2206_v22 }
 0x250   : > { %v2001_v33 = vadd.f32 1.0, %v2000_v13  ;;  %v2008_v9 = vadd.f32 1.0, %v2007_v55  ;;  %v2124_v62 = vsub.s32 %v2120_v38, %v2123_v15  ;;  %vm2024_vm2 = vcmp.lt.s32.totalorder %v5163_v63, 0 }
 0x251   : > { %v2193_v21 = vshrl.u32 %v3870_v44, %v2192_v61  ;;  %vm2209_vm3 = vcmp.lt.s32.totalorder %v5364_v8, 1  ;;  %v2227_v32 = vshrl.u32 %v5358_v36, 16  ;;  %v3715_v5 = vadd.s32 4294967169, %v2336_v59 }
 0x252   : > { %v2009_v1 = vmul.f32 %v2008_v9, %v1993_v23  ;;  %v2018_v45 = vxor.u32 2147483648, %v2001_v33  ;;  %vm2125_vm1 = vcmp.lt.s32.totalorder %v2124_v62, 0  ;;  %v2126_v26 = vsub.s32 0, %v2124_v62 }
 0x253   : > { %vm2211_vm4 = vcmp.lt.s32.totalorder %v5364_v8, 3  ;;  %vm2212_vm5 = vcmp.lt.s32.totalorder %v5364_v8, 4  ;;  %v2217_v51 = vsel %vm2209_vm3, %v2196_v57, %v2199_v43  ;;  %v2221_v38 = vsel %vm2209_vm3, %v2199_v43, %v2202_v16 }
 0x254   : > { %v2015_v3 = vxor.u32 2147483648, %v2009_v1  ;;  %v2127_v52 = vsel %vm2125_vm1, %v2126_v26, %v2124_v62  ;;  %v2019_v23 = vsel %vm2017_vm13, %v2018_v45, %v2009_v1  ;;  %v2218_v54 = vsel %vm2212_vm5, %v2205_v41, 920167782 }
 0x255   : > { %v2128_v17 = vclz %v2127_v52  ;;  %v2219_v10 = vsel %vm2211_vm4, %v2202_v16, %v2218_v54  ;;  %v2222_v61 = vsel %vm2212_vm5, %v2208_v27, 1326507024  ;;  %v2146_v14 = vsub.s32 4, %v5369_v2 }
 0x256   : > { %v2016_v31 = vsel %vm2014_vm14, %v2001_v33, %v2015_v3  ;;  %vm2210_vm6 = vcmp.lt.s32.totalorder %v5364_v8, 2  ;;  %v2214_v34 = vsel %vm2212_vm5, %v2202_v16, 2102212464  ;;  %v2223_v11 = vsel %vm2211_vm4, %v2205_v41, %v2222_v61 }
 0x257   : > { %v2020_v29 = vsel %vm2013_vm15, %v2016_v31, %v2019_v23  ;;  %v3710_v40 = vadd.s32 4294967294, %v2128_v17  ;;  %v2220_v46 = vsel %vm2210_vm6, %v2217_v51, %v2219_v10  ;;  %v2224_v28 = vsel %vm2210_vm6, %v2221_v38, %v2223_v11 }
 0x258   : > { %v2021_v59 = vsel %vm2010_vm0, nan, %v2020_v29  ;;  %v2250_v25 = vand.u32 65535, %v2220_v46  ;;  %v2251_v37 = vshrl.u32 %v2220_v46, 16  ;;  %v2228_v12 = vand.u32 65535, %v2224_v28 }
 0x259   : > { %vm3711_vm7 = vcmp.lt.s32.totalorder %v3710_v40, 0  ;;  %3582 = vst [vmem:[%s4272_s4 + $0x50] sm:$0xff] %v2021_v59  ;;  %v2229_v13 = vshrl.u32 %v2224_v28, 16  ;;  %v2342_v55 = vadd.s32 1, %v3715_v5  ;;  %v2213_v49 = vsel %vm2209_vm3, %v2193_v21, %v2196_v57 }
 0x25a   : > { %v2131_v20 = vsel %vm3711_vm7, 0, %v3710_v40  ;;  %v2215_v24 = vsel %vm2211_vm4, %v2199_v43, %v2214_v34  ;;  %v5416_v22 = vsel %vm2024_vm2, %v2146_v14, %v5369_v2  ;;  %v2232_v33 = vmul.u32 %v2228_v12, %v2227_v32 }
 0x25b   : > { %v2132_v42 = vsub.s32 32, %v2131_v20  ;;  %v2136_v15 = vsub.s32 4294967266, %v2131_v20  ;;  %v2133_v6 = vshll.u32 %v2124_v62, %v2131_v20  ;;  %v2231_v19 = vmul.u32 %v2229_v13, %v5367_v60 }
 0x25c   : > { %v2253_v41 = vmul.u32 %v2251_v37, %v5367_v60  ;;  %v2254_v27 = vmul.u32 %v2250_v25, %v2227_v32  ;;  %vm5423_vm8 = vcmp.le.f32.partialorder %v2022_v48, 0.7853982  ;;  %v5429_v62 = vsel %vm2210_vm6, %v2213_v49, %v2215_v24 }
 0x25d   : > { %v2134_v9 = vshrl.u32 %v5362_v39, %v2132_v42  ;;  %v2137_v16 = vadd.s32 127, %v2136_v15  ;;  %v2230_v2 = vmul.u32 %v2228_v12, %v5367_v60  ;;  %v2234_v43 = vshll.u32 %v2231_v19, 16 }
 0x25e   : > { %v2252_v1 = vmul.u32 %v2250_v25, %v5367_v60  ;;  %v2233_v26 = vmul.u32 %v2229_v13, %v2227_v32  ;;  %v2256_v21 = vshll.u32 %v2253_v41, 16  ;;  %v2236_v5 = vshll.u32 %v2232_v33, 16 }
 0x25f   : > { %v2135_v39 = vor.u32 %v2134_v9, %v2133_v6  ;;  %v2138_v45 = vshll.u32 %v2137_v16, 23  ;;  %vm2238_vm9 = vc.u32 %v2230_v2, %v2234_v43  ;;  %v2240_v3 = vadd.s32 %v2234_v43, %v2230_v2  ;;  %v241_v43 = vpop.permute.xlu2 %240 }
 0x260   : > { %v2255_v48 = vmul.u32 %v2251_v37, %v2227_v32  ;;  %v2239_v17 = vsel %vm2238_vm9, 1, %v3869_v0  ;;  %v2258_v8 = vshll.u32 %v2254_v27, 16  ;;  %vm2260_vm12 = vc.u32 %v2252_v1, %v2256_v21 }
 0x261   : > { %v2139_v52 = vor.u32 4788187, %v2138_v45  ;;  %v2142_v23 = vcvt.s32.f32 %v2135_v39  ;;  %v2241_v51 = vadd.s32 %v2239_v17, %v2233_v26  ;;  %vm2242_vm10 = vc.u32 %v2240_v3, %v2236_v5 }
 0x262   : > { %v2262_v54 = vadd.s32 %v2256_v21, %v2252_v1  ;;  %v2243_v60 = vsel %vm2242_vm10, 1, %v3869_v0  ;;  %v2261_v10 = vsel %vm2260_vm12, 1, %v3869_v0  ;;  %vm2343_vm11 = vcmp.gt.s32.totalorder %v2342_v55, 0 }
 0x263   : > { %v2140_v31 = vand.u32 2147483647, %v2139_v52  ;;  %v2235_v38 = vshrl.u32 %v2231_v19, 16  ;;  %v2245_v61 = vadd.s32 %v2243_v60, %v2241_v51  ;;  %v2263_v29 = vadd.s32 %v2261_v10, %v2255_v48  ;;  %v5481_v51 = vld [vmem:[%s6389_s1] ss:$0 sm:$0xff] }
 0x264   : > { %vm2264_vm13 = vc.u32 %v2262_v54, %v2258_v8  ;;  %v2237_v40 = vshrl.u32 %v2232_v33, 16  ;;  %v2344_v59 = vsel %vm2343_vm11, %v2342_v55, 0  ;;  %v2257_v46 = vshrl.u32 %v2253_v41, 16 }
 0x265   : > { %v2143_v32 = vmul.f32 %v2142_v23, %v2140_v31  ;;  %v2265_v14 = vsel %vm2264_vm13, 1, %v3869_v0  ;;  %v2246_v34 = vadd.s32 %v2245_v61, %v2235_v38  ;;  %v2346_v28 = vand.u32 31, %v2344_v59 }
 0x266   : > { %v2267_v11 = vadd.s32 %v2265_v14, %v2263_v29  ;;  %v2149_v37 = vsel %vm5423_vm8, 0, %v5416_v22  ;;  %v2339_v20 = vand.u32 8388607, %v2332_v7  ;;  %v2259_v13 = vshrl.u32 %v2254_v27, 16 }
 0x267   : > { %v2144_v25 = vxor.u32 2147483648, %v2143_v32  ;;  %v5442_v12 = vadd.s32 %v2246_v34, %v2237_v40  ;;  %v5444_v15 = vsub.s32 32, %v2346_v28  ;;  %v5448_v49 = vadd.s32 %v2262_v54, %v2258_v8 }
 0x268   : > { %v2268_v42 = vadd.s32 %v2267_v11, %v2257_v46  ;;  %v2270_v24 = vmul.u32 %v5358_v36, %v5429_v62  ;;  %v5452_v6 = vshrl.u32 %v2344_v59, 5  ;;  %v2349_v33 = vshll.u32 %v3870_v44, %v2346_v28 }
 0x269   : > { %v2145_v55 = vsel %vm2024_vm2, %v2144_v25, %v2143_v32  ;;  %v2352_v9 = vshll.u32 %v3871_v47, %v2346_v28  ;;  %vm2272_vm14 = vc.u32 %v5442_v12, %v5448_v49  ;;  %v2350_v41 = vshrl.u32 %v3871_v47, %v5444_v15 }
 0x26a   : > { %v2148_v22 = vsel %vm5423_vm8, %v5163_v63, %v2145_v55  ;;  %v2269_v19 = vadd.s32 %v2268_v42, %v2259_v13  ;;  %v2353_v36 = vshrl.u32 %v3872_v50, %v5444_v15  ;;  %v2356_v57 = vshrl.u32 %v3873_v53, %v5444_v15 }
 0x26b   : > { %v2150_v16 = vmul.f32 %v2148_v22, %v2148_v22  ;;  %v2358_v62 = vshll.u32 %v3873_v53, %v2346_v28  ;;  %v2359_v2 = vshrl.u32 %v3874_v56, %v5444_v15  ;;  %v2355_v45 = vshll.u32 %v3872_v50, %v2346_v28 }
 0x26c   : > { %v2273_v27 = vadd.s32 1, %v2269_v19  ;;  %v2361_v26 = vshll.u32 %v3874_v56, %v2346_v28  ;;  %v5472_v5 = vor.u32 %v2350_v41, %v2349_v33  ;;  %v2362_v48 = vshrl.u32 %v3875_v58, %v5444_v15 }
 0x26d   : > { %v2151_v1 = vmul.f32 -0.001358992, %v2150_v16  ;;  %v2158_v39 = vmul.f32 -0.00019511016, %v2150_v16  ;;  %v2360_v3 = vor.u32 %v2359_v2, %v2358_v62  ;;  %v5476_v8 = vor.u32 %v2353_v36, %v2352_v9 }
 0x26e   : > { %v2274_v21 = vsel %vm2272_vm14, %v2273_v27, %v2269_v19  ;;  %v288_v54 = vmul.f32 %v5481_v51, %v241_v43  ;;  %v2166_v31 = vadd.s32 3, %v2149_v37  ;;  %v5484_v60 = vor.u32 %v2356_v57, %v2355_v45 }
 0x26f   : > { %v2152_v52 = vadd.f32 0.041655596, %v2151_v1  ;;  %v2159_v23 = vadd.f32 0.008332121, %v2158_v39  ;;  %v2275_v17 = vadd.s32 %v2274_v21, %v2270_v24  ;;  %v2363_v10 = vor.u32 %v2362_v48, %v2361_v26 }
 0x270   : > { %vm2367_vm15 = vcmp.lt.s32.totalorder %v5452_v6, 4  ;;  %v2340_v32 = vor.u32 8388608, %v2339_v20  ;;  %vm2364_vm0 = vcmp.lt.s32.totalorder %v5452_v6, 1  ;;  %vm2366_vm1 = vcmp.lt.s32.totalorder %v5452_v6, 3 }
 0x271   : > { %v2153_v38 = vmul.f32 %v2152_v52, %v2150_v16  ;;  %v2160_v61 = vmul.f32 %v2159_v23, %v2150_v16  ;;  %v2276_v29 = vadd.s32 536870912, %v2275_v17  ;;  %v2373_v40 = vsel %vm2367_vm15, %v2360_v3, 920167782 }
 0x272   : > { %v2372_v46 = vsel %vm2364_vm0, %v5472_v5, %v5476_v8  ;;  %v2167_v11 = vand.u32 3, %v2166_v31  ;;  %vm2365_vm2 = vcmp.lt.s32.totalorder %v5452_v6, 2  ;;  %v2374_v28 = vsel %vm2366_vm1, %v5484_v60, %v2373_v40 }
 0x273   : > { %v2154_v14 = vadd.f32 -0.4999988, %v2153_v38  ;;  %v2161_v59 = vadd.f32 -0.16666654, %v2160_v61  ;;  %v5491_v34 = vshrl.u32 %v2276_v29, 30  ;;  %v2376_v42 = vsel %vm2364_vm0, %v5476_v8, %v5484_v60 }
 0x274   : > { %v2377_v25 = vsel %vm2367_vm15, %v2363_v10, 1326507024  ;;  %v2375_v55 = vsel %vm2365_vm2, %v2372_v46, %v2374_v28  ;;  %v5512_v19 = vshll.u32 %v2340_v32, 8  ;;  %v5515_v33 = vadd.f32 %v5343_v4, %v288_v54 }
 0x275   : > { %v2155_v37 = vmul.f32 %v2154_v14, %v2150_v16  ;;  %v2162_v20 = vmul.f32 %v2161_v59, %v2150_v16  ;;  %v2278_v13 = vshll.u32 %v5491_v34, 30  ;;  %v2378_v24 = vsel %vm2366_vm1, %v2360_v3, %v2377_v25 }
 0x276   : > { %vm2165_vm3 = vweird.f32 %v5163_v63  ;;  %vm2168_vm4 = vcmp.lt.s32.totalorder %v2167_v11, 2  ;;  %v2379_v36 = vsel %vm2365_vm2, %v2376_v42, %v2378_v24  ;;  %v2406_v27 = vshrl.u32 %v2375_v55, 16 }
 0x277   : > { %v2156_v9 = vadd.f32 1.0, %v2155_v37  ;;  %v2163_v16 = vadd.f32 1.0, %v2162_v20  ;;  %v2279_v41 = vsub.s32 %v2275_v17, %v2278_v13  ;;  %vm2169_vm6 = vcmp.eq.s32.totalorder %v2167_v11, 0 }
 0x278   : > { %v2381_v43 = vand.u32 65535, %v5512_v19  ;;  %v2383_v1 = vand.u32 65535, %v2379_v36  ;;  %v2384_v39 = vshrl.u32 %v2379_v36, 16  ;;  %v2382_v21 = vshrl.u32 %v5512_v19, 16 }
 0x279   : > { %v2164_v57 = vmul.f32 %v2163_v16, %v2148_v22  ;;  %v2173_v62 = vxor.u32 2147483648, %v2156_v9  ;;  %vm2280_vm5 = vcmp.lt.s32.totalorder %v2279_v41, 0  ;;  %v2281_v2 = vsub.s32 0, %v2279_v41 }
 0x27a   : > { %v2405_v3 = vand.u32 65535, %v2375_v55  ;;  %vm2172_vm7 = vcmp.eq.s32.totalorder %v2167_v11, 2  ;;  %v2271_v48 = vadd.s32 %v5448_v49, %v5442_v12  ;;  %v2386_v23 = vmul.u32 %v2384_v39, %v2381_v43 }
 0x27b   : > { %v2170_v45 = vxor.u32 2147483648, %v2164_v57  ;;  %v2282_v26 = vsel %vm2280_vm5, %v2281_v2, %v2279_v41  ;;  %v2174_v17 = vsel %vm2172_vm7, %v2173_v62, %v2164_v57  ;;  %v2387_v54 = vmul.u32 %v2383_v1, %v2382_v21 }
 0x27c   : > { %v2283_v52 = vclz %v2282_v26  ;;  %v2408_v31 = vmul.u32 %v2406_v27, %v2381_v43  ;;  %v2348_v61 = vshrl.u32 %v3870_v44, %v5444_v15  ;;  %v2490_v29 = vand.u32 2139095040, %v5515_v33 }
 0x27d   : > { %v2171_v22 = vsel %vm2169_vm6, %v2156_v9, %v2170_v45  ;;  %v2385_v40 = vmul.u32 %v2383_v1, %v2381_v43  ;;  %v2389_v12 = vshll.u32 %v2386_v23, 16  ;;  %v2407_v49 = vmul.u32 %v2405_v3, %v2381_v43 }
 0x27e   : > { %v2175_v10 = vsel %vm2168_vm4, %v2171_v22, %v2174_v17  ;;  %v3713_v38 = vadd.s32 4294967294, %v2283_v52  ;;  %v2388_v14 = vmul.u32 %v2384_v39, %v2382_v21  ;;  %v2391_v59 = vshll.u32 %v2387_v54, 16 }
 0x27f   : > { %v2176_v32 = vsel %vm2165_vm3, nan, %v2175_v10  ;;  %v2409_v46 = vmul.u32 %v2405_v3, %v2382_v21  ;;  %vm2393_vm9 = vc.u32 %v2385_v40, %v2389_v12  ;;  %v2395_v11 = vadd.s32 %v2389_v12, %v2385_v40 }
 0x280   : > { %vm3714_vm8 = vcmp.lt.s32.totalorder %v3713_v38, 0  ;;  %3583 = vst [vmem:[%s4272_s4 + $0x58] sm:$0xff] %v2176_v32  ;;  %v2411_v25 = vshll.u32 %v2408_v31, 16  ;;  %vm2179_vm10 = vcmp.lt.s32.totalorder %v5256_v30, 0  ;;  %v2390_v20 = vshrl.u32 %v2386_v23, 16 }
 0x281   : > { %v2286_v28 = vsel %vm3714_vm8, 0, %v3713_v38  ;;  %v2394_v63 = vsel %vm2393_vm9, 1, %v3869_v0  ;;  %vm2397_vm12 = vc.u32 %v2395_v11, %v2391_v59  ;;  %v2410_v55 = vmul.u32 %v2406_v27, %v2382_v21 }
 0x282   : > { %v2287_v15 = vsub.s32 32, %v2286_v28  ;;  %v2291_v37 = vsub.s32 4294967266, %v2286_v28  ;;  %v2288_v13 = vshll.u32 %v2279_v41, %v2286_v28  ;;  %v2396_v42 = vadd.s32 %v2394_v63, %v2388_v14 }
 0x283   : > { %v2398_v16 = vsel %vm2397_vm12, 1, %v3869_v0  ;;  %v2413_v36 = vshll.u32 %v2409_v46, 16  ;;  %vm2415_vm11 = vc.u32 %v2407_v49, %v2411_v25  ;;  %v2417_v62 = vadd.s32 %v2411_v25, %v2407_v49  ;;  %v251_v49 = vpop.permute.xlu1 %250 }
 0x284   : > { %v2289_v24 = vshrl.u32 %v2271_v48, %v2287_v15  ;;  %v2292_v9 = vadd.s32 127, %v2291_v37  ;;  %v2400_v57 = vadd.s32 %v2398_v16, %v2396_v42  ;;  %v2491_v2 = vshrl.u32 %v2490_v29, 23 }
 0x285   : > { %v2369_v39 = vsel %vm2367_vm15, %v5484_v60, 2102212464  ;;  %v2416_v41 = vsel %vm2415_vm11, 1, %v3869_v0  ;;  %v2301_v45 = vsub.s32 4, %v5491_v34  ;;  %vm2419_vm13 = vc.u32 %v2417_v62, %v2413_v36 }
 0x286   : > { %v2290_v43 = vor.u32 %v2289_v24, %v2288_v13  ;;  %v2293_v1 = vshll.u32 %v2292_v9, 23  ;;  %v2401_v27 = vadd.s32 %v2400_v57, %v2390_v20  ;;  %v2418_v26 = vadd.s32 %v2416_v41, %v2410_v55 }
 0x287   : > { %v2392_v3 = vshrl.u32 %v2387_v54, 16  ;;  %v2420_v48 = vsel %vm2419_vm13, 1, %v3869_v0  ;;  %v3718_v52 = vadd.s32 4294967169, %v2491_v2  ;;  %v2368_v23 = vsel %vm2364_vm0, %v2348_v61, %v5472_v5  ;;  %v246_v61 = vpop.permute.xlu0 %245 }
 0x288   : > { %v2294_v21 = vor.u32 4788187, %v2293_v1  ;;  %v2370_v60 = vsel %vm2366_vm1, %v5476_v8, %v2369_v39  ;;  %v2412_v22 = vshrl.u32 %v2408_v31, 16  ;;  %v2422_v17 = vadd.s32 %v2420_v48, %v2418_v26 }
 0x289   : > { %v2297_v38 = vcvt.s32.f32 %v2290_v43  ;;  %v5546_v29 = vadd.s32 %v2401_v27, %v2392_v3  ;;  %v2497_v32 = vadd.s32 1, %v3718_v52  ;;  %v2302_v54 = vsel %vm2179_vm10, %v2301_v45, %v5491_v34 }
 0x28a   : > { %v2295_v10 = vand.u32 2147483647, %v2294_v21  ;;  %v2414_v40 = vshrl.u32 %v2409_v46, 16  ;;  %v2423_v12 = vadd.s32 %v2422_v17, %v2412_v22  ;;  %vm5553_vm14 = vcmp.le.f32.partialorder %v2177_v18, 0.7853982 }
 0x28b   : > { %v5557_v31 = vadd.s32 %v2417_v62, %v2413_v36  ;;  %vm2498_vm15 = vcmp.gt.s32.totalorder %v2497_v32, 0  ;;  %v2371_v14 = vsel %vm2365_vm2, %v2368_v23, %v2370_v60  ;;  %v2487_v34 = vand.u32 2147483647, %v5515_v33 }
 0x28c   : > { %v2298_v8 = vmul.f32 %v2297_v38, %v2295_v10  ;;  %v2424_v59 = vadd.s32 %v2423_v12, %v2414_v40  ;;  %v2499_v46 = vsel %vm2498_vm15, %v2497_v32, 0  ;;  %v2304_v11 = vsel %vm5553_vm14, 0, %v2302_v54 }
 0x28d   : > { %vm2427_vm0 = vc.u32 %v5546_v29, %v5557_v31  ;;  %v2501_v18 = vand.u32 31, %v2499_v46  ;;  %v5567_v25 = vmul.f32 %v5481_v51, %v251_v49  ;;  %v5570_v37 = vmul.f32 %v5481_v51, %v246_v61 }
 0x28e   : > { %v2299_v28 = vxor.u32 2147483648, %v2298_v8  ;;  %v2428_v15 = vadd.s32 1, %v2424_v59  ;;  %v2425_v20 = vmul.u32 %v5512_v19, %v2371_v14  ;;  %v2321_v42 = vadd.s32 3, %v2304_v11 }
 0x28f   : > { %v5575_v63 = vsub.s32 32, %v2501_v18  ;;  %v2494_v24 = vand.u32 8388607, %v2487_v34  ;;  %v5582_v36 = vshrl.u32 %v2499_v46, 5  ;;  %v2513_v57 = vshll.u32 %v3873_v53, %v2501_v18 }
 0x290   : > { %v2300_v6 = vsel %vm2179_vm10, %v2299_v28, %v2298_v8  ;;  %v2429_v55 = vsel %vm2427_vm0, %v2428_v15, %v2424_v59  ;;  %v2504_v45 = vshll.u32 %v3870_v44, %v2501_v18  ;;  %v2507_v27 = vshll.u32 %v3871_v47, %v2501_v18 }
 0x291   : > { %v2303_v13 = vsel %vm5553_vm14, %v5256_v30, %v2300_v6  ;;  %v2430_v16 = vadd.s32 %v2429_v55, %v2425_v20  ;;  %v2505_v19 = vshrl.u32 %v3871_v47, %v5575_v63  ;;  %v2508_v62 = vshrl.u32 %v3872_v50, %v5575_v63 }
 0x292   : > { %v2305_v9 = vmul.f32 %v2303_v13, %v2303_v13  ;;  %v2511_v2 = vshrl.u32 %v3873_v53, %v5575_v63  ;;  %v2514_v43 = vshrl.u32 %v3874_v56, %v5575_v63  ;;  %v2510_v26 = vshll.u32 %v3872_v50, %v2501_v18 }
 0x293   : > { %v2431_v41 = vadd.s32 536870912, %v2430_v16  ;;  %v2517_v3 = vshrl.u32 %v3875_v58, %v5575_v63  ;;  %v2495_v60 = vor.u32 8388608, %v2494_v24  ;;  %v5600_v22 = vor.u32 %v2505_v19, %v2504_v45 }
 0x294   : > { %v2306_v1 = vmul.f32 -0.001358992, %v2305_v9  ;;  %v2313_v39 = vmul.f32 -0.00019511016, %v2305_v9  ;;  %v2515_v21 = vor.u32 %v2514_v43, %v2513_v57  ;;  %v5602_v17 = vor.u32 %v2508_v62, %v2507_v27 }
 0x295   : > { %v5598_v23 = vshrl.u32 %v2431_v41, 30  ;;  %v5604_v10 = vor.u32 %v2511_v2, %v2510_v26  ;;  %v2516_v38 = vshll.u32 %v3874_v56, %v2501_v18  ;;  %vm2522_vm1 = vcmp.lt.s32.totalorder %v5582_v36, 4 }
 0x296   : > { %v2307_v48 = vadd.f32 0.041655596, %v2306_v1  ;;  %v2314_v52 = vadd.f32 0.008332121, %v2313_v39  ;;  %v2322_v12 = vand.u32 3, %v2321_v42  ;;  %vm2519_vm2 = vcmp.lt.s32.totalorder %v5582_v36, 1 }
 0x297   : > { %v2433_v40 = vshll.u32 %v5598_v23, 30  ;;  %v2518_v49 = vor.u32 %v2517_v3, %v2516_v38  ;;  %v2528_v5 = vsel %vm2522_vm1, %v2515_v21, 920167782  ;;  %vm2521_vm3 = vcmp.lt.s32.totalorder %v5582_v36, 3 }
 0x298   : > { %v2308_v32 = vmul.f32 %v2307_v48, %v2305_v9  ;;  %v2315_v54 = vmul.f32 %v2314_v52, %v2305_v9  ;;  %v2527_v59 = vsel %vm2519_vm2, %v5600_v22, %v5602_v17  ;;  %v2529_v46 = vsel %vm2521_vm3, %v5604_v10, %v2528_v5 }
 0x299   : > { %v2434_v14 = vsub.s32 %v2430_v16, %v2433_v40  ;;  %v2531_v28 = vsel %vm2519_vm2, %v5602_v17, %v5604_v10  ;;  %v5624_v11 = vshll.u32 %v2495_v60, 8  ;;  %vm2320_vm5 = vweird.f32 %v5256_v30 }
 0x29a   : > { %v2309_v8 = vadd.f32 -0.4999988, %v2308_v32  ;;  %v2316_v61 = vadd.f32 -0.16666654, %v2315_v54  ;;  %vm2323_vm6 = vcmp.lt.s32.totalorder %v2322_v12, 2  ;;  %vm2520_vm7 = vcmp.lt.s32.totalorder %v5582_v36, 2 }
 0x29b   : > { %vm2435_vm4 = vcmp.lt.s32.totalorder %v2434_v14, 0  ;;  %v2436_v6 = vsub.s32 0, %v2434_v14  ;;  %v2532_v20 = vsel %vm2522_vm1, %v2518_v49, 1326507024  ;;  %v2536_v62 = vand.u32 65535, %v5624_v11 }
 0x29c   : > { %v2310_v18 = vmul.f32 %v2309_v8, %v2305_v9  ;;  %v2317_v15 = vmul.f32 %v2316_v61, %v2305_v9  ;;  %v2533_v16 = vsel %vm2521_vm3, %v2515_v21, %v2532_v20  ;;  %v2530_v9 = vsel %vm2520_vm7, %v2527_v59, %v2529_v46 }
 0x29d   : > { %v2437_v24 = vsel %vm2435_vm4, %v2436_v6, %v2434_v14  ;;  %v2534_v19 = vsel %vm2520_vm7, %v2531_v28, %v2533_v16  ;;  %vm2324_vm8 = vcmp.eq.s32.totalorder %v2322_v12, 0  ;;  %vm2327_vm9 = vcmp.eq.s32.totalorder %v2322_v12, 2 }
 0x29e   : > { %v2311_v42 = vadd.f32 1.0, %v2310_v18  ;;  %v2318_v55 = vadd.f32 1.0, %v2317_v15  ;;  %v2438_v57 = vclz %v2437_v24  ;;  %v2538_v1 = vand.u32 65535, %v2534_v19 }
 0x29f   : > { %v2539_v39 = vshrl.u32 %v2534_v19, 16  ;;  %v2537_v45 = vshrl.u32 %v5624_v11, 16  ;;  %v2426_v26 = vadd.s32 %v5557_v31, %v5546_v29  ;;  %v2560_v3 = vand.u32 65535, %v2530_v9 }
 0x2a0   : > { %v2319_v2 = vmul.f32 %v2318_v55, %v2303_v13  ;;  %v2328_v43 = vxor.u32 2147483648, %v2311_v42  ;;  %v3716_v41 = vadd.s32 4294967294, %v2438_v57  ;;  %v2540_v52 = vmul.u32 %v2538_v1, %v2536_v62 }
 0x2a1   : > { %v2541_v21 = vmul.u32 %v2539_v39, %v2536_v62  ;;  %v2542_v60 = vmul.u32 %v2538_v1, %v2537_v45  ;;  %v2561_v54 = vshrl.u32 %v2530_v9, 16  ;;  %v2543_v8 = vmul.u32 %v2539_v39, %v2537_v45 }
 0x2a2   : > { %v2325_v27 = vxor.u32 2147483648, %v2319_v2  ;;  %v2329_v48 = vsel %vm2327_vm9, %v2328_v43, %v2319_v2  ;;  %vm3717_vm10 = vcmp.lt.s32.totalorder %v3716_v41, 0  ;;  %v5647_v15 = vadd.f32 %v5343_v4, %v5570_v37 }
 0x2a3   : > { %v2441_v13 = vsel %vm3717_vm10, 0, %v3716_v41  ;;  %v2544_v32 = vshll.u32 %v2541_v21, 16  ;;  %v2546_v31 = vshll.u32 %v2542_v60, 16  ;;  %v2563_v6 = vmul.u32 %v2561_v54, %v2536_v62 }
 0x2a4   : > { %v2326_v38 = vsel %vm2324_vm8, %v2311_v42, %v2325_v27  ;;  %v2442_v49 = vsub.s32 32, %v2441_v13  ;;  %v2446_v5 = vsub.s32 4294967266, %v2441_v13  ;;  %v2443_v29 = vshll.u32 %v2434_v14, %v2441_v13 }
 0x2a5   : > { %v2330_v40 = vsel %vm2323_vm6, %v2326_v38, %v2329_v48  ;;  %vm2548_vm12 = vc.u32 %v2540_v52, %v2544_v32  ;;  %v2550_v18 = vadd.s32 %v2544_v32, %v2540_v52  ;;  %v2564_v20 = vmul.u32 %v2560_v3, %v2537_v45 }
 0x2a6   : > { %v2331_v61 = vsel %vm2320_vm5, nan, %v2330_v40  ;;  %v2444_v59 = vshrl.u32 %v2426_v26, %v2442_v49  ;;  %v2447_v46 = vadd.s32 127, %v2446_v5  ;;  %v2549_v28 = vsel %vm2548_vm12, 1, %v3869_v0 }
 0x2a7   : > { %3584 = vst [vmem:[%s4272_s4 + $0x60] sm:$0xff] %v2331_v61  ;;  %v2551_v12 = vadd.s32 %v2549_v28, %v2543_v8  ;;  %v2503_v30 = vshrl.u32 %v3870_v44, %v5575_v63  ;;  %vm2552_vm11 = vc.u32 %v2550_v18, %v2546_v31  ;;  %v2456_v14 = vsub.s32 4, %v5598_v23  ;;  %v256_v28 = vpop.permute.xlu2 %255 }
 0x2a8   : > { %v2445_v42 = vor.u32 %v2444_v59, %v2443_v29  ;;  %v2448_v55 = vshll.u32 %v2447_v46, 23  ;;  %v2553_v24 = vsel %vm2552_vm11, 1, %v3869_v0  ;;  %v2562_v16 = vmul.u32 %v2560_v3, %v2536_v62 }
 0x2a9   : > { %v2566_v57 = vshll.u32 %v2563_v6, 16  ;;  %v2524_v37 = vsel %vm2522_vm1, %v5604_v10, 2102212464  ;;  %v2545_v19 = vshrl.u32 %v2541_v21, 16  ;;  %v2555_v2 = vadd.s32 %v2553_v24, %v2551_v12 }
 0x2aa   : > { %v2449_v9 = vor.u32 4788187, %v2448_v55  ;;  %v2565_v43 = vmul.u32 %v2561_v54, %v2537_v45  ;;  %v2568_v1 = vshll.u32 %v2564_v20, 16  ;;  %v2452_v63 = vcvt.s32.f32 %v2445_v42 }
 0x2ab   : > { %vm2570_vm13 = vc.u32 %v2562_v16, %v2566_v57  ;;  %v2572_v39 = vadd.s32 %v2566_v57, %v2562_v16  ;;  %v2556_v27 = vadd.s32 %v2555_v2, %v2545_v19  ;;  %vm2334_vm14 = vcmp.lt.s32.totalorder %v5347_v35, 0 }
 0x2ac   : > { %v2450_v41 = vand.u32 2147483647, %v2449_v9  ;;  %v2571_v26 = vsel %vm2570_vm13, 1, %v3869_v0  ;;  %v2523_v62 = vsel %vm2519_vm2, %v2503_v30, %v5600_v22  ;;  %v2547_v21 = vshrl.u32 %v2542_v60, 16 }
 0x2ad   : > { %v2573_v3 = vadd.s32 %v2571_v26, %v2565_v43  ;;  %vm2574_vm15 = vc.u32 %v2572_v39, %v2568_v1  ;;  %v2645_v48 = vand.u32 2139095040, %v5647_v15  ;;  %v2457_v52 = vsel %vm2334_vm14, %v2456_v14, %v5598_v23 }
 0x2ae   : > { %v2453_v10 = vmul.f32 %v2452_v63, %v2450_v41  ;;  %v2575_v45 = vsel %vm2574_vm15, 1, %v3869_v0  ;;  %v2525_v38 = vsel %vm2521_vm3, %v5602_v17, %v2524_v37  ;;  %v2567_v13 = vshrl.u32 %v2563_v6, 16 }
 0x2af   : > { %v2577_v32 = vadd.s32 %v2575_v45, %v2573_v3  ;;  %v2557_v22 = vadd.s32 %v2556_v27, %v2547_v21  ;;  %v2642_v40 = vand.u32 2147483647, %v5647_v15  ;;  %v2646_v49 = vshrl.u32 %v2645_v48, 23 }
 0x2b0   : > { %v2454_v54 = vxor.u32 2147483648, %v2453_v10  ;;  %v5672_v60 = vadd.f32 %v5343_v4, %v5567_v25  ;;  %vm2333_vm0 = vcmp.le.f32.partialorder %v2332_v7, 0.7853982  ;;  %v2569_v5 = vshrl.u32 %v2564_v20, 16 }
 0x2b1   : > { %v2578_v23 = vadd.s32 %v2577_v32, %v2567_v13  ;;  %v2459_v17 = vsel %vm2333_vm0, 0, %v2457_v52  ;;  %v2576_v61 = vadd.s32 %v2572_v39, %v2568_v1  ;;  %v3721_v29 = vadd.s32 4294967169, %v2646_v49 }
 0x2b2   : > { %v2455_v8 = vsel %vm2334_vm14, %v2454_v54, %v2453_v10  ;;  %v2526_v59 = vsel %vm2520_vm7, %v2523_v62, %v2525_v38  ;;  %v2649_v7 = vand.u32 8388607, %v2642_v40  ;;  %v2476_v12 = vadd.s32 3, %v2459_v17 }
 0x2b3   : > { %v2458_v31 = vsel %vm2333_vm0, %v5347_v35, %v2455_v8  ;;  %v2579_v46 = vadd.s32 %v2578_v23, %v2569_v5  ;;  %vm2582_vm1 = vc.u32 %v2557_v22, %v2576_v61  ;;  %v2652_v18 = vadd.s32 1, %v3721_v29 }
 0x2b4   : > { %v2460_v25 = vmul.f32 %v2458_v31, %v2458_v31  ;;  %v2800_v20 = vand.u32 2139095040, %v5672_v60  ;;  %v2580_v30 = vmul.u32 %v5624_v11, %v2526_v59  ;;  %v291_v36 = vmul.f32 %v5481_v51, %v256_v28 }
 0x2b5   : > { %v2583_v6 = vadd.s32 1, %v2579_v46  ;;  %vm2653_vm2 = vcmp.gt.s32.totalorder %v2652_v18, 0  ;;  %v2650_v37 = vor.u32 8388608, %v2649_v7  ;;  %v2477_v19 = vand.u32 3, %v2476_v12 }
 0x2b6   : > { %v2461_v42 = vmul.f32 -0.001358992, %v2460_v25  ;;  %v2468_v55 = vmul.f32 -0.00019511016, %v2460_v25  ;;  %v2654_v24 = vsel %vm2653_vm2, %v2652_v18, 0  ;;  %v2801_v43 = vshrl.u32 %v2800_v20, 23 }
 0x2b7   : > { %v2584_v14 = vsel %vm2582_vm1, %v2583_v6, %v2579_v46  ;;  %v2656_v2 = vand.u32 31, %v2654_v24  ;;  %v5687_v63 = vadd.f32 %v5343_v4, %v291_v36  ;;  %v5689_v27 = vadd.s32 %v2576_v61, %v2557_v22 }
 0x2b8   : > { %v2462_v16 = vadd.f32 0.041655596, %v2461_v42  ;;  %v2469_v57 = vadd.f32 0.008332121, %v2468_v55  ;;  %v2585_v9 = vadd.s32 %v2584_v14, %v2580_v30  ;;  %v2797_v51 = vand.u32 2147483647, %v5672_v60 }
 0x2b9   : > { %v2657_v11 = vsub.s32 32, %v2656_v2  ;;  %v5694_v10 = vshll.u32 %v2650_v37, 8  ;;  %vm2479_vm3 = vcmp.eq.s32.totalorder %v2477_v19, 0  ;;  %vm2482_vm4 = vcmp.eq.s32.totalorder %v2477_v19, 2 }
 0x2ba   : > { %v2463_v1 = vmul.f32 %v2462_v16, %v2460_v25  ;;  %v2470_v39 = vmul.f32 %v2469_v57, %v2460_v25  ;;  %v2586_v41 = vadd.s32 536870912, %v2585_v9  ;;  %v5696_v21 = vshrl.u32 %v2654_v24, 5 }
 0x2bb   : > { %v2660_v45 = vshrl.u32 %v3871_v47, %v2657_v11  ;;  %v2663_v4 = vshrl.u32 %v3872_v50, %v2657_v11  ;;  %v3724_v48 = vadd.s32 4294967169, %v2801_v43  ;;  %vm2478_vm5 = vcmp.lt.s32.totalorder %v2477_v19, 2 }
 0x2bc   : > { %v2464_v26 = vadd.f32 -0.4999988, %v2463_v1  ;;  %v2471_v62 = vadd.f32 -0.16666654, %v2470_v39  ;;  %v5692_v3 = vshrl.u32 %v2586_v41, 30  ;;  %v2659_v32 = vshll.u32 %v3870_v44, %v2656_v2 }
 0x2bd   : > { %vm2475_vm6 = vweird.f32 %v5347_v35  ;;  %v2662_v54 = vshll.u32 %v3871_v47, %v2656_v2  ;;  %v2665_v22 = vshll.u32 %v3872_v50, %v2656_v2  ;;  %v2668_v49 = vshll.u32 %v3873_v53, %v2656_v2 }
 0x2be   : > { %v2465_v52 = vmul.f32 %v2464_v26, %v2460_v25  ;;  %v2472_v38 = vmul.f32 %v2471_v62, %v2460_v25  ;;  %v2588_v13 = vshll.u32 %v5692_v3, 30  ;;  %v2669_v5 = vshrl.u32 %v3874_v56, %v2657_v11 }
 0x2bf   : > { %v2666_v61 = vshrl.u32 %v3873_v53, %v2657_v11  ;;  %v2661_v29 = vor.u32 %v2660_v45, %v2659_v32  ;;  %v2664_v59 = vor.u32 %v2663_v4, %v2662_v54  ;;  %v2672_v28 = vshrl.u32 %v3875_v58, %v2657_v11 }
 0x2c0   : > { %v2466_v23 = vadd.f32 1.0, %v2465_v52  ;;  %v2473_v8 = vadd.f32 1.0, %v2472_v38  ;;  %v2589_v17 = vsub.s32 %v2585_v9, %v2588_v13  ;;  %v2670_v46 = vor.u32 %v2669_v5, %v2668_v49 }
 0x2c1   : > { %vm2489_vm7 = vcmp.lt.s32.totalorder %v5515_v33, 0  ;;  %v2671_v12 = vshll.u32 %v3874_v56, %v2656_v2  ;;  %v2691_v6 = vand.u32 65535, %v5694_v10  ;;  %v2692_v20 = vshrl.u32 %v5694_v10, 16 }
 0x2c2   : > { %v2474_v25 = vmul.f32 %v2473_v8, %v2458_v31  ;;  %v2483_v7 = vxor.u32 2147483648, %v2466_v23  ;;  %vm2590_vm8 = vcmp.lt.s32.totalorder %v2589_v17, 0  ;;  %v2591_v18 = vsub.s32 0, %v2589_v17 }
 0x2c3   : > { %v5715_v42 = vand.u32 8388607, %v2797_v51  ;;  %v2667_v36 = vor.u32 %v2666_v61, %v2665_v22  ;;  %v5717_v14 = vadd.s32 1, %v3724_v48  ;;  %vm5721_vm9 = vcmp.le.f32.partialorder %v2487_v34, 0.7853982 }
 0x2c4   : > { %v2480_v55 = vxor.u32 2147483648, %v2474_v25  ;;  %v2592_v30 = vsel %vm2590_vm8, %v2591_v18, %v2589_v17  ;;  %v2673_v16 = vor.u32 %v2672_v28, %v2671_v12  ;;  %vm2674_vm10 = vcmp.lt.s32.totalorder %v5696_v21, 1 }
 0x2c5   : > { %v2593_v24 = vclz %v2592_v30  ;;  %vm2677_vm12 = vcmp.lt.s32.totalorder %v5696_v21, 4  ;;  %v2484_v9 = vsel %vm2482_vm4, %v2483_v7, %v2474_v25  ;;  %v2682_v37 = vsel %vm2674_vm10, %v2661_v29, %v2664_v59 }
 0x2c6   : > { %v2481_v57 = vsel %vm2479_vm3, %v2466_v23, %v2480_v55  ;;  %v2683_v34 = vsel %vm2677_vm12, %v2670_v46, 920167782  ;;  %v2611_v1 = vsub.s32 4, %v5692_v3  ;;  %vm2676_vm11 = vcmp.lt.s32.totalorder %v5696_v21, 3 }
 0x2c7   : > { %v2485_v2 = vsel %vm2478_vm5, %v2481_v57, %v2484_v9  ;;  %v3719_v43 = vadd.s32 4294967294, %v2593_v24  ;;  %v2658_v41 = vshrl.u32 %v3870_v44, %v2657_v11  ;;  %vm2675_vm13 = vcmp.lt.s32.totalorder %v5696_v21, 2 }
 0x2c8   : > { %v2486_v39 = vsel %vm2475_vm6, nan, %v2485_v2  ;;  %v2684_v26 = vsel %vm2676_vm11, %v2667_v36, %v2683_v34  ;;  %v2686_v62 = vsel %vm2674_vm10, %v2664_v59, %v2667_v36  ;;  %v2687_v45 = vsel %vm2677_vm12, %v2673_v16, 1326507024 }
 0x2c9   : > { %vm3720_vm14 = vcmp.lt.s32.totalorder %v3719_v43, 0  ;;  %v2685_v19 = vsel %vm2675_vm13, %v2682_v37, %v2684_v26  ;;  %3585 = vst [vmem:[%s4272_s4 + $0x68] sm:$0xff] %v2486_v39  ;;  %v2688_v11 = vsel %vm2676_vm11, %v2670_v46, %v2687_v45  ;;  %v5754_v13 = vsel %vm2489_vm7, %v2611_v1, %v5692_v3 }
 0x2ca   : > { %v2596_v35 = vsel %vm3720_vm14, 0, %v3719_v43  ;;  %v2715_v4 = vand.u32 65535, %v2685_v19  ;;  %v2716_v48 = vshrl.u32 %v2685_v19, 16  ;;  %v2689_v32 = vsel %vm2675_vm13, %v2686_v62, %v2688_v11 }
 0x2cb   : > { %v2597_v52 = vsub.s32 32, %v2596_v35  ;;  %v2601_v38 = vsub.s32 4294967266, %v2596_v35  ;;  %v2679_v54 = vsel %vm2677_vm12, %v2667_v36, 2102212464  ;;  %v2693_v22 = vand.u32 65535, %v2689_v32 }
 0x2cc   : > { %v2694_v49 = vshrl.u32 %v2689_v32, 16  ;;  %v2718_v5 = vmul.u32 %v2716_v48, %v2691_v6  ;;  %v2598_v23 = vshll.u32 %v2589_v17, %v2596_v35  ;;  %v2719_v46 = vmul.u32 %v2715_v4, %v2692_v20 }
 0x2cd   : > { %v2599_v8 = vshrl.u32 %v5689_v27, %v2597_v52  ;;  %v2602_v61 = vadd.s32 127, %v2601_v38  ;;  %v2614_v28 = vsel %vm5721_vm9, 0, %v5754_v13  ;;  %v2678_v3 = vsel %vm2674_vm10, %v2658_v41, %v2661_v29 }
 0x2ce   : > { %v2696_v25 = vmul.u32 %v2694_v49, %v2691_v6  ;;  %v2697_v7 = vmul.u32 %v2693_v22, %v2692_v20  ;;  %v2680_v55 = vsel %vm2676_vm11, %v2664_v59, %v2679_v54  ;;  %v2721_v30 = vshll.u32 %v2718_v5, 16 }
 0x2cf   : > { %v2600_v18 = vor.u32 %v2599_v8, %v2598_v23  ;;  %v2603_v12 = vshll.u32 %v2602_v61, 23  ;;  %v2695_v17 = vmul.u32 %v2693_v22, %v2691_v6  ;;  %v2717_v27 = vmul.u32 %v2715_v4, %v2691_v6 }
 0x2d0   : > { %v2699_v36 = vshll.u32 %v2696_v25, 16  ;;  %v2720_v24 = vmul.u32 %v2716_v48, %v2692_v20  ;;  %v2698_v57 = vmul.u32 %v2694_v49, %v2692_v20  ;;  %v2701_v9 = vshll.u32 %v2697_v7, 16 }
 0x2d1   : > { %v2604_v16 = vor.u32 4788187, %v2603_v12  ;;  %v2723_v37 = vshll.u32 %v2719_v46, 16  ;;  %vm2725_vm0 = vc.u32 %v2717_v27, %v2721_v30  ;;  %v2727_v29 = vadd.s32 %v2721_v30, %v2717_v27 }
 0x2d2   : > { %vm2703_vm15 = vc.u32 %v2695_v17, %v2699_v36  ;;  %v2705_v34 = vadd.s32 %v2699_v36, %v2695_v17  ;;  %v2607_v43 = vcvt.s32.f32 %v2600_v18  ;;  %v2726_v39 = vsel %vm2725_vm0, 1, %v3869_v0 }
 0x2d3   : > { %v2605_v2 = vand.u32 2147483647, %v2604_v16  ;;  %v2704_v1 = vsel %vm2703_vm15, 1, %v3869_v0  ;;  %v2728_v41 = vadd.s32 %v2726_v39, %v2720_v24  ;;  %vm2729_vm2 = vc.u32 %v2727_v29, %v2723_v37 }
 0x2d4   : > { %v2706_v59 = vadd.s32 %v2704_v1, %v2698_v57  ;;  %vm2707_vm1 = vc.u32 %v2705_v34, %v2701_v9  ;;  %v2722_v20 = vshrl.u32 %v2718_v5, 16  ;;  %v2730_v19 = vsel %vm2729_vm2, 1, %v3869_v0 }
 0x2d5   : > { %v2608_v6 = vmul.f32 %v2607_v43, %v2605_v2  ;;  %v2708_v26 = vsel %vm2707_vm1, 1, %v3869_v0  ;;  %v2700_v62 = vshrl.u32 %v2696_v25, 16  ;;  %v2732_v35 = vadd.s32 %v2730_v19, %v2728_v41 }
 0x2d6   : > { %v2710_v45 = vadd.s32 %v2708_v26, %v2706_v59  ;;  %vm2808_vm3 = vcmp.gt.s32.totalorder %v5717_v14, 0  ;;  %v2681_v4 = vsel %vm2675_vm13, %v2678_v3, %v2680_v55  ;;  %v2702_v48 = vshrl.u32 %v2697_v7, 16 }
 0x2d7   : > { %v2609_v11 = vxor.u32 2147483648, %v2608_v6  ;;  %v2809_v52 = vsel %vm2808_vm3, %v5717_v14, 0  ;;  %v2724_v13 = vshrl.u32 %v2719_v46, 16  ;;  %v2733_v32 = vadd.s32 %v2732_v35, %v2722_v20 }
 0x2d8   : > { %v2711_v38 = vadd.s32 %v2710_v45, %v2700_v62  ;;  %v2811_v54 = vand.u32 31, %v2809_v52  ;;  %v5778_v49 = vadd.s32 %v2727_v29, %v2723_v37  ;;  %v2952_v5 = vand.u32 2147483647, %v5687_v63 }
 0x2d9   : > { %v2610_v22 = vsel %vm2489_vm7, %v2609_v11, %v2608_v6  ;;  %v2955_v23 = vand.u32 2139095040, %v5687_v63  ;;  %v2734_v14 = vadd.s32 %v2733_v32, %v2724_v13  ;;  %v2631_v3 = vadd.s32 3, %v2614_v28 }
 0x2da   : > { %v2613_v21 = vsel %vm5721_vm9, %v5515_v33, %v2610_v22  ;;  %v5785_v8 = vadd.s32 %v2711_v38, %v2702_v48  ;;  %v5787_v61 = vsub.s32 32, %v2811_v54  ;;  %v2735_v25 = vmul.u32 %v5694_v10, %v2681_v4 }
 0x2db   : > { %v2615_v46 = vmul.f32 %v2613_v21, %v2613_v21  ;;  %v5790_v7 = vshrl.u32 %v2809_v52, 5  ;;  %v2738_v18 = vadd.s32 1, %v2734_v14  ;;  %v2814_v12 = vshll.u32 %v3870_v44, %v2811_v54 }
 0x2dc   : > { %vm2737_vm4 = vc.u32 %v5785_v8, %v5778_v49  ;;  %v2817_v31 = vshll.u32 %v3871_v47, %v2811_v54  ;;  %v2815_v17 = vshrl.u32 %v3871_v47, %v5787_v61  ;;  %v2818_v28 = vshrl.u32 %v3872_v50, %v5787_v61 }
 0x2dd   : > { %v2616_v55 = vmul.f32 -0.001358992, %v2615_v46  ;;  %v2623_v30 = vmul.f32 -0.00019511016, %v2615_v46  ;;  %v2739_v36 = vsel %vm2737_vm4, %v2738_v18, %v2734_v14  ;;  %v2821_v10 = vshrl.u32 %v3873_v53, %v5787_v61 }
 0x2de   : > { %v2823_v27 = vshll.u32 %v3873_v53, %v2811_v54  ;;  %v2824_v24 = vshrl.u32 %v3874_v56, %v5787_v61  ;;  %v2740_v9 = vadd.s32 %v2739_v36, %v2735_v25  ;;  %v2820_v37 = vshll.u32 %v3872_v50, %v2811_v54 }
 0x2df   : > { %v2617_v16 = vadd.f32 0.041655596, %v2616_v55  ;;  %v2624_v57 = vadd.f32 0.008332121, %v2623_v30  ;;  %v5806_v34 = vor.u32 %v2815_v17, %v2814_v12  ;;  %v5808_v29 = vor.u32 %v2818_v28, %v2817_v31 }
 0x2e0   : > { %v2825_v2 = vor.u32 %v2824_v24, %v2823_v27  ;;  %v2826_v43 = vshll.u32 %v3874_v56, %v2811_v54  ;;  %v2741_v59 = vadd.s32 536870912, %v2740_v9  ;;  %v2827_v41 = vshrl.u32 %v3875_v58, %v5787_v61 }
 0x2e1   : > { %v2618_v1 = vmul.f32 %v2617_v16, %v2615_v46  ;;  %v2625_v39 = vmul.f32 %v2624_v57, %v2615_v46  ;;  %v2805_v6 = vor.u32 8388608, %v5715_v42  ;;  %v2822_v26 = vor.u32 %v2821_v10, %v2820_v37 }
 0x2e2   : > { %vm2832_vm5 = vcmp.lt.s32.totalorder %v5790_v7, 4  ;;  %v2956_v20 = vshrl.u32 %v2955_v23, 23  ;;  %v5815_v45 = vshrl.u32 %v2741_v59, 30  ;;  %v2828_v35 = vor.u32 %v2827_v41, %v2826_v43 }
 0x2e3   : > { %v2619_v19 = vadd.f32 -0.4999988, %v2618_v1  ;;  %v2626_v62 = vadd.f32 -0.16666654, %v2625_v39  ;;  %v2632_v11 = vand.u32 3, %v2631_v3  ;;  %vm2829_vm6 = vcmp.lt.s32.totalorder %v5790_v7, 1 }
 0x2e4   : > { %vm2831_vm7 = vcmp.lt.s32.totalorder %v5790_v7, 3  ;;  %v2838_v4 = vsel %vm2832_vm5, %v2825_v2, 920167782  ;;  %v2743_v42 = vshll.u32 %v5815_v45, 30  ;;  %v2837_v38 = vsel %vm2829_vm6, %v5806_v34, %v5808_v29 }
 0x2e5   : > { %v2620_v48 = vmul.f32 %v2619_v19, %v2615_v46  ;;  %v2627_v52 = vmul.f32 %v2626_v62, %v2615_v46  ;;  %vm2630_vm8 = vweird.f32 %v5515_v33  ;;  %vm2830_vm9 = vcmp.lt.s32.totalorder %v5790_v7, 2 }
 0x2e6   : > { %v2839_v13 = vsel %vm2831_vm7, %v2822_v26, %v2838_v4  ;;  %v2842_v32 = vsel %vm2832_vm5, %v2828_v35, 1326507024  ;;  %v5832_v54 = vshll.u32 %v2805_v6, 8  ;;  %v2744_v14 = vsub.s32 %v2740_v9, %v2743_v42 }
 0x2e7   : > { %v2621_v22 = vadd.f32 1.0, %v2620_v48  ;;  %v2628_v23 = vadd.f32 1.0, %v2627_v52  ;;  %v2841_v46 = vsel %vm2829_vm6, %v5808_v29, %v2822_v26  ;;  %vm2633_vm10 = vcmp.lt.s32.totalorder %v2632_v11, 2 }
 0x2e8   : > { %v2840_v3 = vsel %vm2830_vm9, %v2837_v38, %v2839_v13  ;;  %v2843_v25 = vsel %vm2831_vm7, %v2825_v2, %v2842_v32  ;;  %v5843_v18 = vand.u32 8388607, %v2952_v5  ;;  %vm2745_vm12 = vcmp.lt.s32.totalorder %v2744_v14, 0 }
 0x2e9   : > { %v2629_v12 = vmul.f32 %v2628_v23, %v2613_v21  ;;  %v2638_v31 = vxor.u32 2147483648, %v2621_v22  ;;  %v2746_v55 = vsub.s32 0, %v2744_v14  ;;  %vm2634_vm11 = vcmp.eq.s32.totalorder %v2632_v11, 0 }
 0x2ea   : > { %vm2637_vm13 = vcmp.eq.s32.totalorder %v2632_v11, 2  ;;  %v2844_v30 = vsel %vm2830_vm9, %v2841_v46, %v2843_v25  ;;  %v2871_v17 = vshrl.u32 %v2840_v3, 16  ;;  %v2846_v10 = vand.u32 65535, %v5832_v54 }
 0x2eb   : > { %v2635_v28 = vxor.u32 2147483648, %v2629_v12  ;;  %v2747_v36 = vsel %vm2745_vm12, %v2746_v55, %v2744_v14  ;;  %v2848_v27 = vand.u32 65535, %v2844_v30  ;;  %v2847_v16 = vshrl.u32 %v5832_v54, 16 }
 0x2ec   : > { %v2748_v24 = vclz %v2747_v36  ;;  %v2849_v57 = vshrl.u32 %v2844_v30, 16  ;;  %v2870_v9 = vand.u32 65535, %v2840_v3  ;;  %v2639_v37 = vsel %vm2637_vm13, %v2638_v31, %v2629_v12 }
 0x2ed   : > { %v2636_v21 = vsel %vm2634_vm11, %v2621_v22, %v2635_v28  ;;  %v2736_v2 = vadd.s32 %v5778_v49, %v5785_v8  ;;  %v3727_v43 = vadd.s32 4294967169, %v2956_v20  ;;  %v2852_v59 = vmul.u32 %v2848_v27, %v2847_v16 }
 0x2ee   : > { %v2640_v1 = vsel %vm2633_vm10, %v2636_v21, %v2639_v37  ;;  %v3722_v39 = vadd.s32 4294967294, %v2748_v24  ;;  %v2873_v41 = vmul.u32 %v2871_v17, %v2846_v10  ;;  %v2813_v19 = vshrl.u32 %v3870_v44, %v5787_v61 }
 0x2ef   : > { %v2641_v6 = vsel %vm2630_vm8, nan, %v2640_v1  ;;  %v2834_v62 = vsel %vm2832_vm5, %v2822_v26, 2102212464  ;;  %v2851_v35 = vmul.u32 %v2849_v57, %v2846_v10  ;;  %v2766_v4 = vsub.s32 4, %v5815_v45 }
 0x2f0   : > { %vm3723_vm14 = vcmp.lt.s32.totalorder %v3722_v39, 0  ;;  %v2872_v49 = vmul.u32 %v2870_v9, %v2846_v10  ;;  %v2874_v8 = vmul.u32 %v2870_v9, %v2847_v16  ;;  %3586 = vst [vmem:[%s4272_s4 + $0x70] sm:$0xff] %v2641_v6  ;;  %vm2644_vm15 = vcmp.lt.s32.totalorder %v5647_v15, 0 }
 0x2f1   : > { %v2751_v20 = vsel %vm3723_vm14, 0, %v3722_v39  ;;  %v2850_v11 = vmul.u32 %v2848_v27, %v2846_v10  ;;  %v2853_v48 = vmul.u32 %v2849_v57, %v2847_v16  ;;  %v2854_v33 = vshll.u32 %v2851_v35, 16 }
 0x2f2   : > { %v2752_v52 = vsub.s32 32, %v2751_v20  ;;  %v2756_v42 = vsub.s32 4294967266, %v2751_v20  ;;  %v2856_v38 = vshll.u32 %v2852_v59, 16  ;;  %v2876_v61 = vshll.u32 %v2873_v41, 16 }
 0x2f3   : > { %v2753_v13 = vshll.u32 %v2744_v14, %v2751_v20  ;;  %vm2858_vm0 = vc.u32 %v2850_v11, %v2854_v33  ;;  %v2860_v26 = vadd.s32 %v2854_v33, %v2850_v11  ;;  %v2875_v32 = vmul.u32 %v2871_v17, %v2847_v16 }
 0x2f4   : > { %v2754_v22 = vshrl.u32 %v2736_v2, %v2752_v52  ;;  %v2757_v23 = vadd.s32 127, %v2756_v42  ;;  %v2859_v46 = vsel %vm2858_vm0, 1, %v3869_v0  ;;  %v2878_v3 = vshll.u32 %v2874_v8, 16 }
 0x2f5   : > { %v2861_v25 = vadd.s32 %v2859_v46, %v2853_v48  ;;  %vm2862_vm1 = vc.u32 %v2860_v26, %v2856_v38  ;;  %vm2880_vm2 = vc.u32 %v2872_v49, %v2876_v61  ;;  %v2882_v12 = vadd.s32 %v2876_v61, %v2872_v49  ;;  %v261_v49 = vpop.permute.xlu0 %260 }
 0x2f6   : > { %v2755_v31 = vor.u32 %v2754_v22, %v2753_v13  ;;  %v2758_v55 = vshll.u32 %v2757_v23, 23  ;;  %v2863_v30 = vsel %vm2862_vm1, 1, %v3869_v0  ;;  %v2881_v28 = vsel %vm2880_vm2, 1, %v3869_v0 }
 0x2f7   : > { %v2855_v36 = vshrl.u32 %v2851_v35, 16  ;;  %v2865_v14 = vadd.s32 %v2863_v30, %v2861_v25  ;;  %v2883_v10 = vadd.s32 %v2881_v28, %v2875_v32  ;;  %vm2884_vm3 = vc.u32 %v2882_v12, %v2878_v3 }
 0x2f8   : > { %v2759_v17 = vor.u32 4788187, %v2758_v55  ;;  %v2833_v27 = vsel %vm2829_vm6, %v2813_v19, %v5806_v34  ;;  %v2857_v24 = vshrl.u32 %v2852_v59, 16  ;;  %v2885_v16 = vsel %vm2884_vm3, 1, %v3869_v0  ;;  %v266_v19 = vpop.permute.xlu1 %265 }
 0x2f9   : > { %v2866_v57 = vadd.s32 %v2865_v14, %v2855_v36  ;;  %v2877_v9 = vshrl.u32 %v2873_v41, 16  ;;  %v2887_v21 = vadd.s32 %v2885_v16, %v2883_v10  ;;  %v2962_v37 = vadd.s32 1, %v3727_v43 }
 0x2fa   : > { %v2760_v2 = vand.u32 2147483647, %v2759_v17  ;;  %v2762_v1 = vcvt.s32.f32 %v2755_v31  ;;  %v2767_v39 = vsel %vm2644_vm15, %v2766_v4, %v5815_v45  ;;  %v2835_v6 = vsel %vm2831_vm7, %v5808_v29, %v2834_v62 }
 0x2fb   : > { %v5874_v35 = vadd.s32 %v2866_v57, %v2857_v24  ;;  %v2879_v34 = vshrl.u32 %v2874_v8, 16  ;;  %v2888_v59 = vadd.s32 %v2887_v21, %v2877_v9  ;;  %vm2963_vm4 = vcmp.gt.s32.totalorder %v2962_v37, 0 }
 0x2fc   : > { %vm5878_vm5 = vcmp.le.f32.partialorder %v2642_v40, 0.7853982  ;;  %v2763_v41 = vmul.f32 %v2762_v1, %v2760_v2  ;;  %v5882_v20 = vadd.s32 %v2882_v12, %v2878_v3  ;;  %v2964_v45 = vsel %vm2963_vm4, %v2962_v37, 0  ;;  %v5893_v40 = vld [vmem:[%s6389_s1] ss:$0 sm:$0xff] }
 0x2fd   : > { %v2769_v29 = vsel %vm5878_vm5, 0, %v2767_v39  ;;  %v2836_v62 = vsel %vm2830_vm9, %v2833_v27, %v2835_v6  ;;  %v2889_v4 = vadd.s32 %v2888_v59, %v2879_v34  ;;  %v2966_v11 = vand.u32 31, %v2964_v45 }
 0x2fe   : > { %v2764_v8 = vxor.u32 2147483648, %v2763_v41  ;;  %vm2892_vm6 = vc.u32 %v5874_v35, %v5882_v20  ;;  %v292_v48 = vmul.f32 %v5893_v40, %v261_v49  ;;  %v5897_v33 = vmul.f32 %v5893_v40, %v266_v19 }
 0x2ff   : > { %v2893_v52 = vadd.s32 1, %v2889_v4  ;;  %v2960_v7 = vor.u32 8388608, %v5843_v18  ;;  %v2786_v38 = vadd.s32 3, %v2769_v29  ;;  %v2890_v61 = vmul.u32 %v5832_v54, %v2836_v62 }
 0x300   : > { %v2765_v42 = vsel %vm2644_vm15, %v2764_v8, %v2763_v41  ;;  %v5903_v13 = vsub.s32 32, %v2966_v11  ;;  %v5908_v22 = vshrl.u32 %v2964_v45, 5  ;;  %v2969_v23 = vshll.u32 %v3870_v44, %v2966_v11 }
 0x301   : > { %v2768_v26 = vsel %vm5878_vm5, %v5647_v15, %v2765_v42  ;;  %v2894_v32 = vsel %vm2892_vm6, %v2893_v52, %v2889_v4  ;;  %v2972_v18 = vshll.u32 %v3871_v47, %v2966_v11  ;;  %v2978_v25 = vshll.u32 %v3873_v53, %v2966_v11  ;;  %v5960_v42 = vld [vmem:[%s6389_s1 + $0x1] ss:$0 sm:$0xff] }
 0x302   : > { %v2770_v46 = vmul.f32 %v2768_v26, %v2768_v26  ;;  %v2895_v3 = vadd.s32 %v2894_v32, %v2890_v61  ;;  %v2970_v54 = vshrl.u32 %v3871_v47, %v5903_v13  ;;  %v2973_v12 = vshrl.u32 %v3872_v50, %v5903_v13 }
 0x303   : > { %v2976_v31 = vshrl.u32 %v3873_v53, %v5903_v13  ;;  %v2979_v55 = vshrl.u32 %v3874_v56, %v5903_v13  ;;  %v2975_v14 = vshll.u32 %v3872_v50, %v2966_v11  ;;  %v2981_v27 = vshll.u32 %v3874_v56, %v2966_v11 }
 0x304   : > { %v2771_v30 = vmul.f32 -0.001358992, %v2770_v46  ;;  %v2778_v28 = vmul.f32 -0.00019511016, %v2770_v46  ;;  %v2896_v36 = vadd.s32 536870912, %v2895_v3  ;;  %v5922_v10 = vor.u32 %v2973_v12, %v2972_v18 }
 0x305   : > { %v2980_v17 = vor.u32 %v2979_v55, %v2978_v25  ;;  %v2982_v24 = vshrl.u32 %v3875_v58, %v5903_v13  ;;  %v5929_v21 = vor.u32 %v2976_v31, %v2975_v14  ;;  %v2787_v37 = vand.u32 3, %v2786_v38 }
 0x306   : > { %v2772_v16 = vadd.f32 0.041655596, %v2771_v30  ;;  %v2779_v57 = vadd.f32 0.008332121, %v2778_v28  ;;  %v5927_v9 = vshrl.u32 %v2896_v36, 30  ;;  %v5931_v2 = vor.u32 %v2970_v54, %v2969_v23 }
 0x307   : > { %v2983_v1 = vor.u32 %v2982_v24, %v2981_v27  ;;  %v5933_v39 = vshll.u32 %v2960_v7, 8  ;;  %vm2987_vm7 = vcmp.lt.s32.totalorder %v5908_v22, 4  ;;  %vm2984_vm8 = vcmp.lt.s32.totalorder %v5908_v22, 1 }
 0x308   : > { %v2773_v6 = vmul.f32 %v2772_v16, %v2770_v46  ;;  %v2780_v34 = vmul.f32 %v2779_v57, %v2770_v46  ;;  %v2898_v59 = vshll.u32 %v5927_v9, 30  ;;  %vm2986_vm9 = vcmp.lt.s32.totalorder %v5908_v22, 3 }
 0x309   : > { %v2993_v19 = vsel %vm2987_vm7, %v2980_v17, 920167782  ;;  %v2997_v49 = vsel %vm2987_vm7, %v2983_v1, 1326507024  ;;  %v2996_v29 = vsel %vm2984_vm8, %v5922_v10, %v5929_v21  ;;  %vm2985_vm10 = vcmp.lt.s32.totalorder %v5908_v22, 2 }
 0x30a   : > { %v2774_v43 = vadd.f32 -0.4999988, %v2773_v6  ;;  %v2781_v41 = vadd.f32 -0.16666654, %v2780_v34  ;;  %v2899_v45 = vsub.s32 %v2895_v3, %v2898_v59  ;;  %v2992_v62 = vsel %vm2984_vm8, %v5931_v2, %v5922_v10 }
 0x30b   : > { %v2994_v4 = vsel %vm2986_vm9, %v5929_v21, %v2993_v19  ;;  %v2998_v8 = vsel %vm2986_vm9, %v2980_v17, %v2997_v49  ;;  %v5963_v38 = vadd.f32 %v5960_v42, %v292_v48  ;;  %vm2785_vm11 = vweird.f32 %v5647_v15 }
 0x30c   : > { %v2775_v11 = vmul.f32 %v2774_v43, %v2770_v46  ;;  %v2782_v52 = vmul.f32 %v2781_v41, %v2770_v46  ;;  %vm2900_vm12 = vcmp.lt.s32.totalorder %v2899_v45, 0  ;;  %v2901_v7 = vsub.s32 0, %v2899_v45 }
 0x30d   : > { %vm2788_vm13 = vcmp.lt.s32.totalorder %v2787_v37, 2  ;;  %v2999_v61 = vsel %vm2985_vm10, %v2996_v29, %v2998_v8  ;;  %v2995_v25 = vsel %vm2985_vm10, %v2992_v62, %v2994_v4  ;;  %v3002_v54 = vshrl.u32 %v5933_v39, 16 }
 0x30e   : > { %v2776_v32 = vadd.f32 1.0, %v2775_v11  ;;  %v2783_v23 = vadd.f32 1.0, %v2782_v52  ;;  %v2902_v3 = vsel %vm2900_vm12, %v2901_v7, %v2899_v45  ;;  %v3003_v46 = vand.u32 65535, %v2999_v61 }
 0x30f   : > { %v2903_v18 = vclz %v2902_v3  ;;  %v3004_v12 = vshrl.u32 %v2999_v61, 16  ;;  %vm2789_vm14 = vcmp.eq.s32.totalorder %v2787_v37, 0  ;;  %v3001_v55 = vand.u32 65535, %v5933_v39 }
 0x310   : > { %v2784_v31 = vmul.f32 %v2783_v23, %v2768_v26  ;;  %v2793_v48 = vxor.u32 2147483648, %v2776_v32  ;;  %vm2792_vm15 = vcmp.eq.s32.totalorder %v2787_v37, 2  ;;  %v2891_v30 = vadd.s32 %v5882_v20, %v5874_v35 }
 0x311   : > { %v3725_v28 = vadd.s32 4294967294, %v2903_v18  ;;  %v3007_v36 = vmul.u32 %v3003_v46, %v3002_v54  ;;  %v2968_v17 = vshrl.u32 %v3870_v44, %v5903_v13  ;;  %v3006_v27 = vmul.u32 %v3004_v12, %v3001_v55 }
 0x312   : > { %v2790_v14 = vxor.u32 2147483648, %v2784_v31  ;;  %v3025_v24 = vand.u32 65535, %v2995_v25  ;;  %v2794_v16 = vsel %vm2792_vm15, %v2793_v48, %v2784_v31  ;;  %v3005_v57 = vmul.u32 %v3003_v46, %v3001_v55 }
 0x313   : > { %vm3726_vm0 = vcmp.lt.s32.totalorder %v3725_v28, 0  ;;  %v3026_v26 = vshrl.u32 %v2995_v25, 16  ;;  %v3008_v34 = vmul.u32 %v3004_v12, %v3002_v54  ;;  %v3009_v59 = vshll.u32 %v3006_v27, 16 }
 0x314   : > { %v2791_v1 = vsel %vm2789_vm14, %v2776_v32, %v2790_v14  ;;  %v2906_v6 = vsel %vm3726_vm0, 0, %v3725_v28  ;;  %v3011_v49 = vshll.u32 %v3007_v36, 16  ;;  %v3027_v52 = vmul.u32 %v3025_v24, %v3001_v55 }
 0x315   : > { %v2795_v19 = vsel %vm2788_vm13, %v2791_v1, %v2794_v16  ;;  %v2907_v35 = vsub.s32 32, %v2906_v6  ;;  %v2911_v20 = vsub.s32 4294967266, %v2906_v6  ;;  %v2908_v13 = vshll.u32 %v2899_v45, %v2906_v6 }
 0x316   : > { %v2796_v43 = vsel %vm2785_vm11, nan, %v2795_v19  ;;  %vm3013_vm1 = vc.u32 %v3005_v57, %v3009_v59  ;;  %v3015_v41 = vadd.s32 %v3009_v59, %v3005_v57  ;;  %v3028_v8 = vmul.u32 %v3026_v26, %v3001_v55 }
 0x317   : > { %v2909_v29 = vshrl.u32 %v2891_v30, %v2907_v35  ;;  %v2912_v62 = vadd.s32 127, %v2911_v20  ;;  %v3014_v4 = vsel %vm3013_vm1, 1, %v3869_v0  ;;  %3587 = vst [vmem:[%s4272_s4 + $0x78] sm:$0xff] %v2796_v43  ;;  %v3029_v37 = vmul.u32 %v3025_v24, %v3002_v54 }
 0x318   : > { %v3016_v11 = vadd.s32 %v3014_v4, %v3008_v34  ;;  %vm3017_vm2 = vc.u32 %v3015_v41, %v3011_v49  ;;  %v3031_v23 = vshll.u32 %v3028_v8, 16  ;;  %v2989_v15 = vsel %vm2987_vm7, %v5929_v21, 2102212464 }
 0x319   : > { %v2910_v7 = vor.u32 %v2909_v29, %v2908_v13  ;;  %v2913_v61 = vshll.u32 %v2912_v62, 23  ;;  %v3018_v32 = vsel %vm3017_vm2, 1, %v3869_v0  ;;  %v3010_v45 = vshrl.u32 %v3006_v27, 16 }
 0x31a   : > { %v3020_v3 = vadd.s32 %v3018_v32, %v3016_v11  ;;  %v3030_v46 = vmul.u32 %v3026_v26, %v3002_v54  ;;  %v3033_v25 = vshll.u32 %v3029_v37, 16  ;;  %vm3035_vm3 = vc.u32 %v3027_v52, %v3031_v23 }
 0x31b   : > { %v2914_v18 = vor.u32 4788187, %v2913_v61  ;;  %v3037_v12 = vadd.s32 %v3031_v23, %v3027_v52  ;;  %v2917_v31 = vcvt.s32.f32 %v2910_v7  ;;  %v2921_v48 = vsub.s32 4, %v5927_v9 }
 0x31c   : > { %v3021_v55 = vadd.s32 %v3020_v3, %v3010_v45  ;;  %v3036_v30 = vsel %vm3035_vm3, 1, %v3869_v0  ;;  %v3107_v24 = vand.u32 2147483647, %v5963_v38  ;;  %vm2799_vm5 = vcmp.lt.s32.totalorder %v5672_v60, 0 }
 0x31d   : > { %v2915_v28 = vand.u32 2147483647, %v2914_v18  ;;  %v3038_v14 = vadd.s32 %v3036_v30, %v3030_v46  ;;  %vm3039_vm4 = vc.u32 %v3037_v12, %v3033_v25  ;;  %v3012_v21 = vshrl.u32 %v3007_v36, 16 }
 0x31e   : > { %v3040_v54 = vsel %vm3039_vm4, 1, %v3869_v0  ;;  %v3110_v27 = vand.u32 2139095040, %v5963_v38  ;;  %v2988_v57 = vsel %vm2984_vm8, %v2968_v17, %v5931_v2  ;;  %v3032_v26 = vshrl.u32 %v3028_v8, 16 }
 0x31f   : > { %v2918_v16 = vmul.f32 %v2917_v31, %v2915_v28  ;;  %v3042_v1 = vadd.s32 %v3040_v54, %v3038_v14  ;;  %v2922_v6 = vsel %vm2799_vm5, %v2921_v48, %v5927_v9  ;;  %v2990_v34 = vsel %vm2986_vm9, %v5922_v10, %v2989_v15 }
 0x320   : > { %v3022_v36 = vadd.s32 %v3021_v55, %v3012_v21  ;;  %v3111_v59 = vshrl.u32 %v3110_v27, 23  ;;  %v3034_v35 = vshrl.u32 %v3029_v37, 16  ;;  %v3114_v49 = vand.u32 8388607, %v3107_v24 }
 0x321   : > { %v2919_v19 = vxor.u32 2147483648, %v2918_v16  ;;  %v3043_v20 = vadd.s32 %v3042_v1, %v3032_v26  ;;  %v6004_v2 = vadd.f32 %v5960_v42, %v5897_v33  ;;  %vm2798_vm6 = vcmp.le.f32.partialorder %v2797_v51, 0.7853982 }
 0x322   : > { %v3041_v9 = vadd.s32 %v3037_v12, %v3033_v25  ;;  %v3730_v17 = vadd.s32 4294967169, %v3111_v59  ;;  %v2924_v43 = vsel %vm2798_vm6, 0, %v2922_v6  ;;  %v2991_v13 = vsel %vm2985_vm10, %v2988_v57, %v2990_v34 }
 0x323   : > { %v2920_v10 = vsel %vm2799_vm5, %v2919_v19, %v2918_v16  ;;  %v3044_v41 = vadd.s32 %v3043_v20, %v3034_v35  ;;  %v3115_v8 = vor.u32 8388608, %v3114_v49  ;;  %v2941_v11 = vadd.s32 3, %v2924_v43 }
 0x324   : > { %v2923_v29 = vsel %vm2798_vm6, %v5672_v60, %v2920_v10  ;;  %vm3047_vm7 = vc.u32 %v3022_v36, %v3041_v9  ;;  %v3117_v62 = vadd.s32 1, %v3730_v17  ;;  %v3045_v51 = vmul.u32 %v5933_v39, %v2991_v13 }
 0x325   : > { %v2925_v4 = vmul.f32 %v2923_v29, %v2923_v29  ;;  %v3048_v33 = vadd.s32 1, %v3044_v41  ;;  %v3265_v52 = vand.u32 2139095040, %v6004_v2  ;;  %v3262_v15 = vand.u32 2147483647, %v6004_v2 }
 0x326   : > { %vm3118_vm8 = vcmp.gt.s32.totalorder %v3117_v62, 0  ;;  %v6016_v46 = vshll.u32 %v3115_v8, 8  ;;  %v2942_v18 = vand.u32 3, %v2941_v11  ;;  %v6018_v55 = vadd.s32 %v3041_v9, %v3022_v36 }
 0x327   : > { %v2926_v37 = vmul.f32 -0.001358992, %v2925_v4  ;;  %v2933_v7 = vmul.f32 -0.00019511016, %v2925_v4  ;;  %v3049_v61 = vsel %vm3047_vm7, %v3048_v33, %v3044_v41  ;;  %v3119_v32 = vsel %vm3118_vm8, %v3117_v62, 0 }
 0x328   : > { %v3050_v22 = vadd.s32 %v3049_v61, %v3045_v51  ;;  %v3121_v23 = vand.u32 31, %v3119_v32  ;;  %v3266_v12 = vshrl.u32 %v3265_v52, 23  ;;  %v6024_v28 = vand.u32 8388607, %v3262_v15 }
 0x329   : > { %v2927_v45 = vadd.f32 0.041655596, %v2926_v37  ;;  %v2934_v3 = vadd.f32 0.008332121, %v2933_v7  ;;  %v6027_v54 = vand.u32 65535, %v6016_v46  ;;  %v6030_v27 = vshrl.u32 %v6016_v46, 16 }
 0x32a   : > { %v3051_v25 = vadd.s32 536870912, %v3050_v22  ;;  %v3122_v48 = vsub.s32 32, %v3121_v23  ;;  %vm2944_vm9 = vcmp.eq.s32.totalorder %v2942_v18, 0  ;;  %vm2947_vm10 = vcmp.eq.s32.totalorder %v2942_v18, 2 }
 0x32b   : > { %v2928_v31 = vmul.f32 %v2927_v45, %v2925_v4  ;;  %v2935_v39 = vmul.f32 %v2934_v3, %v2925_v4  ;;  %v6033_v57 = vshrl.u32 %v3119_v32, 5  ;;  %v3124_v26 = vshll.u32 %v3870_v44, %v3121_v23 }
 0x32c   : > { %v6020_v30 = vshrl.u32 %v3051_v25, 30  ;;  %v3733_v1 = vadd.s32 4294967169, %v3266_v12  ;;  %vm2943_vm12 = vcmp.lt.s32.totalorder %v2942_v18, 2  ;;  %v3125_v36 = vshrl.u32 %v3871_v47, %v3122_v48 }
 0x32d   : > { %v2929_v14 = vadd.f32 -0.4999988, %v2928_v31  ;;  %v2936_v21 = vadd.f32 -0.16666654, %v2935_v39  ;;  %v3128_v59 = vshrl.u32 %v3872_v50, %v3122_v48  ;;  %vm2940_vm11 = vweird.f32 %v5672_v60 }
 0x32e   : > { %v3053_v16 = vshll.u32 %v6020_v30, 30  ;;  %v3131_v35 = vshrl.u32 %v3873_v53, %v3122_v48  ;;  %v3134_v20 = vshrl.u32 %v3874_v56, %v3122_v48  ;;  %v3137_v49 = vshrl.u32 %v3875_v58, %v3122_v48 }
 0x32f   : > { %v2930_v6 = vmul.f32 %v2929_v14, %v2925_v4  ;;  %v2937_v34 = vmul.f32 %v2936_v21, %v2925_v4  ;;  %v3127_v10 = vshll.u32 %v3871_v47, %v3121_v23  ;;  %v3130_v43 = vshll.u32 %v3872_v50, %v3121_v23 }
 0x330   : > { %v6039_v19 = vsub.s32 %v3050_v22, %v3053_v16  ;;  %v3133_v41 = vshll.u32 %v3873_v53, %v3121_v23  ;;  %v3136_v62 = vshll.u32 %v3874_v56, %v3121_v23  ;;  %vm2954_vm14 = vcmp.lt.s32.totalorder %v5687_v63, 0 }
 0x331   : > { %v2931_v9 = vadd.f32 1.0, %v2930_v6  ;;  %v2938_v17 = vadd.f32 1.0, %v2937_v34  ;;  %v3126_v8 = vor.u32 %v3125_v36, %v3124_v26  ;;  %v3129_v11 = vor.u32 %v3128_v59, %v3127_v10 }
 0x332   : > { %vm3055_vm13 = vcmp.lt.s32.totalorder %v6039_v19, 0  ;;  %v3056_v13 = vsub.s32 0, %v6039_v19  ;;  %v3132_v52 = vor.u32 %v3131_v35, %v3130_v43  ;;  %v3135_v37 = vor.u32 %v3134_v20, %v3133_v41 }
 0x333   : > { %v2939_v4 = vmul.f32 %v2938_v17, %v2923_v29  ;;  %v2948_v33 = vxor.u32 2147483648, %v2931_v9  ;;  %v3138_v7 = vor.u32 %v3137_v49, %v3136_v62  ;;  %v3076_v22 = vsub.s32 4, %v6020_v30 }
 0x334   : > { %v3057_v51 = vsel %vm3055_vm13, %v3056_v13, %v6039_v19  ;;  %v3272_v45 = vadd.s32 1, %v3733_v1  ;;  %vm3139_vm15 = vcmp.lt.s32.totalorder %v6033_v57, 1  ;;  %vm3140_vm0 = vcmp.lt.s32.totalorder %v6033_v57, 2 }
 0x335   : > { %v2945_v61 = vxor.u32 2147483648, %v2939_v4  ;;  %v3058_v32 = vclz %v3057_v51  ;;  %vm3141_vm1 = vcmp.lt.s32.totalorder %v6033_v57, 3  ;;  %vm3142_vm2 = vcmp.lt.s32.totalorder %v6033_v57, 4 }
 0x336   : > { %v2949_v23 = vsel %vm2947_vm10, %v2948_v33, %v2939_v4  ;;  %v3147_v25 = vsel %vm3139_vm15, %v3126_v8, %v3129_v11  ;;  %v3148_v31 = vsel %vm3142_vm2, %v3135_v37, 920167782  ;;  %v3151_v39 = vsel %vm3139_vm15, %v3129_v11, %v3132_v52 }
 0x337   : > { %v2946_v29 = vsel %vm2944_vm9, %v2931_v9, %v2945_v61  ;;  %v3728_v3 = vadd.s32 4294967294, %v3058_v32  ;;  %v3152_v14 = vsel %vm3142_vm2, %v3138_v7, 1326507024  ;;  %v3149_v16 = vsel %vm3141_vm1, %v3132_v52, %v3148_v31 }
 0x338   : > { %v2950_v12 = vsel %vm2943_vm12, %v2946_v29, %v2949_v23  ;;  %v3153_v18 = vsel %vm3141_vm1, %v3135_v37, %v3152_v14  ;;  %v3123_v1 = vshrl.u32 %v3870_v44, %v3122_v48  ;;  %v3150_v6 = vsel %vm3140_vm0, %v3147_v25, %v3149_v16 }
 0x339   : > { %v2951_v21 = vsel %vm2940_vm11, nan, %v2950_v12  ;;  %vm3729_vm3 = vcmp.lt.s32.totalorder %v3728_v3, 0  ;;  %v3154_v34 = vsel %vm3140_vm0, %v3151_v39, %v3153_v18  ;;  %v3144_v59 = vsel %vm3142_vm2, %v3132_v52, 2102212464 }
 0x33a   : > { %v3061_v26 = vsel %vm3729_vm3, 0, %v3728_v3  ;;  %3588 = vst [vmem:[%s4272_s4 + $0x80] sm:$0xff] %v2951_v21  ;;  %v3158_v35 = vand.u32 65535, %v3154_v34  ;;  %v3077_v20 = vsel %vm2954_vm14, %v3076_v22, %v6020_v30  ;;  %v3159_v49 = vshrl.u32 %v3154_v34, 16 }
 0x33b   : > { %v3062_v36 = vsub.s32 32, %v3061_v26  ;;  %v3066_v60 = vsub.s32 4294967266, %v3061_v26  ;;  %v3180_v9 = vand.u32 65535, %v3150_v6  ;;  %v3181_v48 = vshrl.u32 %v3150_v6, 16 }
 0x33c   : > { %vm6087_vm4 = vcmp.le.f32.partialorder %v2952_v5, 0.7853982  ;;  %v3063_v10 = vshll.u32 %v6039_v19, %v3061_v26  ;;  %v3162_v41 = vmul.u32 %v3158_v35, %v6030_v27  ;;  %v3143_v62 = vsel %vm3139_vm15, %v3123_v1, %v3126_v8 }
 0x33d   : > { %v3064_v43 = vshrl.u32 %v6018_v55, %v3062_v36  ;;  %v3067_v13 = vadd.s32 127, %v3066_v60  ;;  %v3145_v30 = vsel %vm3141_vm1, %v3129_v11, %v3144_v59  ;;  %v3161_v4 = vmul.u32 %v3159_v49, %v6027_v54 }
 0x33e   : > { %v3183_v5 = vmul.u32 %v3181_v48, %v6027_v54  ;;  %v3160_v52 = vmul.u32 %v3158_v35, %v6027_v54  ;;  %vm3273_vm5 = vcmp.gt.s32.totalorder %v3272_v45, 0  ;;  %v3163_v55 = vmul.u32 %v3159_v49, %v6030_v27 }
 0x33f   : > { %v3065_v33 = vor.u32 %v3064_v43, %v3063_v10  ;;  %v3068_v51 = vshll.u32 %v3067_v13, 23  ;;  %v3164_v19 = vshll.u32 %v3161_v4, 16  ;;  %v3182_v37 = vmul.u32 %v3180_v9, %v6027_v54 }
 0x340   : > { %v3184_v7 = vmul.u32 %v3180_v9, %v6030_v27  ;;  %v3166_v61 = vshll.u32 %v3162_v41, 16  ;;  %v3185_v11 = vmul.u32 %v3181_v48, %v6030_v27  ;;  %v3186_v32 = vshll.u32 %v3183_v5, 16 }
 0x341   : > { %v3069_v8 = vor.u32 4788187, %v3068_v51  ;;  %v3072_v22 = vcvt.s32.f32 %v3065_v33  ;;  %vm3168_vm6 = vc.u32 %v3160_v52, %v3164_v19  ;;  %v3170_v29 = vadd.s32 %v3164_v19, %v3160_v52 }
 0x342   : > { %v3188_v23 = vshll.u32 %v3184_v7, 16  ;;  %v3169_v25 = vsel %vm3168_vm6, 1, %v3869_v0  ;;  %vm3190_vm7 = vc.u32 %v3182_v37, %v3186_v32  ;;  %v3192_v12 = vadd.s32 %v3186_v32, %v3182_v37 }
 0x343   : > { %v3070_v3 = vand.u32 2147483647, %v3069_v8  ;;  %v3171_v31 = vadd.s32 %v3169_v25, %v3163_v55  ;;  %vm3172_vm8 = vc.u32 %v3170_v29, %v3166_v61  ;;  %v3191_v54 = vsel %vm3190_vm7, 1, %v3869_v0 }
 0x344   : > { %v3274_v39 = vsel %vm3273_vm5, %v3272_v45, 0  ;;  %v3173_v21 = vsel %vm3172_vm8, 1, %v3869_v0  ;;  %v3193_v27 = vadd.s32 %v3191_v54, %v3185_v11  ;;  %vm3194_vm9 = vc.u32 %v3192_v12, %v3188_v23 }
 0x345   : > { %v3073_v14 = vmul.f32 %v3072_v22, %v3070_v3  ;;  %v3079_v16 = vsel %vm6087_vm4, 0, %v3077_v20  ;;  %v3165_v18 = vshrl.u32 %v3161_v4, 16  ;;  %v3175_v26 = vadd.s32 %v3173_v21, %v3171_v31 }
 0x346   : > { %v3195_v1 = vsel %vm3194_vm9, 1, %v3869_v0  ;;  %v3187_v34 = vshrl.u32 %v3183_v5, 16  ;;  %v3276_v60 = vand.u32 31, %v3274_v39  ;;  %v3146_v59 = vsel %vm3140_vm0, %v3143_v62, %v3145_v30 }
 0x347   : > { %v3074_v6 = vxor.u32 2147483648, %v3073_v14  ;;  %v3197_v36 = vadd.s32 %v3195_v1, %v3193_v27  ;;  %v3167_v45 = vshrl.u32 %v3162_v41, 16  ;;  %v3176_v35 = vadd.s32 %v3175_v26, %v3165_v18 }
 0x348   : > { %v3270_v49 = vor.u32 8388608, %v6024_v28  ;;  %v3189_v48 = vshrl.u32 %v3184_v7, 16  ;;  %v6117_v10 = vsub.s32 32, %v3276_v60  ;;  %v3096_v13 = vadd.s32 3, %v3079_v16 }
 0x349   : > { %v3075_v9 = vsel %vm2954_vm14, %v3074_v6, %v3073_v14  ;;  %v3198_v20 = vadd.s32 %v3197_v36, %v3187_v34  ;;  %v6122_v4 = vadd.s32 %v3176_v35, %v3167_v45  ;;  %v6124_v57 = vadd.s32 %v3192_v12, %v3188_v23  ;;  %v271_v45 = vpop.permute.xlu2 %270 }
 0x34a   : > { %v3078_v43 = vsel %vm6087_vm4, %v5687_v63, %v3075_v9  ;;  %v3200_v28 = vmul.u32 %v6016_v46, %v3146_v59  ;;  %v6127_v30 = vshrl.u32 %v3274_v39, 5  ;;  %v3282_v5 = vshll.u32 %v3871_v47, %v3276_v60 }
 0x34b   : > { %v3080_v41 = vmul.f32 %v3078_v43, %v3078_v43  ;;  %v3199_v62 = vadd.s32 %v3198_v20, %v3189_v48  ;;  %vm3202_vm10 = vc.u32 %v6122_v4, %v6124_v57  ;;  %v3283_v17 = vshrl.u32 %v3872_v50, %v6117_v10 }
 0x34c   : > { %v3286_v33 = vshrl.u32 %v3873_v53, %v6117_v10  ;;  %v6136_v19 = vshll.u32 %v3270_v49, 8  ;;  %v3280_v46 = vshrl.u32 %v3871_v47, %v6117_v10  ;;  %v3285_v7 = vshll.u32 %v3872_v50, %v3276_v60 }
 0x34d   : > { %v3081_v51 = vmul.f32 -0.001358992, %v3080_v41  ;;  %v3088_v52 = vmul.f32 -0.00019511016, %v3080_v41  ;;  %v3203_v55 = vadd.s32 1, %v3199_v62  ;;  %v6140_v37 = vor.u32 %v3283_v17, %v3282_v5 }
 0x34e   : > { %v3289_v8 = vshrl.u32 %v3874_v56, %v6117_v10  ;;  %v3288_v22 = vshll.u32 %v3873_v53, %v3276_v60  ;;  %v6146_v23 = vor.u32 %v3286_v33, %v3285_v7  ;;  %v3291_v3 = vshll.u32 %v3874_v56, %v3276_v60 }
 0x34f   : > { %v3082_v61 = vadd.f32 0.041655596, %v3081_v51  ;;  %v3089_v11 = vadd.f32 0.008332121, %v3088_v52  ;;  %v3204_v32 = vsel %vm3202_vm10, %v3203_v55, %v3199_v62  ;;  %v3292_v25 = vshrl.u32 %v3875_v58, %v6117_v10 }
 0x350   : > { %v3205_v29 = vadd.s32 %v3204_v32, %v3200_v28  ;;  %v3279_v54 = vshll.u32 %v3870_v44, %v3276_v60  ;;  %v3290_v39 = vor.u32 %v3289_v8, %v3288_v22  ;;  %vm3294_vm12 = vcmp.lt.s32.totalorder %v6127_v30, 1 }
 0x351   : > { %v3083_v12 = vmul.f32 %v3082_v61, %v3080_v41  ;;  %v3090_v31 = vmul.f32 %v3089_v11, %v3080_v41  ;;  %v3293_v21 = vor.u32 %v3292_v25, %v3291_v3  ;;  %vm3295_vm11 = vcmp.lt.s32.totalorder %v6127_v30, 2 }
 0x352   : > { %v3206_v14 = vadd.s32 536870912, %v3205_v29  ;;  %v6154_v18 = vor.u32 %v3280_v46, %v3279_v54  ;;  %vm3297_vm13 = vcmp.lt.s32.totalorder %v6127_v30, 4  ;;  %vm3296_vm14 = vcmp.lt.s32.totalorder %v6127_v30, 3 }
 0x353   : > { %v3084_v27 = vadd.f32 -0.4999988, %v3083_v12  ;;  %v3091_v16 = vadd.f32 -0.16666654, %v3090_v31  ;;  %v3306_v1 = vsel %vm3294_vm12, %v6140_v37, %v6146_v23  ;;  %v3307_v6 = vsel %vm3297_vm13, %v3293_v21, 1326507024 }
 0x354   : > { %v6157_v26 = vshrl.u32 %v3206_v14, 30  ;;  %v3303_v60 = vsel %vm3297_vm13, %v3290_v39, 920167782  ;;  %v3308_v59 = vsel %vm3296_vm14, %v3290_v39, %v3307_v6  ;;  %v3097_v35 = vand.u32 3, %v3096_v13 }
 0x355   : > { %v3085_v34 = vmul.f32 %v3084_v27, %v3080_v41  ;;  %v3092_v36 = vmul.f32 %v3091_v16, %v3080_v41  ;;  %v3309_v9 = vsel %vm3295_vm11, %v3306_v1, %v3308_v59  ;;  %v3302_v41 = vsel %vm3294_vm12, %v6154_v18, %v6140_v37 }
 0x356   : > { %v3208_v49 = vshll.u32 %v6157_v26, 30  ;;  %v3313_v62 = vand.u32 65535, %v3309_v9  ;;  %v3304_v5 = vsel %vm3296_vm14, %v6146_v23, %v3303_v60  ;;  %v3311_v13 = vand.u32 65535, %v6136_v19 }
 0x357   : > { %v3086_v48 = vadd.f32 1.0, %v3085_v34  ;;  %v3093_v20 = vadd.f32 1.0, %v3092_v36  ;;  %v3314_v17 = vshrl.u32 %v3309_v9, 16  ;;  %v294_v33 = vmul.f32 %v5893_v40, %v271_v45 }
 0x358   : > { %v3209_v28 = vsub.s32 %v3205_v29, %v3208_v49  ;;  %v3312_v55 = vshrl.u32 %v6136_v19, 16  ;;  %vm3095_vm15 = vweird.f32 %v5687_v63  ;;  %vm3098_vm1 = vcmp.lt.s32.totalorder %v3097_v35, 2 }
 0x359   : > { %v3094_v51 = vmul.f32 %v3093_v20, %v3078_v43  ;;  %v3103_v52 = vxor.u32 2147483648, %v3086_v48  ;;  %v3316_v7 = vmul.u32 %v3314_v17, %v3311_v13  ;;  %v3305_v61 = vsel %vm3295_vm11, %v3302_v41, %v3304_v5 }
 0x35a   : > { %vm3210_vm0 = vcmp.lt.s32.totalorder %v3209_v28, 0  ;;  %v3211_v46 = vsub.s32 0, %v3209_v28  ;;  %v6186_v11 = vmul.u32 %v3313_v62, %v3312_v55  ;;  %vm3099_vm2 = vcmp.eq.s32.totalorder %v3097_v35, 0 }
 0x35b   : > { %v3100_v8 = vxor.u32 2147483648, %v3094_v51  ;;  %vm3102_vm3 = vcmp.eq.s32.totalorder %v3097_v35, 2  ;;  %v3319_v40 = vshll.u32 %v3316_v7, 16  ;;  %v3315_v3 = vmul.u32 %v3313_v62, %v3311_v13 }
 0x35c   : > { %v3212_v32 = vsel %vm3210_vm0, %v3211_v46, %v3209_v28  ;;  %v3104_v22 = vsel %vm3102_vm3, %v3103_v52, %v3094_v51  ;;  %v3318_v12 = vmul.u32 %v3314_v17, %v3312_v55  ;;  %v3321_v31 = vshll.u32 %v6186_v11, 16 }
 0x35d   : > { %v3101_v43 = vsel %vm3099_vm2, %v3086_v48, %v3100_v8  ;;  %v3213_v29 = vclz %v3212_v32  ;;  %v3335_v54 = vand.u32 65535, %v3305_v61  ;;  %vm3323_vm4 = vc.u32 %v3315_v3, %v3319_v40 }
 0x35e   : > { %v3105_v25 = vsel %vm3098_vm1, %v3101_v43, %v3104_v22  ;;  %v3325_v21 = vadd.s32 %v3319_v40, %v3315_v3  ;;  %v3324_v27 = vsel %vm3323_vm4, 1, %v3869_v0  ;;  %v3336_v16 = vshrl.u32 %v3305_v61, 16 }
 0x35f   : > { %v3106_v39 = vsel %vm3095_vm15, nan, %v3105_v25  ;;  %v3731_v14 = vadd.s32 4294967294, %v3213_v29  ;;  %v6194_v1 = vadd.f32 %v5960_v42, %v294_v33  ;;  %v3326_v6 = vadd.s32 %v3324_v27, %v3318_v12 }
 0x360   : > { %3589 = vst [vmem:[%s4272_s4 + $0x88] sm:$0xff] %v3106_v39  ;;  %vm3327_vm6 = vc.u32 %v3325_v21, %v3321_v31  ;;  %v3338_v60 = vmul.u32 %v3336_v16, %v3311_v13  ;;  %v3339_v59 = vmul.u32 %v3335_v54, %v3312_v55  ;;  %v3201_v63 = vadd.s32 %v6124_v57, %v6122_v4 }
 0x361   : > { %vm3732_vm5 = vcmp.lt.s32.totalorder %v3731_v14, 0  ;;  %v3328_v36 = vsel %vm3327_vm6, 1, %v3869_v0  ;;  %vm3109_vm7 = vcmp.lt.s32.totalorder %v5963_v38, 0  ;;  %v3299_v42 = vsel %vm3297_vm13, %v6146_v23, 2102212464 }
 0x362   : > { %v3216_v34 = vsel %vm3732_vm5, 0, %v3731_v14  ;;  %v3330_v49 = vadd.s32 %v3328_v36, %v3326_v6  ;;  %v3337_v9 = vmul.u32 %v3335_v54, %v3311_v13  ;;  %v3341_v48 = vshll.u32 %v3338_v60, 16 }
 0x363   : > { %v3217_v45 = vsub.s32 32, %v3216_v34  ;;  %v3221_v35 = vsub.s32 4294967266, %v3216_v34  ;;  %v3218_v20 = vshll.u32 %v3209_v28, %v3216_v34  ;;  %v3320_v5 = vshrl.u32 %v3316_v7, 16 }
 0x364   : > { %v3340_v17 = vmul.u32 %v3336_v16, %v3312_v55  ;;  %v3343_v33 = vshll.u32 %v3339_v59, 16  ;;  %vm3345_vm8 = vc.u32 %v3337_v9, %v3341_v48  ;;  %v3347_v51 = vadd.s32 %v3341_v48, %v3337_v9 }
 0x365   : > { %v3219_v41 = vshrl.u32 %v3201_v63, %v3217_v45  ;;  %v3222_v62 = vadd.s32 127, %v3221_v35  ;;  %v3331_v52 = vadd.s32 %v3330_v49, %v3320_v5  ;;  %v3346_v46 = vsel %vm3345_vm8, 1, %v3869_v0 }
 0x366   : > { %v3231_v8 = vsub.s32 4, %v6157_v26  ;;  %v3278_v23 = vshrl.u32 %v3870_v44, %v6117_v10  ;;  %v3348_v13 = vadd.s32 %v3346_v46, %v3340_v17  ;;  %vm3349_vm9 = vc.u32 %v3347_v51, %v3343_v33 }
 0x367   : > { %v3220_v4 = vor.u32 %v3219_v41, %v3218_v20  ;;  %v3223_v57 = vshll.u32 %v3222_v62, 23  ;;  %v3322_v61 = vshrl.u32 %v6186_v11, 16  ;;  %v3350_v55 = vsel %vm3349_vm9, 1, %v3869_v0 }
 0x368   : > { %v3420_v7 = vand.u32 2139095040, %v6194_v1  ;;  %v3298_v32 = vsel %vm3294_vm12, %v3278_v23, %v6154_v18  ;;  %v3300_v40 = vsel %vm3296_vm14, %v6140_v37, %v3299_v42  ;;  %v3342_v43 = vshrl.u32 %v3338_v60, 16 }
 0x369   : > { %v3224_v28 = vor.u32 4788187, %v3223_v57  ;;  %v3352_v22 = vadd.s32 %v3350_v55, %v3348_v13  ;;  %v3227_v29 = vcvt.s32.f32 %v3220_v4  ;;  %v6216_v3 = vadd.s32 %v3331_v52, %v3322_v61 }
 0x36a   : > { %v3421_v25 = vshrl.u32 %v3420_v7, 23  ;;  %v3232_v11 = vsel %vm3109_vm7, %v3231_v8, %v6157_v26  ;;  %v3344_v12 = vshrl.u32 %v3339_v59, 16  ;;  %v6221_v39 = vadd.s32 %v3347_v51, %v3343_v33 }
 0x36b   : > { %v3225_v10 = vand.u32 2147483647, %v3224_v28  ;;  %v3353_v31 = vadd.s32 %v3352_v22, %v3342_v43  ;;  %v3417_v18 = vand.u32 2147483647, %v6194_v1  ;;  %vm3108_vm10 = vcmp.le.f32.partialorder %v3107_v24, 0.7853982 }
 0x36c   : > { %v3736_v14 = vadd.s32 4294967169, %v3421_v25  ;;  %v3301_v37 = vsel %vm3295_vm11, %v3298_v32, %v3300_v40  ;;  %v3234_v16 = vsel %vm3108_vm10, 0, %v3232_v11  ;;  %vm3357_vm12 = vc.u32 %v6216_v3, %v6221_v39 }
 0x36d   : > { %v3228_v54 = vmul.f32 %v3227_v29, %v3225_v10  ;;  %v3354_v21 = vadd.s32 %v3353_v31, %v3344_v12  ;;  %v3355_v36 = vmul.u32 %v6136_v19, %v3301_v37  ;;  %v3424_v60 = vand.u32 8388607, %v3417_v18 }
 0x36e   : > { %v3427_v26 = vadd.s32 1, %v3736_v14  ;;  %v3251_v30 = vadd.s32 3, %v3234_v16  ;;  %vm3250_vm1 = vweird.f32 %v5963_v38  ;;  %v3356_v14 = vadd.s32 %v6221_v39, %v6216_v3 }
 0x36f   : > { %v3229_v27 = vxor.u32 2147483648, %v3228_v54  ;;  %v3358_v6 = vadd.s32 1, %v3354_v21  ;;  %v3425_v20 = vor.u32 8388608, %v3424_v60 }
 0x370   : > { %vm3428_vm13 = vcmp.gt.s32.totalorder %v3427_v26, 0  ;;  %v6236_v41 = vand.u32 3, %v3251_v30 }
 0x371   : > { %v3230_v34 = vsel %vm3109_vm7, %v3229_v27, %v3228_v54  ;;  %v3359_v59 = vsel %vm3357_vm12, %v3358_v6, %v3354_v21  ;;  %v3429_v63 = vsel %vm3428_vm13, %v3427_v26, 0  ;;  %v6243_v57 = vshll.u32 %v3425_v20, 8 }
 0x372   : > { %v3233_v24 = vsel %vm3108_vm10, %v5963_v38, %v3230_v34  ;;  %v3360_v35 = vadd.s32 %v3359_v59, %v3355_v36  ;;  %v3431_v49 = vand.u32 31, %v3429_v63  ;;  %vm3257_vm11 = vcmp.eq.s32.totalorder %v6236_v41, 2 }
 0x373   : > { %v3235_v45 = vmul.f32 %v3233_v24, %v3233_v24  ;;  %v6246_v52 = vshrl.u32 %v3429_v63, 5  ;;  %vm3254_vm14 = vcmp.eq.s32.totalorder %v6236_v41, 0  ;;  %vm3253_vm15 = vcmp.lt.s32.totalorder %v6236_v41, 2 }
 0x374   : > { %v3361_v48 = vadd.s32 536870912, %v3360_v35  ;;  %v6238_v62 = vsub.s32 32, %v3431_v49  ;;  %v3434_v46 = vshll.u32 %v3870_v44, %v3431_v49  ;;  %v3437_v7 = vshll.u32 %v3871_v47, %v3431_v49 }
 0x375   : > { %v3236_v42 = vmul.f32 -0.001358992, %v3235_v45  ;;  %v3243_v9 = vmul.f32 -0.00019511016, %v3235_v45  ;;  %v3443_v40 = vshll.u32 %v3873_v53, %v3431_v49  ;;  %v3446_v12 = vshll.u32 %v3874_v56, %v3431_v49 }
 0x376   : > { %v6240_v17 = vshrl.u32 %v3361_v48, 30  ;;  %v3435_v8 = vshrl.u32 %v3871_v47, %v6238_v62  ;;  %v3438_v23 = vshrl.u32 %v3872_v50, %v6238_v62  ;;  %v3444_v55 = vshrl.u32 %v3874_v56, %v6238_v62 }
 0x377   : > { %v3237_v19 = vadd.f32 0.041655596, %v3236_v42  ;;  %v3244_v5 = vadd.f32 0.008332121, %v3243_v9  ;;  %v3441_v32 = vshrl.u32 %v3873_v53, %v6238_v62  ;;  %v3447_v43 = vshrl.u32 %v3875_v58, %v6238_v62 }
 0x378   : > { %v3363_v4 = vshll.u32 %v6240_v17, 30  ;;  %v6264_v25 = vor.u32 %v3435_v8, %v3434_v46  ;;  %v6266_v11 = vor.u32 %v3438_v23, %v3437_v7  ;;  %v3440_v47 = vshll.u32 %v3872_v50, %v3431_v49 }
 0x379   : > { %v3238_v33 = vmul.f32 %v3237_v19, %v3235_v45  ;;  %v3245_v51 = vmul.f32 %v3244_v5, %v3235_v45  ;;  %v3445_v58 = vor.u32 %v3444_v55, %v3443_v40  ;;  %v3448_v27 = vor.u32 %v3447_v43, %v3446_v12 }
 0x37a   : > { %v3364_v61 = vsub.s32 %v3360_v35, %v3363_v4  ;;  %v6272_v21 = vor.u32 %v3441_v32, %v3440_v47  ;;  %vm3449_vm2 = vcmp.lt.s32.totalorder %v6246_v52, 1  ;;  %v3466_v6 = vand.u32 65535, %v6243_v57 }
 0x37b   : > { %v3239_v13 = vadd.f32 -0.4999988, %v3238_v33  ;;  %v3246_v28 = vadd.f32 -0.16666654, %v3245_v51  ;;  %vm3450_vm3 = vcmp.lt.s32.totalorder %v6246_v52, 2  ;;  %vm3452_vm4 = vcmp.lt.s32.totalorder %v6246_v52, 4 }
 0x37c   : > { %vm3365_vm0 = vcmp.lt.s32.totalorder %v3364_v61, 0  ;;  %v3366_v29 = vsub.s32 0, %v3364_v61  ;;  %v3457_v56 = vsel %vm3449_vm2, %v6264_v25, %v6266_v11  ;;  %vm3451_vm5 = vcmp.lt.s32.totalorder %v6246_v52, 3 }
 0x37d   : > { %v3240_v22 = vmul.f32 %v3239_v13, %v3235_v45  ;;  %v3247_v10 = vmul.f32 %v3246_v28, %v3235_v45  ;;  %v3458_v34 = vsel %vm3452_vm4, %v3445_v58, 920167782  ;;  %v3461_v60 = vsel %vm3449_vm2, %v6266_v11, %v6272_v21 }
 0x37e   : > { %v3367_v54 = vsel %vm3365_vm0, %v3366_v29, %v3364_v61  ;;  %v3459_v36 = vsel %vm3451_vm5, %v6272_v21, %v3458_v34  ;;  %v3467_v8 = vshrl.u32 %v6243_v57, 16  ;;  %vm3264_vm7 = vcmp.lt.s32.totalorder %v6004_v2, 0 }
 0x37f   : > { %v3241_v53 = vadd.f32 1.0, %v3240_v22  ;;  %v3248_v31 = vadd.f32 1.0, %v3247_v10  ;;  %v3368_v37 = vclz %v3367_v54  ;;  %v3460_v63 = vsel %vm3450_vm3, %v3457_v56, %v3459_v36 }
 0x380   : > { %v3490_v19 = vand.u32 65535, %v3460_v63  ;;  %v3491_v5 = vshrl.u32 %v3460_v63, 16  ;;  %vm6322_vm13 = vcmp.le.f32.partialorder %v3262_v15, 0.7853982  ;;  %v3386_v15 = vsub.s32 4, %v6240_v17 }
 0x381   : > { %v3249_v16 = vmul.f32 %v3248_v31, %v3233_v24  ;;  %v3258_v26 = vxor.u32 2147483648, %v3241_v53  ;;  %v3734_v50 = vadd.s32 4294967294, %v3368_v37  ;;  %v3462_v24 = vsel %vm3452_vm4, %v3448_v27, 1326507024 }
 0x382   : > { %v3463_v45 = vsel %vm3451_vm5, %v3445_v58, %v3462_v24  ;;  %v3493_v41 = vmul.u32 %v3491_v5, %v3466_v6  ;;  %v3492_v43 = vmul.u32 %v3490_v19, %v3466_v6  ;;  %v3495_v47 = vmul.u32 %v3491_v5, %v3467_v8 }
 0x383   : > { %v3255_v3 = vxor.u32 2147483648, %v3249_v16  ;;  %v3259_v39 = vsel %vm3257_vm11, %v3258_v26, %v3249_v16  ;;  %vm3735_vm6 = vcmp.lt.s32.totalorder %v3734_v50, 0  ;;  %v3464_v20 = vsel %vm3450_vm3, %v3461_v60, %v3463_v45 }
 0x384   : > { %v3371_v59 = vsel %vm3735_vm6, 0, %v3734_v50  ;;  %v3468_v4 = vand.u32 65535, %v3464_v20  ;;  %v3469_v46 = vshrl.u32 %v3464_v20, 16  ;;  %v3496_v55 = vshll.u32 %v3493_v41, 16 }
 0x385   : > { %v3256_v30 = vsel %vm3254_vm14, %v3241_v53, %v3255_v3  ;;  %v3372_v49 = vsub.s32 32, %v3371_v59  ;;  %v3373_v42 = vshll.u32 %v3364_v61, %v3371_v59  ;;  %v3376_v9 = vsub.s32 4294967266, %v3371_v59 }
 0x386   : > { %v3260_v35 = vsel %vm3253_vm15, %v3256_v30, %v3259_v39  ;;  %v3471_v28 = vmul.u32 %v3469_v46, %v3466_v6  ;;  %v3472_v38 = vmul.u32 %v3468_v4, %v3467_v8  ;;  %v3494_v61 = vmul.u32 %v3490_v19, %v3467_v8 }
 0x387   : > { %v3261_v48 = vsel %vm3250_vm1, nan, %v3260_v35  ;;  %v3374_v33 = vshrl.u32 %v3356_v14, %v3372_v49  ;;  %v3377_v51 = vadd.s32 127, %v3376_v9  ;;  %v3470_v32 = vmul.u32 %v3468_v4, %v3466_v6 }
 0x388   : > { %3590 = vst [vmem:[%s4272_s4 + $0x90] sm:$0xff] %v3261_v48  ;;  %v3474_v40 = vshll.u32 %v3471_v28, 16  ;;  %v3473_v10 = vmul.u32 %v3469_v46, %v3467_v8  ;;  %v3476_v29 = vshll.u32 %v3472_v38, 16  ;;  %vm3500_vm9 = vc.u32 %v3492_v43, %v3496_v55 }
 0x389   : > { %v3375_v23 = vor.u32 %v3374_v33, %v3373_v42  ;;  %v3378_v13 = vshll.u32 %v3377_v51, 23  ;;  %v3498_v54 = vshll.u32 %v3494_v61, 16  ;;  %v3501_v58 = vsel %vm3500_vm9, 1, %v3869_v0 }
 0x38a   : > { %vm3478_vm8 = vc.u32 %v3470_v32, %v3474_v40  ;;  %v3480_v53 = vadd.s32 %v3474_v40, %v3470_v32  ;;  %v3502_v14 = vadd.s32 %v3496_v55, %v3492_v43  ;;  %v3503_v16 = vadd.s32 %v3501_v58, %v3495_v47 }
 0x38b   : > { %v3379_v7 = vor.u32 4788187, %v3378_v13  ;;  %v3382_v22 = vcvt.s32.f32 %v3375_v23  ;;  %v3479_v31 = vsel %vm3478_vm8, 1, %v3869_v0  ;;  %v3433_v26 = vshrl.u32 %v3870_v44, %v6238_v62 }
 0x38c   : > { %v3481_v27 = vadd.s32 %v3479_v31, %v3473_v10  ;;  %vm3482_vm10 = vc.u32 %v3480_v53, %v3476_v29  ;;  %v3454_v6 = vsel %vm3452_vm4, %v6272_v21, 2102212464  ;;  %vm3504_vm12 = vc.u32 %v3502_v14, %v3498_v54 }
 0x38d   : > { %v3380_v12 = vand.u32 2147483647, %v3379_v7  ;;  %v3483_v50 = vsel %vm3482_vm10, 1, %v3869_v0  ;;  %v3475_v3 = vshrl.u32 %v3471_v28, 16  ;;  %v3505_v34 = vsel %vm3504_vm12, 1, %v3869_v0 }
 0x38e   : > { %v3485_v39 = vadd.s32 %v3483_v50, %v3481_v27  ;;  %v3453_v44 = vsel %vm3449_vm2, %v3433_v26, %v6264_v25  ;;  %v3497_v62 = vshrl.u32 %v3493_v41, 16  ;;  %v3507_v21 = vadd.s32 %v3505_v34, %v3503_v16 }
 0x38f   : > { %v3383_v37 = vmul.f32 %v3382_v22, %v3380_v12  ;;  %v3455_v24 = vsel %vm3451_vm5, %v6266_v11, %v3454_v6  ;;  %v3477_v0 = vshrl.u32 %v3472_v38, 16  ;;  %v3499_v63 = vshrl.u32 %v3494_v61, 16 }
 0x390   : > { %v3486_v30 = vadd.s32 %v3485_v39, %v3475_v3  ;;  %v3508_v45 = vadd.s32 %v3507_v21, %v3497_v62  ;;  %v3506_v49 = vadd.s32 %v3502_v14, %v3498_v54  ;;  %v3456_v42 = vsel %vm3450_vm3, %v3453_v44, %v3455_v24 }
 0x391   : > { %v3384_v56 = vxor.u32 2147483648, %v3383_v37  ;;  %v3387_v11 = vsel %vm3264_vm7, %v3386_v15, %v6240_v17  ;;  %v3510_v51 = vmul.u32 %v6243_v57, %v3456_v42  ;;  %vm3405_vm2 = vweird.f32 %v6004_v2 }
 0x392   : > { %v3487_v35 = vadd.s32 %v3486_v30, %v3477_v0  ;;  %v3509_v9 = vadd.s32 %v3508_v45, %v3499_v63  ;;  %v3389_v46 = vsel %vm6322_vm13, 0, %v3387_v11  ;;  %vm3419_vm4 = vcmp.lt.s32.totalorder %v6194_v1, 0 }
 0x393   : > { %v3385_v60 = vsel %vm3264_vm7, %v3384_v56, %v3383_v37  ;;  %v3406_v38 = vadd.s32 3, %v3389_v46  ;;  %vm3418_vm5 = vcmp.le.f32.partialorder %v3417_v18, 0.7853982  ;;  %vm3560_vm9 = vweird.f32 %v6194_v1 }
 0x394   : > { %v3388_v59 = vsel %vm6322_vm13, %v6004_v2, %v3385_v60  ;;  %vm3512_vm11 = vc.u32 %v3487_v35, %v3506_v49  ;;  %v3513_v19 = vadd.s32 1, %v3509_v9  ;;  %v3511_v16 = vadd.s32 %v3506_v49, %v3487_v35 }
 0x395   : > { %v3390_v25 = vmul.f32 %v3388_v59, %v3388_v59  ;;  %v3407_v43 = vand.u32 3, %v3406_v38 }
 0x396   : > { %v3514_v4 = vsel %vm3512_vm11, %v3513_v19, %v3509_v9 }
 0x397   : > { %v3391_v48 = vmul.f32 -0.001358992, %v3390_v25  ;;  %v3398_v20 = vmul.f32 -0.00019511016, %v3390_v25  ;;  %v3515_v41 = vadd.s32 %v3514_v4, %v3510_v51  ;;  %vm3409_vm15 = vcmp.eq.s32.totalorder %v3407_v43, 0 }
 0x398   : > { %vm3412_vm0 = vcmp.eq.s32.totalorder %v3407_v43, 2  ;;  %vm3408_vm1 = vcmp.lt.s32.totalorder %v3407_v43, 2 }
 0x399   : > { %v3392_v5 = vadd.f32 0.041655596, %v3391_v48  ;;  %v3399_v33 = vadd.f32 0.008332121, %v3398_v20  ;;  %v3516_v28 = vadd.s32 536870912, %v3515_v41 }
 0x39b   : > { %v3393_v8 = vmul.f32 %v3392_v5, %v3390_v25  ;;  %v3400_v52 = vmul.f32 %v3399_v33, %v3390_v25  ;;  %v3517_v7 = vshrl.u32 %v3516_v28, 30 }
 0x39d   : > { %v3394_v23 = vadd.f32 -0.4999988, %v3393_v8  ;;  %v3401_v13 = vadd.f32 -0.16666654, %v3400_v52  ;;  %v3518_v40 = vshll.u32 %v3517_v7, 30  ;;  %v3541_v24 = vsub.s32 4, %v3517_v7 }
 0x39f   : > { %v3395_v61 = vmul.f32 %v3394_v23, %v3390_v25  ;;  %v3402_v55 = vmul.f32 %v3401_v13, %v3390_v25  ;;  %v3519_v10 = vsub.s32 %v3515_v41, %v3518_v40  ;;  %v3542_v63 = vsel %vm3419_vm4, %v3541_v24, %v3517_v7 }
 0x3a0   : > { %v3544_v35 = vsel %vm3418_vm5, 0, %v3542_v63 }
 0x3a1   : > { %v3396_v17 = vadd.f32 1.0, %v3395_v61  ;;  %v3403_v32 = vadd.f32 1.0, %v3402_v55  ;;  %vm3520_vm14 = vcmp.lt.s32.totalorder %v3519_v10, 0  ;;  %v3521_v47 = vsub.s32 0, %v3519_v10 }
 0x3a2   : > { %v3561_v20 = vadd.s32 3, %v3544_v35 }
 0x3a3   : > { %v3404_v22 = vmul.f32 %v3403_v32, %v3388_v59  ;;  %v3413_v57 = vxor.u32 2147483648, %v3396_v17  ;;  %v3522_v31 = vsel %vm3520_vm14, %v3521_v47, %v3519_v10 }
 0x3a4   : > { %v3523_v58 = vclz %v3522_v31  ;;  %v3562_v33 = vand.u32 3, %v3561_v20 }
 0x3a5   : > { %v3410_v29 = vxor.u32 2147483648, %v3404_v22  ;;  %v3414_v53 = vsel %vm3412_vm0, %v3413_v57, %v3404_v22 }
 0x3a6   : > { %v3737_v37 = vadd.s32 4294967294, %v3523_v58  ;;  %vm3564_vm6 = vcmp.eq.s32.totalorder %v3562_v33, 0  ;;  %vm3567_vm7 = vcmp.eq.s32.totalorder %v3562_v33, 2  ;;  %vm3563_vm8 = vcmp.lt.s32.totalorder %v3562_v33, 2 }
 0x3a7   : > { %v3411_v12 = vsel %vm3409_vm15, %v3396_v17, %v3410_v29 }
 0x3a8   : > { %v3415_v54 = vsel %vm3408_vm1, %v3411_v12, %v3414_v53  ;;  %vm3738_vm3 = vcmp.lt.s32.totalorder %v3737_v37, 0 }
 0x3a9   : > { %v3416_v14 = vsel %vm3405_vm2, nan, %v3415_v54  ;;  %v3526_v27 = vsel %vm3738_vm3, 0, %v3737_v37 }
 0x3aa   : > { %3591 = vst [vmem:[%s4272_s4 + $0x98] sm:$0xff] %v3416_v14  ;;  %v3527_v26 = vsub.s32 32, %v3526_v27  ;;  %v3531_v6 = vsub.s32 4294967266, %v3526_v27  ;;  %v3528_v50 = vshll.u32 %v3519_v10, %v3526_v27 }
 0x3ac   : > { %v3529_v56 = vshrl.u32 %v3511_v16, %v3527_v26  ;;  %v3532_v3 = vadd.s32 127, %v3531_v6 }
 0x3ae   : > { %v3530_v39 = vor.u32 %v3529_v56, %v3528_v50  ;;  %v3533_v34 = vshll.u32 %v3532_v3, 23 }
 0x3b0   : > { %v3534_v36 = vor.u32 4788187, %v3533_v34  ;;  %v3537_v62 = vcvt.s32.f32 %v3530_v39 }
 0x3b2   : > { %v3535_v44 = vand.u32 2147483647, %v3534_v36 }
 0x3b4   : > { %v3538_v21 = vmul.f32 %v3537_v62, %v3535_v44 }
 0x3b6   : > { %v3539_v2 = vxor.u32 2147483648, %v3538_v21 }
 0x3b8   : > { %v3540_v60 = vsel %vm3419_vm4, %v3539_v2, %v3538_v21 }
 0x3b9   : > { %v3543_v0 = vsel %vm3418_vm5, %v6194_v1, %v3540_v60 }
 0x3ba   : > { %v3545_v30 = vmul.f32 %v3543_v0, %v3543_v0 }
 0x3bc   : > { %v3546_v15 = vmul.f32 -0.001358992, %v3545_v30  ;;  %v3553_v59 = vmul.f32 -0.00019511016, %v3545_v30 }
 0x3be   : > { %v3547_v45 = vadd.f32 0.041655596, %v3546_v15  ;;  %v3554_v25 = vadd.f32 0.008332121, %v3553_v59 }
 0x3c0   : > { %v3548_v49 = vmul.f32 %v3547_v45, %v3545_v30  ;;  %v3555_v42 = vmul.f32 %v3554_v25, %v3545_v30 }
 0x3c2   : > { %v3549_v9 = vadd.f32 -0.4999988, %v3548_v49  ;;  %v3556_v48 = vadd.f32 -0.16666654, %v3555_v42 }
 0x3c4   : > { %v3550_v18 = vmul.f32 %v3549_v9, %v3545_v30  ;;  %v3557_v11 = vmul.f32 %v3556_v48, %v3545_v30 }
 0x3c6   : > { %v3551_v19 = vadd.f32 1.0, %v3550_v18  ;;  %v3558_v5 = vadd.f32 1.0, %v3557_v11 }
 0x3c8   : > { %v3559_v51 = vmul.f32 %v3558_v5, %v3543_v0  ;;  %v3568_v4 = vxor.u32 2147483648, %v3551_v19 }
 0x3ca   : > { %v3565_v46 = vxor.u32 2147483648, %v3559_v51  ;;  %v3569_v52 = vsel %vm3567_vm7, %v3568_v4, %v3559_v51 }
 0x3cc   : > { %v3566_v8 = vsel %vm3564_vm6, %v3551_v19, %v3565_v46 }
 0x3cd   : > { %v3570_v41 = vsel %vm3563_vm8, %v3566_v8, %v3569_v52 }
 0x3ce   : > { %v3571_v23 = vsel %vm3560_vm9, nan, %v3570_v41 }
 0x3cf   : > { %3592 = vst [vmem:[%s4272_s4 + $0xa0] sm:$0xff] %v3571_v23 }
 0x3d0   : > { %3832 = shalt.err (!%p3829_p3)
}
 0x3d1   : > { %s3876_s30 = smov 128   ;;  %s3877_s4 = smov 8  }
 0x3d2   : > { %3744 = dma.vmem_to_hbm [thread:$0]  (%p3931_p5), %s3607_s8, 2688, %s3609_s14, %s3594_s13, %s3876_s30, %s3876_s30, %s3877_s4  }
 0x3d3 PF: > { %p3750_p4 = scmp.ge.s32.totalorder %s3867_s12, 2  ;;  %s3623_s26 = sand.u32 1, %s3855_s9  }
 0x3d4   : > { %s3624_s27 = scalar_lea.sflag [#allocation3], %s3623_s26 }
 0x3d5   : > { %p3747_p7 = pnand %p3750_p4, %p3935_p6 }
 0x3d7   : > { %p3748_p8 = pneg %p3747_p7 }
 0x3d9   : > { %3850 = dma.done.wait (%p3748_p8), %s3624_s27, 2688  }
 0x3da   : > { %3852 = vsyncadd (%p3748_p8), %s3624_s27, 4294964608  ;;  %p12_p9 = scmp.ge.s32.totalorder %s3918_s15, 4   ;;  %s6425_s9 = smov %s3859_s10 }
 0x3db   : > { %s6426_s10 = smov %s3863_s11  ;;  %s6427_s11 = smov %s3929_s18 }
 0x3dc   : > { %s6428_s12 = smov %s3918_s15  ;;  %14 = sbr.rel (!%p12_p9) target bundleno = 3 (0x3), region = 63 }
 0x3e1   :  { %3630 = vsyncpa [#allocation3], 1 }
 0x3e2   :  { %3632 = vsyncpa [#allocation3 + $0x1], 1 }

</bundles_post_ra>
